<compile_context>
chip_gen: v6e
topology: v6e:2x2x1
jax: 0.10.0
libtpu: 0.0.40
codegen_flags: <defaults>
</compile_context>

<pallas_src>
import numpy as np
import jax
import jax.numpy as jnp
from jax import lax
from jax.experimental import pallas as pl
from jax.experimental.pallas import tpu as pltpu


# ----------------------------------------------------------------------------
# Fused kernel factory: n_layers x D-direction LSTM + heads + normalization
# ----------------------------------------------------------------------------
def _make_fused_kernel(*, T, B, H, D, n_layers, R, P, n_irs, n_inter):
    G = 4 * H
    DH = D * H
    sqrt_p = float(P) ** 0.5

    def kernel(*refs):
        it = iter(refs)
        # ---- inputs ---------------------------------------------------------
        x_ref = next(it)                                   # (T*B, I) time-major
        layers = []
        for _ in range(n_layers):
            wih_ref = next(it)                             # (in, D*4H)
            bcat_ref = next(it)                            # (1, D*4H)
            whh_refs = tuple(next(it) for _ in range(D))   # each (H, 4H)
            layers.append((wih_ref, bcat_ref, whh_refs))
        wbs_ref = next(it)                                 # (D*H, n_bs)
        bbs_ref = next(it)                                 # (1, n_bs)
        wirs_ref = next(it)                                # (D*H, n_irs)
        birs_ref = next(it)                                # (1, n_irs)
        # ---- outputs --------------------------------------------------------
        rnn_ref = next(it)                                 # (T*B, D*H)
        obs_ref = next(it)                                 # (B, n_bs)
        oirs_ref = next(it)                                # (B, n_irs)
        nbs_ref = next(it)                                 # (B, n_bs)
        nirs_ref = next(it)                                # (B, 2R)
        # ---- scratch --------------------------------------------------------
        pg_ref = next(it)                                  # (T*B, D*4H) pre-gates
        inter = [next(it) for _ in range(n_inter)]         # (T*B, D*H) each

        def run_layer(src_ref, dst_ref, wih_ref, bcat_ref, whh_refs):
            # Hoisted, time-parallel input projection: pre-gates for EVERY
            # timestep and EVERY direction in a single MXU pass.
            pg_ref[...] = (
                jnp.dot(src_ref[...], wih_ref[...],
                        preferred_element_type=jnp.float32)
                + bcat_ref[...])

            whh = [whh_refs[d][...] for d in range(D)]     # load weights once
            h = [jnp.zeros((B, H), jnp.float32) for _ in range(D)]
            c = [jnp.zeros((B, H), jnp.float32) for _ in range(D)]

            # T is small and static -> fully unrolled; every ref index below
            # is static (no dynamic-slice work in the hot loop).
            for t in range(T):
                for d in range(D):
                    tt = t if d == 0 else T - 1 - t        # bwd walks in reverse
                    pg = pg_ref[tt * B:(tt + 1) * B, d * G:(d + 1) * G]
                    gates = pg + jnp.dot(h[d], whh[d],
                                         preferred_element_type=jnp.float32)
                    i_g = jax.nn.sigmoid(gates[:, 0 * H:1 * H])
                    f_g = jax.nn.sigmoid(gates[:, 1 * H:2 * H])
                    g_g = jnp.tanh(gates[:, 2 * H:3 * H])
                    o_g = jax.nn.sigmoid(gates[:, 3 * H:4 * H])
                    c[d] = f_g * c[d] + i_g * g_g
                    h[d] = o_g * jnp.tanh(c[d])
                    dst_ref[tt * B:(tt + 1) * B, d * H:(d + 1) * H] = h[d]

        # ---- stacked (bi)directional layers, all VMEM-resident --------------
        for l in range(n_layers):
            src = x_ref if l == 0 else inter[(l - 1) % n_inter]
            dst = rnn_ref if l == n_layers - 1 else inter[l % n_inter]
            run_layer(src, dst, *layers[l])

        # ---- fused heads + normalization on the last timestep ---------------
        h_last = rnn_ref[(T - 1) * B:T * B, :]             # == rnn[:, -1, :]
        out_bs = jnp.dot(h_last, wbs_ref[...],
                         preferred_element_type=jnp.float32) + bbs_ref[...]
        out_irs = jnp.dot(h_last, wirs_ref[...],
                          preferred_element_type=jnp.float32) + birs_ref[...]
        obs_ref[...] = out_bs
        oirs_ref[...] = out_irs

        # BS power normalization (no epsilon -> matches the PyTorch module).
        inv_frob = lax.rsqrt(jnp.sum(out_bs * out_bs, axis=1, keepdims=True))
        nbs_ref[...] = out_bs * (sqrt_p * inv_frob)

        # IRS unit-modulus normalization per reflector (cos/sin pair); single
        # concatenated store instead of two masked slice stores.
        first = out_irs[:, :R]
        last = out_irs[:, n_irs - R:]
        inv_fac = lax.rsqrt(first * first + last * last)
        nirs_ref[...] = jnp.concatenate([first * inv_fac, last * inv_fac], axis=1)

    return kernel


# ----------------------------------------------------------------------------
# Wrapper: weight packing + single pallas_call + output bookkeeping
# ----------------------------------------------------------------------------
def _prep_layer_weights(layer, D):
    """layer[d] = (w_ih (4H,in), w_hh (4H,H), b (4H,)) -> packed kernel args."""
    dirs = ('fwd', 'bwd')[:D]
    wih_cat = jnp.concatenate([layer[d][0].T for d in dirs], axis=1)   # (in, D*4H)
    b_cat = jnp.concatenate([layer[d][2] for d in dirs], axis=0).reshape(1, -1)
    whh = [layer[d][1].T for d in dirs]                                # (H, 4H) each
    return wih_cat, b_cat, whh


def lstm_model_forward(x, weights, model_params, params):
    """x: (B, T, n_inputs), batch_first like PyTorch."""
    B, T, _ = x.shape
    H = model_params['n_neurons']
    D = 2 if model_params['bi_directional'] else 1
    n_layers = model_params['n_layers']
    n_bs = weights['w_bs'].shape[0]
    n_irs = weights['w_irs'].shape[0]
    R = int(params['num_reflectors'])
    P = float(params['total_power_constraint'])

    # time-major flat rows: row t*B + b == x[b, t, :]
    x_flat = jnp.transpose(x, (1, 0, 2)).reshape(T * B, -1)

    args = [x_flat]
    for l in range(n_layers):
        wih_cat, b_cat, whh = _prep_layer_weights(weights['lstm'][l], D)
        args.append(wih_cat)
        args.append(b_cat)
        args.extend(whh)
    args += [weights['w_bs'].T, weights['b_bs'].reshape(1, -1),
             weights['w_irs'].T, weights['b_irs'].reshape(1, -1)]

    n_inter = 0 if n_layers == 1 else min(n_layers - 1, 2)
    scratch = [pltpu.VMEM((T * B, D * 4 * H), jnp.float32)]            # pre-gates
    scratch += [pltpu.VMEM((T * B, D * H), jnp.float32)
                for _ in range(n_inter)]                               # layer ping-pong

    kern = _make_fused_kernel(T=T, B=B, H=H, D=D, n_layers=n_layers,
                              R=R, P=P, n_irs=n_irs, n_inter=n_inter)

    rnn_flat, out_bs, out_irs, nbs, nirs = pl.pallas_call(
        kern,
        out_shape=(
            jax.ShapeDtypeStruct((T * B, D * H), jnp.float32),   # rnn (time-major)
            jax.ShapeDtypeStruct((B, n_bs), jnp.float32),        # output_BS
            jax.ShapeDtypeStruct((B, n_irs), jnp.float32),       # output_IRS
            jax.ShapeDtypeStruct((B, n_bs), jnp.float32),        # normalized_BS
            jax.ShapeDtypeStruct((B, 2 * R), jnp.float32),       # normalized_IRS
        ),
        scratch_shapes=scratch,
    )(*args)

    rnn = jnp.transpose(rnn_flat.reshape(T, B, D * H), (1, 0, 2))      # (B, T, D*H)
    out = jnp.concatenate([nbs, nirs], axis=1)

    values = {
        'rnn': rnn,
        'output_BS': out_bs,
        'output_IRS': out_irs,
        'normalized_BS': nbs,
        'normalized_IRS': nirs,
        'out': out,
    }
    return {'values': values, 'out_BS': nbs, 'out_IRS': nirs, 'out': out, 'in': x}


# ----------------------------------------------------------------------------
# Deterministic parameter construction (matches nn.LSTM / nn.Linear shapes)
# ----------------------------------------------------------------------------
def make_weights(key, model_params):
    I0 = model_params['n_inputs']
    H = model_params['n_neurons']
    D = 2 if model_params['bi_directional'] else 1
    n_bs = model_params['n_outputs_BS']
    n_irs = model_params['n_outputs_IRS']

    def uni(key, shape, k):
        return jax.random.uniform(key, shape, jnp.float32, -k, k)

    keys = iter(jax.random.split(key, 8 * model_params['n_layers'] * D + 4))
    k_lstm = 1.0 / np.sqrt(H)
    lstm = []
    for l in range(model_params['n_layers']):
        in_size = I0 if l == 0 else D * H
        layer = {}
        for d in (['fwd', 'bwd'] if D == 2 else ['fwd']):
            w_ih = uni(next(keys), (4 * H, in_size), k_lstm)
            w_hh = uni(next(keys), (4 * H, H), k_lstm)
            b_ih = uni(next(keys), (4 * H,), k_lstm)
            b_hh = uni(next(keys), (4 * H,), k_lstm)
            layer[d] = (w_ih, w_hh, b_ih + b_hh)          # biases summed
        lstm.append(layer)

    k_lin = 1.0 / np.sqrt(D * H)
    w_bs = uni(next(keys), (n_bs, D * H), k_lin)
    b_bs = uni(next(keys), (n_bs,), k_lin)
    w_irs = uni(next(keys), (n_irs, D * H), k_lin)
    b_irs = uni(next(keys), (n_irs,), k_lin)
    return {'lstm': lstm, 'w_bs': w_bs, 'b_bs': b_bs, 'w_irs': w_irs, 'b_irs': b_irs}


# ----------------------------------------------------------------------------
# Pure-JAX reference (lax.scan) for correctness check
# ----------------------------------------------------------------------------
def _lstm_layer_ref(x_tm, w_ih, w_hh, b):
    T, B, _ = x_tm.shape
    H = w_hh.shape[1]

    def step(carry, x_t):
        h, c = carry
        gates = x_t @ w_ih.T + h @ w_hh.T + b
        i = jax.nn.sigmoid(gates[:, :H])
        f = jax.nn.sigmoid(gates[:, H:2 * H])
        g = jnp.tanh(gates[:, 2 * H:3 * H])
        o = jax.nn.sigmoid(gates[:, 3 * H:])
        c = f * c + i * g
        h = o * jnp.tanh(c)
        return (h, c), h

    init = (jnp.zeros((B, H), jnp.float32), jnp.zeros((B, H), jnp.float32))
    _, ys = jax.lax.scan(step, init, x_tm)
    return ys


def reference_forward(x, weights, model_params, params):
    bi = model_params['bi_directional']
    layer_in = jnp.transpose(x, (1, 0, 2))
    for l in range(model_params['n_layers']):
        fwd = _lstm_layer_ref(layer_in, *weights['lstm'][l]['fwd'])
        if bi:
            bwd = _lstm_layer_ref(layer_in[::-1], *weights['lstm'][l]['bwd'])[::-1]
            layer_in = jnp.concatenate([fwd, bwd], axis=-1)
        else:
            layer_in = fwd
    rnn = jnp.transpose(layer_in, (1, 0, 2))
    h_last = layer_in[-1]
    out_bs = h_last @ weights['w_bs'].T + weights['b_bs']
    out_irs = h_last @ weights['w_irs'].T + weights['b_irs']
    frob = jnp.sqrt(jnp.sum(out_bs ** 2, axis=1))
    nbs = out_bs * (params['total_power_constraint'] ** 0.5 / frob)[:, None]
    R = params['num_reflectors']
    first = out_irs[:, :R]
    last = out_irs[:, out_irs.shape[1] - R:]
    factor = jnp.sqrt(first ** 2 + last ** 2)
    nirs = jnp.concatenate([first / factor, last / factor], axis=1)
    return rnn, jnp.concatenate([nbs, nirs], axis=1)


# ----------------------------------------------------------------------------
if __name__ == "__main__":
    model_params = {
        'n_inputs': 8,
        'n_neurons': 32,
        'n_layers': 2,
        'bi_directional': True,
        'n_outputs_BS': 8,
        'n_outputs_IRS': 16,
    }
    params = {
        'total_power_constraint': 10.0,
        'num_reflectors': 8,
    }

    key = jax.random.PRNGKey(0)
    k_w, k_x = jax.random.split(key)
    weights = make_weights(k_w, model_params)

    B, T = 2, 8
    x = jax.random.normal(k_x, (B, T, model_params['n_inputs']), jnp.float32)

    fwd = jax.jit(lambda xx: lstm_model_forward(xx, weights, model_params, params))
    result = fwd(x)
    jax.block_until_ready(result)

    ref_rnn, ref_out = reference_forward(x, weights, model_params, params)
    assert result['out'].shape == (B, model_params['n_outputs_BS']
                                   + 2 * params['num_reflectors'])
    assert bool(jnp.allclose(result['values']['rnn'], ref_rnn,
                             rtol=1e-2, atol=1e-2)), \
        "Pallas recurrence output mismatch vs pure-JAX reference"
    assert bool(jnp.allclose(result['out'], ref_out, rtol=1e-2, atol=1e-2)), \
        "Pallas kernel output mismatch vs pure-JAX reference"

    print("KERNEL_OK")
</pallas_src>

<mosaic_0001>
module attributes {stable_mosaic.version = 11 : i64} {
  func.func @kernel(%arg0: memref<16x8xf32, #tpu.memory_space<vmem>>, %arg1: memref<8x256xf32, #tpu.memory_space<vmem>>, %arg2: memref<1x256xf32, #tpu.memory_space<vmem>>, %arg3: memref<32x128xf32, #tpu.memory_space<vmem>>, %arg4: memref<32x128xf32, #tpu.memory_space<vmem>>, %arg5: memref<64x256xf32, #tpu.memory_space<vmem>>, %arg6: memref<1x256xf32, #tpu.memory_space<vmem>>, %arg7: memref<32x128xf32, #tpu.memory_space<vmem>>, %arg8: memref<32x128xf32, #tpu.memory_space<vmem>>, %arg9: memref<64x8xf32, #tpu.memory_space<vmem>>, %arg10: memref<1x8xf32, #tpu.memory_space<vmem>>, %arg11: memref<64x16xf32, #tpu.memory_space<vmem>>, %arg12: memref<1x16xf32, #tpu.memory_space<vmem>>, %arg13: memref<16x64xf32, #tpu.memory_space<vmem>>, %arg14: memref<2x8xf32, #tpu.memory_space<vmem>>, %arg15: memref<2x16xf32, #tpu.memory_space<vmem>>, %arg16: memref<2x8xf32, #tpu.memory_space<vmem>>, %arg17: memref<2x16xf32, #tpu.memory_space<vmem>>, %arg18: memref<16x256xf32, #tpu.memory_space<vmem>>, %arg19: memref<16x64xf32, #tpu.memory_space<vmem>>) attributes {dimension_semantics = [], scalar_prefetch = 0 : i64, scratch_operands = 2 : i64, tpu.core_type = #tpu.core_type<tc>} {
    %c0 = arith.constant 0 : index
    %c0_0 = arith.constant 0 : index
    %0 = vector.load %arg0[%c0, %c0_0] : memref<16x8xf32, #tpu.memory_space<vmem>>, vector<16x8xf32>
    %c0_1 = arith.constant 0 : index
    %c0_2 = arith.constant 0 : index
    %1 = vector.load %arg1[%c0_1, %c0_2] : memref<8x256xf32, #tpu.memory_space<vmem>>, vector<8x256xf32>
    %cst = arith.constant dense<0.000000e+00> : vector<16x256xf32>
    %2 = tpu.matmul %0, %1, %cst {dimension_numbers = #tpu.dot_dimension_numbers<[1], [0], [0], [1], [0, 0, 1, 1], [], []>} : vector<16x8xf32>, vector<8x256xf32>, vector<16x256xf32> -> vector<16x256xf32>
    %c0_3 = arith.constant 0 : index
    %c0_4 = arith.constant 0 : index
    %3 = vector.load %arg2[%c0_3, %c0_4] : memref<1x256xf32, #tpu.memory_space<vmem>>, vector<1x256xf32>
    %4 = vector.broadcast %3 : vector<1x256xf32> to vector<16x256xf32>
    %5 = arith.addf %2, %4 : vector<16x256xf32>
    %c0_5 = arith.constant 0 : index
    %c0_6 = arith.constant 0 : index
    %6 = vector.load %arg18[%c0_5, %c0_6] : memref<16x256xf32, #tpu.memory_space<vmem>>, vector<16x256xf32>
    tpu.vector_store %arg18[%c0_5, %c0_6], %5 {strides = array<i32>} : memref<16x256xf32, #tpu.memory_space<vmem>>, vector<16x256xf32>,
    %c0_7 = arith.constant 0 : index
    %c0_8 = arith.constant 0 : index
    %7 = vector.load %arg3[%c0_7, %c0_8] : memref<32x128xf32, #tpu.memory_space<vmem>>, vector<32x128xf32>
    %c0_9 = arith.constant 0 : index
    %c0_10 = arith.constant 0 : index
    %8 = vector.load %arg4[%c0_9, %c0_10] : memref<32x128xf32, #tpu.memory_space<vmem>>, vector<32x128xf32>
    %cst_11 = arith.constant 0.000000e+00 : f32
    %9 = vector.broadcast %cst_11 : f32 to vector<2x32xf32>
    %cst_12 = arith.constant 0.000000e+00 : f32
    %10 = vector.broadcast %cst_12 : f32 to vector<2x32xf32>
    %cst_13 = arith.constant 0.000000e+00 : f32
    %11 = vector.broadcast %cst_13 : f32 to vector<2x32xf32>
    %cst_14 = arith.constant 0.000000e+00 : f32
    %12 = vector.broadcast %cst_14 : f32 to vector<2x32xf32>
    %c0_15 = arith.constant 0 : index
    %c0_16 = arith.constant 0 : index
    %13 = vector.load %arg18[%c0_15, %c0_16] : memref<16x256xf32, #tpu.memory_space<vmem>>, vector<2x128xf32>
    %cst_17 = arith.constant dense<0.000000e+00> : vector<2x128xf32>
    %14 = tpu.matmul %9, %7, %cst_17 {dimension_numbers = #tpu.dot_dimension_numbers<[1], [0], [0], [1], [0, 0, 1, 1], [], []>} : vector<2x32xf32>, vector<32x128xf32>, vector<2x128xf32> -> vector<2x128xf32>
    %15 = arith.addf %13, %14 : vector<2x128xf32>
    %16 = vector.extract_strided_slice %15 {offsets = [0, 0], sizes = [2, 32], strides = [1, 1]} : vector<2x128xf32> to vector<2x32xf32>
    %17 = arith.negf %16 : vector<2x32xf32>
    %18 = math.exp %17 : vector<2x32xf32>
    %cst_18 = arith.constant 1.000000e+00 : f32
    %19 = vector.broadcast %cst_18 : f32 to vector<2x32xf32>
    %20 = arith.addf %19, %18 : vector<2x32xf32>
    %21 = arith.divf %19, %20 : vector<2x32xf32>
    %22 = vector.extract_strided_slice %15 {offsets = [0, 32], sizes = [2, 32], strides = [1, 1]} : vector<2x128xf32> to vector<2x32xf32>
    %23 = arith.negf %22 : vector<2x32xf32>
    %24 = math.exp %23 : vector<2x32xf32>
    %cst_19 = arith.constant 1.000000e+00 : f32
    %25 = vector.broadcast %cst_19 : f32 to vector<2x32xf32>
    %26 = arith.addf %25, %24 : vector<2x32xf32>
    %27 = arith.divf %25, %26 : vector<2x32xf32>
    %28 = vector.extract_strided_slice %15 {offsets = [0, 64], sizes = [2, 32], strides = [1, 1]} : vector<2x128xf32> to vector<2x32xf32>
    %29 = math.tanh %28 : vector<2x32xf32>
    %30 = vector.extract_strided_slice %15 {offsets = [0, 96], sizes = [2, 32], strides = [1, 1]} : vector<2x128xf32> to vector<2x32xf32>
    %31 = arith.negf %30 : vector<2x32xf32>
    %32 = math.exp %31 : vector<2x32xf32>
    %cst_20 = arith.constant 1.000000e+00 : f32
    %33 = vector.broadcast %cst_20 : f32 to vector<2x32xf32>
    %34 = arith.addf %33, %32 : vector<2x32xf32>
    %35 = arith.divf %33, %34 : vector<2x32xf32>
    %36 = arith.mulf %27, %11 : vector<2x32xf32>
    %37 = arith.mulf %21, %29 : vector<2x32xf32>
    %38 = arith.addf %36, %37 : vector<2x32xf32>
    %39 = math.tanh %38 : vector<2x32xf32>
    %40 = arith.mulf %35, %39 : vector<2x32xf32>
    %c0_21 = arith.constant 0 : index
    %c0_22 = arith.constant 0 : index
    %41 = vector.load %arg19[%c0_21, %c0_22] : memref<16x64xf32, #tpu.memory_space<vmem>>, vector<2x32xf32>
    tpu.vector_store %arg19[%c0_21, %c0_22], %40 {strides = array<i32>} : memref<16x64xf32, #tpu.memory_space<vmem>>, vector<2x32xf32>,
    %c14 = arith.constant 14 : index
    %c128 = arith.constant 128 : index
    %42 = vector.load %arg18[%c14, %c128] : memref<16x256xf32, #tpu.memory_space<vmem>>, vector<2x128xf32>
    %cst_23 = arith.constant dense<0.000000e+00> : vector<2x128xf32>
    %43 = tpu.matmul %10, %8, %cst_23 {dimension_numbers = #tpu.dot_dimension_numbers<[1], [0], [0], [1], [0, 0, 1, 1], [], []>} : vector<2x32xf32>, vector<32x128xf32>, vector<2x128xf32> -> vector<2x128xf32>
    %44 = arith.addf %42, %43 : vector<2x128xf32>
    %45 = vector.extract_strided_slice %44 {offsets = [0, 0], sizes = [2, 32], strides = [1, 1]} : vector<2x128xf32> to vector<2x32xf32>
    %46 = arith.negf %45 : vector<2x32xf32>
    %47 = math.exp %46 : vector<2x32xf32>
    %cst_24 = arith.constant 1.000000e+00 : f32
    %48 = vector.broadcast %cst_24 : f32 to vector<2x32xf32>
    %49 = arith.addf %48, %47 : vector<2x32xf32>
    %50 = arith.divf %48, %49 : vector<2x32xf32>
    %51 = vector.extract_strided_slice %44 {offsets = [0, 32], sizes = [2, 32], strides = [1, 1]} : vector<2x128xf32> to vector<2x32xf32>
    %52 = arith.negf %51 : vector<2x32xf32>
    %53 = math.exp %52 : vector<2x32xf32>
    %cst_25 = arith.constant 1.000000e+00 : f32
    %54 = vector.broadcast %cst_25 : f32 to vector<2x32xf32>
    %55 = arith.addf %54, %53 : vector<2x32xf32>
    %56 = arith.divf %54, %55 : vector<2x32xf32>
    %57 = vector.extract_strided_slice %44 {offsets = [0, 64], sizes = [2, 32], strides = [1, 1]} : vector<2x128xf32> to vector<2x32xf32>
    %58 = math.tanh %57 : vector<2x32xf32>
    %59 = vector.extract_strided_slice %44 {offsets = [0, 96], sizes = [2, 32], strides = [1, 1]} : vector<2x128xf32> to vector<2x32xf32>
    %60 = arith.negf %59 : vector<2x32xf32>
    %61 = math.exp %60 : vector<2x32xf32>
    %cst_26 = arith.constant 1.000000e+00 : f32
    %62 = vector.broadcast %cst_26 : f32 to vector<2x32xf32>
    %63 = arith.addf %62, %61 : vector<2x32xf32>
    %64 = arith.divf %62, %63 : vector<2x32xf32>
    %65 = arith.mulf %56, %12 : vector<2x32xf32>
    %66 = arith.mulf %50, %58 : vector<2x32xf32>
    %67 = arith.addf %65, %66 : vector<2x32xf32>
    %68 = math.tanh %67 : vector<2x32xf32>
    %69 = arith.mulf %64, %68 : vector<2x32xf32>
    %c14_27 = arith.constant 14 : index
    %c32 = arith.constant 32 : index
    %70 = vector.load %arg19[%c14_27, %c32] : memref<16x64xf32, #tpu.memory_space<vmem>>, vector<2x32xf32>
    tpu.vector_store %arg19[%c14_27, %c32], %69 {strides = array<i32>} : memref<16x64xf32, #tpu.memory_space<vmem>>, vector<2x32xf32>,
    %c2 = arith.constant 2 : index
    %c0_28 = arith.constant 0 : index
    %71 = vector.load %arg18[%c2, %c0_28] : memref<16x256xf32, #tpu.memory_space<vmem>>, vector<2x128xf32>
    %cst_29 = arith.constant dense<0.000000e+00> : vector<2x128xf32>
    %72 = tpu.matmul %40, %7, %cst_29 {dimension_numbers = #tpu.dot_dimension_numbers<[1], [0], [0], [1], [0, 0, 1, 1], [], []>} : vector<2x32xf32>, vector<32x128xf32>, vector<2x128xf32> -> vector<2x128xf32>
    %73 = arith.addf %71, %72 : vector<2x128xf32>
    %74 = vector.extract_strided_slice %73 {offsets = [0, 0], sizes = [2, 32], strides = [1, 1]} : vector<2x128xf32> to vector<2x32xf32>
    %75 = arith.negf %74 : vector<2x32xf32>
    %76 = math.exp %75 : vector<2x32xf32>
    %cst_30 = arith.constant 1.000000e+00 : f32
    %77 = vector.broadcast %cst_30 : f32 to vector<2x32xf32>
    %78 = arith.addf %77, %76 : vector<2x32xf32>
    %79 = arith.divf %77, %78 : vector<2x32xf32>
    %80 = vector.extract_strided_slice %73 {offsets = [0, 32], sizes = [2, 32], strides = [1, 1]} : vector<2x128xf32> to vector<2x32xf32>
    %81 = arith.negf %80 : vector<2x32xf32>
    %82 = math.exp %81 : vector<2x32xf32>
    %cst_31 = arith.constant 1.000000e+00 : f32
    %83 = vector.broadcast %cst_31 : f32 to vector<2x32xf32>
    %84 = arith.addf %83, %82 : vector<2x32xf32>
    %85 = arith.divf %83, %84 : vector<2x32xf32>
    %86 = vector.extract_strided_slice %73 {offsets = [0, 64], sizes = [2, 32], strides = [1, 1]} : vector<2x128xf32> to vector<2x32xf32>
    %87 = math.tanh %86 : vector<2x32xf32>
    %88 = vector.extract_strided_slice %73 {offsets = [0, 96], sizes = [2, 32], strides = [1, 1]} : vector<2x128xf32> to vector<2x32xf32>
    %89 = arith.negf %88 : vector<2x32xf32>
    %90 = math.exp %89 : vector<2x32xf32>
    %cst_32 = arith.constant 1.000000e+00 : f32
    %91 = vector.broadcast %cst_32 : f32 to vector<2x32xf32>
    %92 = arith.addf %91, %90 : vector<2x32xf32>
    %93 = arith.divf %91, %92 : vector<2x32xf32>
    %94 = arith.mulf %85, %38 : vector<2x32xf32>
    %95 = arith.mulf %79, %87 : vector<2x32xf32>
    %96 = arith.addf %94, %95 : vector<2x32xf32>
    %97 = math.tanh %96 : vector<2x32xf32>
    %98 = arith.mulf %93, %97 : vector<2x32xf32>
    %c2_33 = arith.constant 2 : index
    %c0_34 = arith.constant 0 : index
    %99 = vector.load %arg19[%c2_33, %c0_34] : memref<16x64xf32, #tpu.memory_space<vmem>>, vector<2x32xf32>
    tpu.vector_store %arg19[%c2_33, %c0_34], %98 {strides = array<i32>} : memref<16x64xf32, #tpu.memory_space<vmem>>, vector<2x32xf32>,
    %c12 = arith.constant 12 : index
    %c128_35 = arith.constant 128 : index
    %100 = vector.load %arg18[%c12, %c128_35] : memref<16x256xf32, #tpu.memory_space<vmem>>, vector<2x128xf32>
    %cst_36 = arith.constant dense<0.000000e+00> : vector<2x128xf32>
    %101 = tpu.matmul %69, %8, %cst_36 {dimension_numbers = #tpu.dot_dimension_numbers<[1], [0], [0], [1], [0, 0, 1, 1], [], []>} : vector<2x32xf32>, vector<32x128xf32>, vector<2x128xf32> -> vector<2x128xf32>
    %102 = arith.addf %100, %101 : vector<2x128xf32>
    %103 = vector.extract_strided_slice %102 {offsets = [0, 0], sizes = [2, 32], strides = [1, 1]} : vector<2x128xf32> to vector<2x32xf32>
    %104 = arith.negf %103 : vector<2x32xf32>
    %105 = math.exp %104 : vector<2x32xf32>
    %cst_37 = arith.constant 1.000000e+00 : f32
    %106 = vector.broadcast %cst_37 : f32 to vector<2x32xf32>
    %107 = arith.addf %106, %105 : vector<2x32xf32>
    %108 = arith.divf %106, %107 : vector<2x32xf32>
    %109 = vector.extract_strided_slice %102 {offsets = [0, 32], sizes = [2, 32], strides = [1, 1]} : vector<2x128xf32> to vector<2x32xf32>
    %110 = arith.negf %109 : vector<2x32xf32>
    %111 = math.exp %110 : vector<2x32xf32>
    %cst_38 = arith.constant 1.000000e+00 : f32
    %112 = vector.broadcast %cst_38 : f32 to vector<2x32xf32>
    %113 = arith.addf %112, %111 : vector<2x32xf32>
    %114 = arith.divf %112, %113 : vector<2x32xf32>
    %115 = vector.extract_strided_slice %102 {offsets = [0, 64], sizes = [2, 32], strides = [1, 1]} : vector<2x128xf32> to vector<2x32xf32>
    %116 = math.tanh %115 : vector<2x32xf32>
    %117 = vector.extract_strided_slice %102 {offsets = [0, 96], sizes = [2, 32], strides = [1, 1]} : vector<2x128xf32> to vector<2x32xf32>
    %118 = arith.negf %117 : vector<2x32xf32>
    %119 = math.exp %118 : vector<2x32xf32>
    %cst_39 = arith.constant 1.000000e+00 : f32
    %120 = vector.broadcast %cst_39 : f32 to vector<2x32xf32>
    %121 = arith.addf %120, %119 : vector<2x32xf32>
    %122 = arith.divf %120, %121 : vector<2x32xf32>
    %123 = arith.mulf %114, %67 : vector<2x32xf32>
    %124 = arith.mulf %108, %116 : vector<2x32xf32>
    %125 = arith.addf %123, %124 : vector<2x32xf32>
    %126 = math.tanh %125 : vector<2x32xf32>
    %127 = arith.mulf %122, %126 : vector<2x32xf32>
    %c12_40 = arith.constant 12 : index
    %c32_41 = arith.constant 32 : index
    %128 = vector.load %arg19[%c12_40, %c32_41] : memref<16x64xf32, #tpu.memory_space<vmem>>, vector<2x32xf32>
    tpu.vector_store %arg19[%c12_40, %c32_41], %127 {strides = array<i32>} : memref<16x64xf32, #tpu.memory_space<vmem>>, vector<2x32xf32>,
    %c4 = arith.constant 4 : index
    %c0_42 = arith.constant 0 : index
    %129 = vector.load %arg18[%c4, %c0_42] : memref<16x256xf32, #tpu.memory_space<vmem>>, vector<2x128xf32>
    %cst_43 = arith.constant dense<0.000000e+00> : vector<2x128xf32>
    %130 = tpu.matmul %98, %7, %cst_43 {dimension_numbers = #tpu.dot_dimension_numbers<[1], [0], [0], [1], [0, 0, 1, 1], [], []>} : vector<2x32xf32>, vector<32x128xf32>, vector<2x128xf32> -> vector<2x128xf32>
    %131 = arith.addf %129, %130 : vector<2x128xf32>
    %132 = vector.extract_strided_slice %131 {offsets = [0, 0], sizes = [2, 32], strides = [1, 1]} : vector<2x128xf32> to vector<2x32xf32>
    %133 = arith.negf %132 : vector<2x32xf32>
    %134 = math.exp %133 : vector<2x32xf32>
    %cst_44 = arith.constant 1.000000e+00 : f32
    %135 = vector.broadcast %cst_44 : f32 to vector<2x32xf32>
    %136 = arith.addf %135, %134 : vector<2x32xf32>
    %137 = arith.divf %135, %136 : vector<2x32xf32>
    %138 = vector.extract_strided_slice %131 {offsets = [0, 32], sizes = [2, 32], strides = [1, 1]} : vector<2x128xf32> to vector<2x32xf32>
    %139 = arith.negf %138 : vector<2x32xf32>
    %140 = math.exp %139 : vector<2x32xf32>
    %cst_45 = arith.constant 1.000000e+00 : f32
    %141 = vector.broadcast %cst_45 : f32 to vector<2x32xf32>
    %142 = arith.addf %141, %140 : vector<2x32xf32>
    %143 = arith.divf %141, %142 : vector<2x32xf32>
    %144 = vector.extract_strided_slice %131 {offsets = [0, 64], sizes = [2, 32], strides = [1, 1]} : vector<2x128xf32> to vector<2x32xf32>
    %145 = math.tanh %144 : vector<2x32xf32>
    %146 = vector.extract_strided_slice %131 {offsets = [0, 96], sizes = [2, 32], strides = [1, 1]} : vector<2x128xf32> to vector<2x32xf32>
    %147 = arith.negf %146 : vector<2x32xf32>
    %148 = math.exp %147 : vector<2x32xf32>
    %cst_46 = arith.constant 1.000000e+00 : f32
    %149 = vector.broadcast %cst_46 : f32 to vector<2x32xf32>
    %150 = arith.addf %149, %148 : vector<2x32xf32>
    %151 = arith.divf %149, %150 : vector<2x32xf32>
    %152 = arith.mulf %143, %96 : vector<2x32xf32>
    %153 = arith.mulf %137, %145 : vector<2x32xf32>
    %154 = arith.addf %152, %153 : vector<2x32xf32>
    %155 = math.tanh %154 : vector<2x32xf32>
    %156 = arith.mulf %151, %155 : vector<2x32xf32>
    %c4_47 = arith.constant 4 : index
    %c0_48 = arith.constant 0 : index
    %157 = vector.load %arg19[%c4_47, %c0_48] : memref<16x64xf32, #tpu.memory_space<vmem>>, vector<2x32xf32>
    tpu.vector_store %arg19[%c4_47, %c0_48], %156 {strides = array<i32>} : memref<16x64xf32, #tpu.memory_space<vmem>>, vector<2x32xf32>,
    %c10 = arith.constant 10 : index
    %c128_49 = arith.constant 128 : index
    %158 = vector.load %arg18[%c10, %c128_49] : memref<16x256xf32, #tpu.memory_space<vmem>>, vector<2x128xf32>
    %cst_50 = arith.constant dense<0.000000e+00> : vector<2x128xf32>
    %159 = tpu.matmul %127, %8, %cst_50 {dimension_numbers = #tpu.dot_dimension_numbers<[1], [0], [0], [1], [0, 0, 1, 1], [], []>} : vector<2x32xf32>, vector<32x128xf32>, vector<2x128xf32> -> vector<2x128xf32>
    %160 = arith.addf %158, %159 : vector<2x128xf32>
    %161 = vector.extract_strided_slice %160 {offsets = [0, 0], sizes = [2, 32], strides = [1, 1]} : vector<2x128xf32> to vector<2x32xf32>
    %162 = arith.negf %161 : vector<2x32xf32>
    %163 = math.exp %162 : vector<2x32xf32>
    %cst_51 = arith.constant 1.000000e+00 : f32
    %164 = vector.broadcast %cst_51 : f32 to vector<2x32xf32>
    %165 = arith.addf %164, %163 : vector<2x32xf32>
    %166 = arith.divf %164, %165 : vector<2x32xf32>
    %167 = vector.extract_strided_slice %160 {offsets = [0, 32], sizes = [2, 32], strides = [1, 1]} : vector<2x128xf32> to vector<2x32xf32>
    %168 = arith.negf %167 : vector<2x32xf32>
    %169 = math.exp %168 : vector<2x32xf32>
    %cst_52 = arith.constant 1.000000e+00 : f32
    %170 = vector.broadcast %cst_52 : f32 to vector<2x32xf32>
    %171 = arith.addf %170, %169 : vector<2x32xf32>
    %172 = arith.divf %170, %171 : vector<2x32xf32>
    %173 = vector.extract_strided_slice %160 {offsets = [0, 64], sizes = [2, 32], strides = [1, 1]} : vector<2x128xf32> to vector<2x32xf32>
    %174 = math.tanh %173 : vector<2x32xf32>
    %175 = vector.extract_strided_slice %160 {offsets = [0, 96], sizes = [2, 32], strides = [1, 1]} : vector<2x128xf32> to vector<2x32xf32>
    %176 = arith.negf %175 : vector<2x32xf32>
    %177 = math.exp %176 : vector<2x32xf32>
    %cst_53 = arith.constant 1.000000e+00 : f32
    %178 = vector.broadcast %cst_53 : f32 to vector<2x32xf32>
    %179 = arith.addf %178, %177 : vector<2x32xf32>
    %180 = arith.divf %178, %179 : vector<2x32xf32>
    %181 = arith.mulf %172, %125 : vector<2x32xf32>
    %182 = arith.mulf %166, %174 : vector<2x32xf32>
    %183 = arith.addf %181, %182 : vector<2x32xf32>
    %184 = math.tanh %183 : vector<2x32xf32>
    %185 = arith.mulf %180, %184 : vector<2x32xf32>
    %c10_54 = arith.constant 10 : index
    %c32_55 = arith.constant 32 : index
    %186 = vector.load %arg19[%c10_54, %c32_55] : memref<16x64xf32, #tpu.memory_space<vmem>>, vector<2x32xf32>
    tpu.vector_store %arg19[%c10_54, %c32_55], %185 {strides = array<i32>} : memref<16x64xf32, #tpu.memory_space<vmem>>, vector<2x32xf32>,
    %c6 = arith.constant 6 : index
    %c0_56 = arith.constant 0 : index
    %187 = vector.load %arg18[%c6, %c0_56] : memref<16x256xf32, #tpu.memory_space<vmem>>, vector<2x128xf32>
    %cst_57 = arith.constant dense<0.000000e+00> : vector<2x128xf32>
    %188 = tpu.matmul %156, %7, %cst_57 {dimension_numbers = #tpu.dot_dimension_numbers<[1], [0], [0], [1], [0, 0, 1, 1], [], []>} : vector<2x32xf32>, vector<32x128xf32>, vector<2x128xf32> -> vector<2x128xf32>
    %189 = arith.addf %187, %188 : vector<2x128xf32>
    %190 = vector.extract_strided_slice %189 {offsets = [0, 0], sizes = [2, 32], strides = [1, 1]} : vector<2x128xf32> to vector<2x32xf32>
    %191 = arith.negf %190 : vector<2x32xf32>
    %192 = math.exp %191 : vector<2x32xf32>
    %cst_58 = arith.constant 1.000000e+00 : f32
    %193 = vector.broadcast %cst_58 : f32 to vector<2x32xf32>
    %194 = arith.addf %193, %192 : vector<2x32xf32>
    %195 = arith.divf %193, %194 : vector<2x32xf32>
    %196 = vector.extract_strided_slice %189 {offsets = [0, 32], sizes = [2, 32], strides = [1, 1]} : vector<2x128xf32> to vector<2x32xf32>
    %197 = arith.negf %196 : vector<2x32xf32>
    %198 = math.exp %197 : vector<2x32xf32>
    %cst_59 = arith.constant 1.000000e+00 : f32
    %199 = vector.broadcast %cst_59 : f32 to vector<2x32xf32>
    %200 = arith.addf %199, %198 : vector<2x32xf32>
    %201 = arith.divf %199, %200 : vector<2x32xf32>
    %202 = vector.extract_strided_slice %189 {offsets = [0, 64], sizes = [2, 32], strides = [1, 1]} : vector<2x128xf32> to vector<2x32xf32>
    %203 = math.tanh %202 : vector<2x32xf32>
    %204 = vector.extract_strided_slice %189 {offsets = [0, 96], sizes = [2, 32], strides = [1, 1]} : vector<2x128xf32> to vector<2x32xf32>
    %205 = arith.negf %204 : vector<2x32xf32>
    %206 = math.exp %205 : vector<2x32xf32>
    %cst_60 = arith.constant 1.000000e+00 : f32
    %207 = vector.broadcast %cst_60 : f32 to vector<2x32xf32>
    %208 = arith.addf %207, %206 : vector<2x32xf32>
    %209 = arith.divf %207, %208 : vector<2x32xf32>
    %210 = arith.mulf %201, %154 : vector<2x32xf32>
    %211 = arith.mulf %195, %203 : vector<2x32xf32>
    %212 = arith.addf %210, %211 : vector<2x32xf32>
    %213 = math.tanh %212 : vector<2x32xf32>
    %214 = arith.mulf %209, %213 : vector<2x32xf32>
    %c6_61 = arith.constant 6 : index
    %c0_62 = arith.constant 0 : index
    %215 = vector.load %arg19[%c6_61, %c0_62] : memref<16x64xf32, #tpu.memory_space<vmem>>, vector<2x32xf32>
    tpu.vector_store %arg19[%c6_61, %c0_62], %214 {strides = array<i32>} : memref<16x64xf32, #tpu.memory_space<vmem>>, vector<2x32xf32>,
    %c8 = arith.constant 8 : index
    %c128_63 = arith.constant 128 : index
    %216 = vector.load %arg18[%c8, %c128_63] : memref<16x256xf32, #tpu.memory_space<vmem>>, vector<2x128xf32>
    %cst_64 = arith.constant dense<0.000000e+00> : vector<2x128xf32>
    %217 = tpu.matmul %185, %8, %cst_64 {dimension_numbers = #tpu.dot_dimension_numbers<[1], [0], [0], [1], [0, 0, 1, 1], [], []>} : vector<2x32xf32>, vector<32x128xf32>, vector<2x128xf32> -> vector<2x128xf32>
    %218 = arith.addf %216, %217 : vector<2x128xf32>
    %219 = vector.extract_strided_slice %218 {offsets = [0, 0], sizes = [2, 32], strides = [1, 1]} : vector<2x128xf32> to vector<2x32xf32>
    %220 = arith.negf %219 : vector<2x32xf32>
    %221 = math.exp %220 : vector<2x32xf32>
    %cst_65 = arith.constant 1.000000e+00 : f32
    %222 = vector.broadcast %cst_65 : f32 to vector<2x32xf32>
    %223 = arith.addf %222, %221 : vector<2x32xf32>
    %224 = arith.divf %222, %223 : vector<2x32xf32>
    %225 = vector.extract_strided_slice %218 {offsets = [0, 32], sizes = [2, 32], strides = [1, 1]} : vector<2x128xf32> to vector<2x32xf32>
    %226 = arith.negf %225 : vector<2x32xf32>
    %227 = math.exp %226 : vector<2x32xf32>
    %cst_66 = arith.constant 1.000000e+00 : f32
    %228 = vector.broadcast %cst_66 : f32 to vector<2x32xf32>
    %229 = arith.addf %228, %227 : vector<2x32xf32>
    %230 = arith.divf %228, %229 : vector<2x32xf32>
    %231 = vector.extract_strided_slice %218 {offsets = [0, 64], sizes = [2, 32], strides = [1, 1]} : vector<2x128xf32> to vector<2x32xf32>
    %232 = math.tanh %231 : vector<2x32xf32>
    %233 = vector.extract_strided_slice %218 {offsets = [0, 96], sizes = [2, 32], strides = [1, 1]} : vector<2x128xf32> to vector<2x32xf32>
    %234 = arith.negf %233 : vector<2x32xf32>
    %235 = math.exp %234 : vector<2x32xf32>
    %cst_67 = arith.constant 1.000000e+00 : f32
    %236 = vector.broadcast %cst_67 : f32 to vector<2x32xf32>
    %237 = arith.addf %236, %235 : vector<2x32xf32>
    %238 = arith.divf %236, %237 : vector<2x32xf32>
    %239 = arith.mulf %230, %183 : vector<2x32xf32>
    %240 = arith.mulf %224, %232 : vector<2x32xf32>
    %241 = arith.addf %239, %240 : vector<2x32xf32>
    %242 = math.tanh %241 : vector<2x32xf32>
    %243 = arith.mulf %238, %242 : vector<2x32xf32>
    %c8_68 = arith.constant 8 : index
    %c32_69 = arith.constant 32 : index
    %244 = vector.load %arg19[%c8_68, %c32_69] : memref<16x64xf32, #tpu.memory_space<vmem>>, vector<2x32xf32>
    tpu.vector_store %arg19[%c8_68, %c32_69], %243 {strides = array<i32>} : memref<16x64xf32, #tpu.memory_space<vmem>>, vector<2x32xf32>,
    %c8_70 = arith.constant 8 : index
    %c0_71 = arith.constant 0 : index
    %245 = vector.load %arg18[%c8_70, %c0_71] : memref<16x256xf32, #tpu.memory_space<vmem>>, vector<2x128xf32>
    %cst_72 = arith.constant dense<0.000000e+00> : vector<2x128xf32>
    %246 = tpu.matmul %214, %7, %cst_72 {dimension_numbers = #tpu.dot_dimension_numbers<[1], [0], [0], [1], [0, 0, 1, 1], [], []>} : vector<2x32xf32>, vector<32x128xf32>, vector<2x128xf32> -> vector<2x128xf32>
    %247 = arith.addf %245, %246 : vector<2x128xf32>
    %248 = vector.extract_strided_slice %247 {offsets = [0, 0], sizes = [2, 32], strides = [1, 1]} : vector<2x128xf32> to vector<2x32xf32>
    %249 = arith.negf %248 : vector<2x32xf32>
    %250 = math.exp %249 : vector<2x32xf32>
    %cst_73 = arith.constant 1.000000e+00 : f32
    %251 = vector.broadcast %cst_73 : f32 to vector<2x32xf32>
    %252 = arith.addf %251, %250 : vector<2x32xf32>
    %253 = arith.divf %251, %252 : vector<2x32xf32>
    %254 = vector.extract_strided_slice %247 {offsets = [0, 32], sizes = [2, 32], strides = [1, 1]} : vector<2x128xf32> to vector<2x32xf32>
    %255 = arith.negf %254 : vector<2x32xf32>
    %256 = math.exp %255 : vector<2x32xf32>
    %cst_74 = arith.constant 1.000000e+00 : f32
    %257 = vector.broadcast %cst_74 : f32 to vector<2x32xf32>
    %258 = arith.addf %257, %256 : vector<2x32xf32>
    %259 = arith.divf %257, %258 : vector<2x32xf32>
    %260 = vector.extract_strided_slice %247 {offsets = [0, 64], sizes = [2, 32], strides = [1, 1]} : vector<2x128xf32> to vector<2x32xf32>
    %261 = math.tanh %260 : vector<2x32xf32>
    %262 = vector.extract_strided_slice %247 {offsets = [0, 96], sizes = [2, 32], strides = [1, 1]} : vector<2x128xf32> to vector<2x32xf32>
    %263 = arith.negf %262 : vector<2x32xf32>
    %264 = math.exp %263 : vector<2x32xf32>
    %cst_75 = arith.constant 1.000000e+00 : f32
    %265 = vector.broadcast %cst_75 : f32 to vector<2x32xf32>
    %266 = arith.addf %265, %264 : vector<2x32xf32>
    %267 = arith.divf %265, %266 : vector<2x32xf32>
    %268 = arith.mulf %259, %212 : vector<2x32xf32>
    %269 = arith.mulf %253, %261 : vector<2x32xf32>
    %270 = arith.addf %268, %269 : vector<2x32xf32>
    %271 = math.tanh %270 : vector<2x32xf32>
    %272 = arith.mulf %267, %271 : vector<2x32xf32>
    %c8_76 = arith.constant 8 : index
    %c0_77 = arith.constant 0 : index
    %273 = vector.load %arg19[%c8_76, %c0_77] : memref<16x64xf32, #tpu.memory_space<vmem>>, vector<2x32xf32>
    tpu.vector_store %arg19[%c8_76, %c0_77], %272 {strides = array<i32>} : memref<16x64xf32, #tpu.memory_space<vmem>>, vector<2x32xf32>,
    %c6_78 = arith.constant 6 : index
    %c128_79 = arith.constant 128 : index
    %274 = vector.load %arg18[%c6_78, %c128_79] : memref<16x256xf32, #tpu.memory_space<vmem>>, vector<2x128xf32>
    %cst_80 = arith.constant dense<0.000000e+00> : vector<2x128xf32>
    %275 = tpu.matmul %243, %8, %cst_80 {dimension_numbers = #tpu.dot_dimension_numbers<[1], [0], [0], [1], [0, 0, 1, 1], [], []>} : vector<2x32xf32>, vector<32x128xf32>, vector<2x128xf32> -> vector<2x128xf32>
    %276 = arith.addf %274, %275 : vector<2x128xf32>
    %277 = vector.extract_strided_slice %276 {offsets = [0, 0], sizes = [2, 32], strides = [1, 1]} : vector<2x128xf32> to vector<2x32xf32>
    %278 = arith.negf %277 : vector<2x32xf32>
    %279 = math.exp %278 : vector<2x32xf32>
    %cst_81 = arith.constant 1.000000e+00 : f32
    %280 = vector.broadcast %cst_81 : f32 to vector<2x32xf32>
    %281 = arith.addf %280, %279 : vector<2x32xf32>
    %282 = arith.divf %280, %281 : vector<2x32xf32>
    %283 = vector.extract_strided_slice %276 {offsets = [0, 32], sizes = [2, 32], strides = [1, 1]} : vector<2x128xf32> to vector<2x32xf32>
    %284 = arith.negf %283 : vector<2x32xf32>
    %285 = math.exp %284 : vector<2x32xf32>
    %cst_82 = arith.constant 1.000000e+00 : f32
    %286 = vector.broadcast %cst_82 : f32 to vector<2x32xf32>
    %287 = arith.addf %286, %285 : vector<2x32xf32>
    %288 = arith.divf %286, %287 : vector<2x32xf32>
    %289 = vector.extract_strided_slice %276 {offsets = [0, 64], sizes = [2, 32], strides = [1, 1]} : vector<2x128xf32> to vector<2x32xf32>
    %290 = math.tanh %289 : vector<2x32xf32>
    %291 = vector.extract_strided_slice %276 {offsets = [0, 96], sizes = [2, 32], strides = [1, 1]} : vector<2x128xf32> to vector<2x32xf32>
    %292 = arith.negf %291 : vector<2x32xf32>
    %293 = math.exp %292 : vector<2x32xf32>
    %cst_83 = arith.constant 1.000000e+00 : f32
    %294 = vector.broadcast %cst_83 : f32 to vector<2x32xf32>
    %295 = arith.addf %294, %293 : vector<2x32xf32>
    %296 = arith.divf %294, %295 : vector<2x32xf32>
    %297 = arith.mulf %288, %241 : vector<2x32xf32>
    %298 = arith.mulf %282, %290 : vector<2x32xf32>
    %299 = arith.addf %297, %298 : vector<2x32xf32>
    %300 = math.tanh %299 : vector<2x32xf32>
    %301 = arith.mulf %296, %300 : vector<2x32xf32>
    %c6_84 = arith.constant 6 : index
    %c32_85 = arith.constant 32 : index
    %302 = vector.load %arg19[%c6_84, %c32_85] : memref<16x64xf32, #tpu.memory_space<vmem>>, vector<2x32xf32>
    tpu.vector_store %arg19[%c6_84, %c32_85], %301 {strides = array<i32>} : memref<16x64xf32, #tpu.memory_space<vmem>>, vector<2x32xf32>,
    %c10_86 = arith.constant 10 : index
    %c0_87 = arith.constant 0 : index
    %303 = vector.load %arg18[%c10_86, %c0_87] : memref<16x256xf32, #tpu.memory_space<vmem>>, vector<2x128xf32>
    %cst_88 = arith.constant dense<0.000000e+00> : vector<2x128xf32>
    %304 = tpu.matmul %272, %7, %cst_88 {dimension_numbers = #tpu.dot_dimension_numbers<[1], [0], [0], [1], [0, 0, 1, 1], [], []>} : vector<2x32xf32>, vector<32x128xf32>, vector<2x128xf32> -> vector<2x128xf32>
    %305 = arith.addf %303, %304 : vector<2x128xf32>
    %306 = vector.extract_strided_slice %305 {offsets = [0, 0], sizes = [2, 32], strides = [1, 1]} : vector<2x128xf32> to vector<2x32xf32>
    %307 = arith.negf %306 : vector<2x32xf32>
    %308 = math.exp %307 : vector<2x32xf32>
    %cst_89 = arith.constant 1.000000e+00 : f32
    %309 = vector.broadcast %cst_89 : f32 to vector<2x32xf32>
    %310 = arith.addf %309, %308 : vector<2x32xf32>
    %311 = arith.divf %309, %310 : vector<2x32xf32>
    %312 = vector.extract_strided_slice %305 {offsets = [0, 32], sizes = [2, 32], strides = [1, 1]} : vector<2x128xf32> to vector<2x32xf32>
    %313 = arith.negf %312 : vector<2x32xf32>
    %314 = math.exp %313 : vector<2x32xf32>
    %cst_90 = arith.constant 1.000000e+00 : f32
    %315 = vector.broadcast %cst_90 : f32 to vector<2x32xf32>
    %316 = arith.addf %315, %314 : vector<2x32xf32>
    %317 = arith.divf %315, %316 : vector<2x32xf32>
    %318 = vector.extract_strided_slice %305 {offsets = [0, 64], sizes = [2, 32], strides = [1, 1]} : vector<2x128xf32> to vector<2x32xf32>
    %319 = math.tanh %318 : vector<2x32xf32>
    %320 = vector.extract_strided_slice %305 {offsets = [0, 96], sizes = [2, 32], strides = [1, 1]} : vector<2x128xf32> to vector<2x32xf32>
    %321 = arith.negf %320 : vector<2x32xf32>
    %322 = math.exp %321 : vector<2x32xf32>
    %cst_91 = arith.constant 1.000000e+00 : f32
    %323 = vector.broadcast %cst_91 : f32 to vector<2x32xf32>
    %324 = arith.addf %323, %322 : vector<2x32xf32>
    %325 = arith.divf %323, %324 : vector<2x32xf32>
    %326 = arith.mulf %317, %270 : vector<2x32xf32>
    %327 = arith.mulf %311, %319 : vector<2x32xf32>
    %328 = arith.addf %326, %327 : vector<2x32xf32>
    %329 = math.tanh %328 : vector<2x32xf32>
    %330 = arith.mulf %325, %329 : vector<2x32xf32>
    %c10_92 = arith.constant 10 : index
    %c0_93 = arith.constant 0 : index
    %331 = vector.load %arg19[%c10_92, %c0_93] : memref<16x64xf32, #tpu.memory_space<vmem>>, vector<2x32xf32>
    tpu.vector_store %arg19[%c10_92, %c0_93], %330 {strides = array<i32>} : memref<16x64xf32, #tpu.memory_space<vmem>>, vector<2x32xf32>,
    %c4_94 = arith.constant 4 : index
    %c128_95 = arith.constant 128 : index
    %332 = vector.load %arg18[%c4_94, %c128_95] : memref<16x256xf32, #tpu.memory_space<vmem>>, vector<2x128xf32>
    %cst_96 = arith.constant dense<0.000000e+00> : vector<2x128xf32>
    %333 = tpu.matmul %301, %8, %cst_96 {dimension_numbers = #tpu.dot_dimension_numbers<[1], [0], [0], [1], [0, 0, 1, 1], [], []>} : vector<2x32xf32>, vector<32x128xf32>, vector<2x128xf32> -> vector<2x128xf32>
    %334 = arith.addf %332, %333 : vector<2x128xf32>
    %335 = vector.extract_strided_slice %334 {offsets = [0, 0], sizes = [2, 32], strides = [1, 1]} : vector<2x128xf32> to vector<2x32xf32>
    %336 = arith.negf %335 : vector<2x32xf32>
    %337 = math.exp %336 : vector<2x32xf32>
    %cst_97 = arith.constant 1.000000e+00 : f32
    %338 = vector.broadcast %cst_97 : f32 to vector<2x32xf32>
    %339 = arith.addf %338, %337 : vector<2x32xf32>
    %340 = arith.divf %338, %339 : vector<2x32xf32>
    %341 = vector.extract_strided_slice %334 {offsets = [0, 32], sizes = [2, 32], strides = [1, 1]} : vector<2x128xf32> to vector<2x32xf32>
    %342 = arith.negf %341 : vector<2x32xf32>
    %343 = math.exp %342 : vector<2x32xf32>
    %cst_98 = arith.constant 1.000000e+00 : f32
    %344 = vector.broadcast %cst_98 : f32 to vector<2x32xf32>
    %345 = arith.addf %344, %343 : vector<2x32xf32>
    %346 = arith.divf %344, %345 : vector<2x32xf32>
    %347 = vector.extract_strided_slice %334 {offsets = [0, 64], sizes = [2, 32], strides = [1, 1]} : vector<2x128xf32> to vector<2x32xf32>
    %348 = math.tanh %347 : vector<2x32xf32>
    %349 = vector.extract_strided_slice %334 {offsets = [0, 96], sizes = [2, 32], strides = [1, 1]} : vector<2x128xf32> to vector<2x32xf32>
    %350 = arith.negf %349 : vector<2x32xf32>
    %351 = math.exp %350 : vector<2x32xf32>
    %cst_99 = arith.constant 1.000000e+00 : f32
    %352 = vector.broadcast %cst_99 : f32 to vector<2x32xf32>
    %353 = arith.addf %352, %351 : vector<2x32xf32>
    %354 = arith.divf %352, %353 : vector<2x32xf32>
    %355 = arith.mulf %346, %299 : vector<2x32xf32>
    %356 = arith.mulf %340, %348 : vector<2x32xf32>
    %357 = arith.addf %355, %356 : vector<2x32xf32>
    %358 = math.tanh %357 : vector<2x32xf32>
    %359 = arith.mulf %354, %358 : vector<2x32xf32>
    %c4_100 = arith.constant 4 : index
    %c32_101 = arith.constant 32 : index
    %360 = vector.load %arg19[%c4_100, %c32_101] : memref<16x64xf32, #tpu.memory_space<vmem>>, vector<2x32xf32>
    tpu.vector_store %arg19[%c4_100, %c32_101], %359 {strides = array<i32>} : memref<16x64xf32, #tpu.memory_space<vmem>>, vector<2x32xf32>,
    %c12_102 = arith.constant 12 : index
    %c0_103 = arith.constant 0 : index
    %361 = vector.load %arg18[%c12_102, %c0_103] : memref<16x256xf32, #tpu.memory_space<vmem>>, vector<2x128xf32>
    %cst_104 = arith.constant dense<0.000000e+00> : vector<2x128xf32>
    %362 = tpu.matmul %330, %7, %cst_104 {dimension_numbers = #tpu.dot_dimension_numbers<[1], [0], [0], [1], [0, 0, 1, 1], [], []>} : vector<2x32xf32>, vector<32x128xf32>, vector<2x128xf32> -> vector<2x128xf32>
    %363 = arith.addf %361, %362 : vector<2x128xf32>
    %364 = vector.extract_strided_slice %363 {offsets = [0, 0], sizes = [2, 32], strides = [1, 1]} : vector<2x128xf32> to vector<2x32xf32>
    %365 = arith.negf %364 : vector<2x32xf32>
    %366 = math.exp %365 : vector<2x32xf32>
    %cst_105 = arith.constant 1.000000e+00 : f32
    %367 = vector.broadcast %cst_105 : f32 to vector<2x32xf32>
    %368 = arith.addf %367, %366 : vector<2x32xf32>
    %369 = arith.divf %367, %368 : vector<2x32xf32>
    %370 = vector.extract_strided_slice %363 {offsets = [0, 32], sizes = [2, 32], strides = [1, 1]} : vector<2x128xf32> to vector<2x32xf32>
    %371 = arith.negf %370 : vector<2x32xf32>
    %372 = math.exp %371 : vector<2x32xf32>
    %cst_106 = arith.constant 1.000000e+00 : f32
    %373 = vector.broadcast %cst_106 : f32 to vector<2x32xf32>
    %374 = arith.addf %373, %372 : vector<2x32xf32>
    %375 = arith.divf %373, %374 : vector<2x32xf32>
    %376 = vector.extract_strided_slice %363 {offsets = [0, 64], sizes = [2, 32], strides = [1, 1]} : vector<2x128xf32> to vector<2x32xf32>
    %377 = math.tanh %376 : vector<2x32xf32>
    %378 = vector.extract_strided_slice %363 {offsets = [0, 96], sizes = [2, 32], strides = [1, 1]} : vector<2x128xf32> to vector<2x32xf32>
    %379 = arith.negf %378 : vector<2x32xf32>
    %380 = math.exp %379 : vector<2x32xf32>
    %cst_107 = arith.constant 1.000000e+00 : f32
    %381 = vector.broadcast %cst_107 : f32 to vector<2x32xf32>
    %382 = arith.addf %381, %380 : vector<2x32xf32>
    %383 = arith.divf %381, %382 : vector<2x32xf32>
    %384 = arith.mulf %375, %328 : vector<2x32xf32>
    %385 = arith.mulf %369, %377 : vector<2x32xf32>
    %386 = arith.addf %384, %385 : vector<2x32xf32>
    %387 = math.tanh %386 : vector<2x32xf32>
    %388 = arith.mulf %383, %387 : vector<2x32xf32>
    %c12_108 = arith.constant 12 : index
    %c0_109 = arith.constant 0 : index
    %389 = vector.load %arg19[%c12_108, %c0_109] : memref<16x64xf32, #tpu.memory_space<vmem>>, vector<2x32xf32>
    tpu.vector_store %arg19[%c12_108, %c0_109], %388 {strides = array<i32>} : memref<16x64xf32, #tpu.memory_space<vmem>>, vector<2x32xf32>,
    %c2_110 = arith.constant 2 : index
    %c128_111 = arith.constant 128 : index
    %390 = vector.load %arg18[%c2_110, %c128_111] : memref<16x256xf32, #tpu.memory_space<vmem>>, vector<2x128xf32>
    %cst_112 = arith.constant dense<0.000000e+00> : vector<2x128xf32>
    %391 = tpu.matmul %359, %8, %cst_112 {dimension_numbers = #tpu.dot_dimension_numbers<[1], [0], [0], [1], [0, 0, 1, 1], [], []>} : vector<2x32xf32>, vector<32x128xf32>, vector<2x128xf32> -> vector<2x128xf32>
    %392 = arith.addf %390, %391 : vector<2x128xf32>
    %393 = vector.extract_strided_slice %392 {offsets = [0, 0], sizes = [2, 32], strides = [1, 1]} : vector<2x128xf32> to vector<2x32xf32>
    %394 = arith.negf %393 : vector<2x32xf32>
    %395 = math.exp %394 : vector<2x32xf32>
    %cst_113 = arith.constant 1.000000e+00 : f32
    %396 = vector.broadcast %cst_113 : f32 to vector<2x32xf32>
    %397 = arith.addf %396, %395 : vector<2x32xf32>
    %398 = arith.divf %396, %397 : vector<2x32xf32>
    %399 = vector.extract_strided_slice %392 {offsets = [0, 32], sizes = [2, 32], strides = [1, 1]} : vector<2x128xf32> to vector<2x32xf32>
    %400 = arith.negf %399 : vector<2x32xf32>
    %401 = math.exp %400 : vector<2x32xf32>
    %cst_114 = arith.constant 1.000000e+00 : f32
    %402 = vector.broadcast %cst_114 : f32 to vector<2x32xf32>
    %403 = arith.addf %402, %401 : vector<2x32xf32>
    %404 = arith.divf %402, %403 : vector<2x32xf32>
    %405 = vector.extract_strided_slice %392 {offsets = [0, 64], sizes = [2, 32], strides = [1, 1]} : vector<2x128xf32> to vector<2x32xf32>
    %406 = math.tanh %405 : vector<2x32xf32>
    %407 = vector.extract_strided_slice %392 {offsets = [0, 96], sizes = [2, 32], strides = [1, 1]} : vector<2x128xf32> to vector<2x32xf32>
    %408 = arith.negf %407 : vector<2x32xf32>
    %409 = math.exp %408 : vector<2x32xf32>
    %cst_115 = arith.constant 1.000000e+00 : f32
    %410 = vector.broadcast %cst_115 : f32 to vector<2x32xf32>
    %411 = arith.addf %410, %409 : vector<2x32xf32>
    %412 = arith.divf %410, %411 : vector<2x32xf32>
    %413 = arith.mulf %404, %357 : vector<2x32xf32>
    %414 = arith.mulf %398, %406 : vector<2x32xf32>
    %415 = arith.addf %413, %414 : vector<2x32xf32>
    %416 = math.tanh %415 : vector<2x32xf32>
    %417 = arith.mulf %412, %416 : vector<2x32xf32>
    %c2_116 = arith.constant 2 : index
    %c32_117 = arith.constant 32 : index
    %418 = vector.load %arg19[%c2_116, %c32_117] : memref<16x64xf32, #tpu.memory_space<vmem>>, vector<2x32xf32>
    tpu.vector_store %arg19[%c2_116, %c32_117], %417 {strides = array<i32>} : memref<16x64xf32, #tpu.memory_space<vmem>>, vector<2x32xf32>,
    %c14_118 = arith.constant 14 : index
    %c0_119 = arith.constant 0 : index
    %419 = vector.load %arg18[%c14_118, %c0_119] : memref<16x256xf32, #tpu.memory_space<vmem>>, vector<2x128xf32>
    %cst_120 = arith.constant dense<0.000000e+00> : vector<2x128xf32>
    %420 = tpu.matmul %388, %7, %cst_120 {dimension_numbers = #tpu.dot_dimension_numbers<[1], [0], [0], [1], [0, 0, 1, 1], [], []>} : vector<2x32xf32>, vector<32x128xf32>, vector<2x128xf32> -> vector<2x128xf32>
    %421 = arith.addf %419, %420 : vector<2x128xf32>
    %422 = vector.extract_strided_slice %421 {offsets = [0, 0], sizes = [2, 32], strides = [1, 1]} : vector<2x128xf32> to vector<2x32xf32>
    %423 = arith.negf %422 : vector<2x32xf32>
    %424 = math.exp %423 : vector<2x32xf32>
    %cst_121 = arith.constant 1.000000e+00 : f32
    %425 = vector.broadcast %cst_121 : f32 to vector<2x32xf32>
    %426 = arith.addf %425, %424 : vector<2x32xf32>
    %427 = arith.divf %425, %426 : vector<2x32xf32>
    %428 = vector.extract_strided_slice %421 {offsets = [0, 32], sizes = [2, 32], strides = [1, 1]} : vector<2x128xf32> to vector<2x32xf32>
    %429 = arith.negf %428 : vector<2x32xf32>
    %430 = math.exp %429 : vector<2x32xf32>
    %cst_122 = arith.constant 1.000000e+00 : f32
    %431 = vector.broadcast %cst_122 : f32 to vector<2x32xf32>
    %432 = arith.addf %431, %430 : vector<2x32xf32>
    %433 = arith.divf %431, %432 : vector<2x32xf32>
    %434 = vector.extract_strided_slice %421 {offsets = [0, 64], sizes = [2, 32], strides = [1, 1]} : vector<2x128xf32> to vector<2x32xf32>
    %435 = math.tanh %434 : vector<2x32xf32>
    %436 = vector.extract_strided_slice %421 {offsets = [0, 96], sizes = [2, 32], strides = [1, 1]} : vector<2x128xf32> to vector<2x32xf32>
    %437 = arith.negf %436 : vector<2x32xf32>
    %438 = math.exp %437 : vector<2x32xf32>
    %cst_123 = arith.constant 1.000000e+00 : f32
    %439 = vector.broadcast %cst_123 : f32 to vector<2x32xf32>
    %440 = arith.addf %439, %438 : vector<2x32xf32>
    %441 = arith.divf %439, %440 : vector<2x32xf32>
    %442 = arith.mulf %433, %386 : vector<2x32xf32>
    %443 = arith.mulf %427, %435 : vector<2x32xf32>
    %444 = arith.addf %442, %443 : vector<2x32xf32>
    %445 = math.tanh %444 : vector<2x32xf32>
    %446 = arith.mulf %441, %445 : vector<2x32xf32>
    %c14_124 = arith.constant 14 : index
    %c0_125 = arith.constant 0 : index
    %447 = vector.load %arg19[%c14_124, %c0_125] : memref<16x64xf32, #tpu.memory_space<vmem>>, vector<2x32xf32>
    tpu.vector_store %arg19[%c14_124, %c0_125], %446 {strides = array<i32>} : memref<16x64xf32, #tpu.memory_space<vmem>>, vector<2x32xf32>,
    %c0_126 = arith.constant 0 : index
    %c128_127 = arith.constant 128 : index
    %448 = vector.load %arg18[%c0_126, %c128_127] : memref<16x256xf32, #tpu.memory_space<vmem>>, vector<2x128xf32>
    %cst_128 = arith.constant dense<0.000000e+00> : vector<2x128xf32>
    %449 = tpu.matmul %417, %8, %cst_128 {dimension_numbers = #tpu.dot_dimension_numbers<[1], [0], [0], [1], [0, 0, 1, 1], [], []>} : vector<2x32xf32>, vector<32x128xf32>, vector<2x128xf32> -> vector<2x128xf32>
    %450 = arith.addf %448, %449 : vector<2x128xf32>
    %451 = vector.extract_strided_slice %450 {offsets = [0, 0], sizes = [2, 32], strides = [1, 1]} : vector<2x128xf32> to vector<2x32xf32>
    %452 = arith.negf %451 : vector<2x32xf32>
    %453 = math.exp %452 : vector<2x32xf32>
    %cst_129 = arith.constant 1.000000e+00 : f32
    %454 = vector.broadcast %cst_129 : f32 to vector<2x32xf32>
    %455 = arith.addf %454, %453 : vector<2x32xf32>
    %456 = arith.divf %454, %455 : vector<2x32xf32>
    %457 = vector.extract_strided_slice %450 {offsets = [0, 32], sizes = [2, 32], strides = [1, 1]} : vector<2x128xf32> to vector<2x32xf32>
    %458 = arith.negf %457 : vector<2x32xf32>
    %459 = math.exp %458 : vector<2x32xf32>
    %cst_130 = arith.constant 1.000000e+00 : f32
    %460 = vector.broadcast %cst_130 : f32 to vector<2x32xf32>
    %461 = arith.addf %460, %459 : vector<2x32xf32>
    %462 = arith.divf %460, %461 : vector<2x32xf32>
    %463 = vector.extract_strided_slice %450 {offsets = [0, 64], sizes = [2, 32], strides = [1, 1]} : vector<2x128xf32> to vector<2x32xf32>
    %464 = math.tanh %463 : vector<2x32xf32>
    %465 = vector.extract_strided_slice %450 {offsets = [0, 96], sizes = [2, 32], strides = [1, 1]} : vector<2x128xf32> to vector<2x32xf32>
    %466 = arith.negf %465 : vector<2x32xf32>
    %467 = math.exp %466 : vector<2x32xf32>
    %cst_131 = arith.constant 1.000000e+00 : f32
    %468 = vector.broadcast %cst_131 : f32 to vector<2x32xf32>
    %469 = arith.addf %468, %467 : vector<2x32xf32>
    %470 = arith.divf %468, %469 : vector<2x32xf32>
    %471 = arith.mulf %462, %415 : vector<2x32xf32>
    %472 = arith.mulf %456, %464 : vector<2x32xf32>
    %473 = arith.addf %471, %472 : vector<2x32xf32>
    %474 = math.tanh %473 : vector<2x32xf32>
    %475 = arith.mulf %470, %474 : vector<2x32xf32>
    %c0_132 = arith.constant 0 : index
    %c32_133 = arith.constant 32 : index
    %476 = vector.load %arg19[%c0_132, %c32_133] : memref<16x64xf32, #tpu.memory_space<vmem>>, vector<2x32xf32>
    tpu.vector_store %arg19[%c0_132, %c32_133], %475 {strides = array<i32>} : memref<16x64xf32, #tpu.memory_space<vmem>>, vector<2x32xf32>,
    %c0_134 = arith.constant 0 : index
    %c0_135 = arith.constant 0 : index
    %477 = vector.load %arg19[%c0_134, %c0_135] : memref<16x64xf32, #tpu.memory_space<vmem>>, vector<16x64xf32>
    %c0_136 = arith.constant 0 : index
    %c0_137 = arith.constant 0 : index
    %478 = vector.load %arg5[%c0_136, %c0_137] : memref<64x256xf32, #tpu.memory_space<vmem>>, vector<64x256xf32>
    %cst_138 = arith.constant dense<0.000000e+00> : vector<16x256xf32>
    %479 = tpu.matmul %477, %478, %cst_138 {dimension_numbers = #tpu.dot_dimension_numbers<[1], [0], [0], [1], [0, 0, 1, 1], [], []>} : vector<16x64xf32>, vector<64x256xf32>, vector<16x256xf32> -> vector<16x256xf32>
    %c0_139 = arith.constant 0 : index
    %c0_140 = arith.constant 0 : index
    %480 = vector.load %arg6[%c0_139, %c0_140] : memref<1x256xf32, #tpu.memory_space<vmem>>, vector<1x256xf32>
    %481 = vector.broadcast %480 : vector<1x256xf32> to vector<16x256xf32>
    %482 = arith.addf %479, %481 : vector<16x256xf32>
    %c0_141 = arith.constant 0 : index
    %c0_142 = arith.constant 0 : index
    %483 = vector.load %arg18[%c0_141, %c0_142] : memref<16x256xf32, #tpu.memory_space<vmem>>, vector<16x256xf32>
    tpu.vector_store %arg18[%c0_141, %c0_142], %482 {strides = array<i32>} : memref<16x256xf32, #tpu.memory_space<vmem>>, vector<16x256xf32>,
    %c0_143 = arith.constant 0 : index
    %c0_144 = arith.constant 0 : index
    %484 = vector.load %arg7[%c0_143, %c0_144] : memref<32x128xf32, #tpu.memory_space<vmem>>, vector<32x128xf32>
    %c0_145 = arith.constant 0 : index
    %c0_146 = arith.constant 0 : index
    %485 = vector.load %arg8[%c0_145, %c0_146] : memref<32x128xf32, #tpu.memory_space<vmem>>, vector<32x128xf32>
    %cst_147 = arith.constant 0.000000e+00 : f32
    %486 = vector.broadcast %cst_147 : f32 to vector<2x32xf32>
    %cst_148 = arith.constant 0.000000e+00 : f32
    %487 = vector.broadcast %cst_148 : f32 to vector<2x32xf32>
    %cst_149 = arith.constant 0.000000e+00 : f32
    %488 = vector.broadcast %cst_149 : f32 to vector<2x32xf32>
    %cst_150 = arith.constant 0.000000e+00 : f32
    %489 = vector.broadcast %cst_150 : f32 to vector<2x32xf32>
    %c0_151 = arith.constant 0 : index
    %c0_152 = arith.constant 0 : index
    %490 = vector.load %arg18[%c0_151, %c0_152] : memref<16x256xf32, #tpu.memory_space<vmem>>, vector<2x128xf32>
    %cst_153 = arith.constant dense<0.000000e+00> : vector<2x128xf32>
    %491 = tpu.matmul %486, %484, %cst_153 {dimension_numbers = #tpu.dot_dimension_numbers<[1], [0], [0], [1], [0, 0, 1, 1], [], []>} : vector<2x32xf32>, vector<32x128xf32>, vector<2x128xf32> -> vector<2x128xf32>
    %492 = arith.addf %490, %491 : vector<2x128xf32>
    %493 = vector.extract_strided_slice %492 {offsets = [0, 0], sizes = [2, 32], strides = [1, 1]} : vector<2x128xf32> to vector<2x32xf32>
    %494 = arith.negf %493 : vector<2x32xf32>
    %495 = math.exp %494 : vector<2x32xf32>
    %cst_154 = arith.constant 1.000000e+00 : f32
    %496 = vector.broadcast %cst_154 : f32 to vector<2x32xf32>
    %497 = arith.addf %496, %495 : vector<2x32xf32>
    %498 = arith.divf %496, %497 : vector<2x32xf32>
    %499 = vector.extract_strided_slice %492 {offsets = [0, 32], sizes = [2, 32], strides = [1, 1]} : vector<2x128xf32> to vector<2x32xf32>
    %500 = arith.negf %499 : vector<2x32xf32>
    %501 = math.exp %500 : vector<2x32xf32>
    %cst_155 = arith.constant 1.000000e+00 : f32
    %502 = vector.broadcast %cst_155 : f32 to vector<2x32xf32>
    %503 = arith.addf %502, %501 : vector<2x32xf32>
    %504 = arith.divf %502, %503 : vector<2x32xf32>
    %505 = vector.extract_strided_slice %492 {offsets = [0, 64], sizes = [2, 32], strides = [1, 1]} : vector<2x128xf32> to vector<2x32xf32>
    %506 = math.tanh %505 : vector<2x32xf32>
    %507 = vector.extract_strided_slice %492 {offsets = [0, 96], sizes = [2, 32], strides = [1, 1]} : vector<2x128xf32> to vector<2x32xf32>
    %508 = arith.negf %507 : vector<2x32xf32>
    %509 = math.exp %508 : vector<2x32xf32>
    %cst_156 = arith.constant 1.000000e+00 : f32
    %510 = vector.broadcast %cst_156 : f32 to vector<2x32xf32>
    %511 = arith.addf %510, %509 : vector<2x32xf32>
    %512 = arith.divf %510, %511 : vector<2x32xf32>
    %513 = arith.mulf %504, %488 : vector<2x32xf32>
    %514 = arith.mulf %498, %506 : vector<2x32xf32>
    %515 = arith.addf %513, %514 : vector<2x32xf32>
    %516 = math.tanh %515 : vector<2x32xf32>
    %517 = arith.mulf %512, %516 : vector<2x32xf32>
    %c0_157 = arith.constant 0 : index
    %c0_158 = arith.constant 0 : index
    %518 = vector.load %arg13[%c0_157, %c0_158] : memref<16x64xf32, #tpu.memory_space<vmem>>, vector<2x32xf32>
    tpu.vector_store %arg13[%c0_157, %c0_158], %517 {strides = array<i32>} : memref<16x64xf32, #tpu.memory_space<vmem>>, vector<2x32xf32>,
    %c14_159 = arith.constant 14 : index
    %c128_160 = arith.constant 128 : index
    %519 = vector.load %arg18[%c14_159, %c128_160] : memref<16x256xf32, #tpu.memory_space<vmem>>, vector<2x128xf32>
    %cst_161 = arith.constant dense<0.000000e+00> : vector<2x128xf32>
    %520 = tpu.matmul %487, %485, %cst_161 {dimension_numbers = #tpu.dot_dimension_numbers<[1], [0], [0], [1], [0, 0, 1, 1], [], []>} : vector<2x32xf32>, vector<32x128xf32>, vector<2x128xf32> -> vector<2x128xf32>
    %521 = arith.addf %519, %520 : vector<2x128xf32>
    %522 = vector.extract_strided_slice %521 {offsets = [0, 0], sizes = [2, 32], strides = [1, 1]} : vector<2x128xf32> to vector<2x32xf32>
    %523 = arith.negf %522 : vector<2x32xf32>
    %524 = math.exp %523 : vector<2x32xf32>
    %cst_162 = arith.constant 1.000000e+00 : f32
    %525 = vector.broadcast %cst_162 : f32 to vector<2x32xf32>
    %526 = arith.addf %525, %524 : vector<2x32xf32>
    %527 = arith.divf %525, %526 : vector<2x32xf32>
    %528 = vector.extract_strided_slice %521 {offsets = [0, 32], sizes = [2, 32], strides = [1, 1]} : vector<2x128xf32> to vector<2x32xf32>
    %529 = arith.negf %528 : vector<2x32xf32>
    %530 = math.exp %529 : vector<2x32xf32>
    %cst_163 = arith.constant 1.000000e+00 : f32
    %531 = vector.broadcast %cst_163 : f32 to vector<2x32xf32>
    %532 = arith.addf %531, %530 : vector<2x32xf32>
    %533 = arith.divf %531, %532 : vector<2x32xf32>
    %534 = vector.extract_strided_slice %521 {offsets = [0, 64], sizes = [2, 32], strides = [1, 1]} : vector<2x128xf32> to vector<2x32xf32>
    %535 = math.tanh %534 : vector<2x32xf32>
    %536 = vector.extract_strided_slice %521 {offsets = [0, 96], sizes = [2, 32], strides = [1, 1]} : vector<2x128xf32> to vector<2x32xf32>
    %537 = arith.negf %536 : vector<2x32xf32>
    %538 = math.exp %537 : vector<2x32xf32>
    %cst_164 = arith.constant 1.000000e+00 : f32
    %539 = vector.broadcast %cst_164 : f32 to vector<2x32xf32>
    %540 = arith.addf %539, %538 : vector<2x32xf32>
    %541 = arith.divf %539, %540 : vector<2x32xf32>
    %542 = arith.mulf %533, %489 : vector<2x32xf32>
    %543 = arith.mulf %527, %535 : vector<2x32xf32>
    %544 = arith.addf %542, %543 : vector<2x32xf32>
    %545 = math.tanh %544 : vector<2x32xf32>
    %546 = arith.mulf %541, %545 : vector<2x32xf32>
    %c14_165 = arith.constant 14 : index
    %c32_166 = arith.constant 32 : index
    %547 = vector.load %arg13[%c14_165, %c32_166] : memref<16x64xf32, #tpu.memory_space<vmem>>, vector<2x32xf32>
    tpu.vector_store %arg13[%c14_165, %c32_166], %546 {strides = array<i32>} : memref<16x64xf32, #tpu.memory_space<vmem>>, vector<2x32xf32>,
    %c2_167 = arith.constant 2 : index
    %c0_168 = arith.constant 0 : index
    %548 = vector.load %arg18[%c2_167, %c0_168] : memref<16x256xf32, #tpu.memory_space<vmem>>, vector<2x128xf32>
    %cst_169 = arith.constant dense<0.000000e+00> : vector<2x128xf32>
    %549 = tpu.matmul %517, %484, %cst_169 {dimension_numbers = #tpu.dot_dimension_numbers<[1], [0], [0], [1], [0, 0, 1, 1], [], []>} : vector<2x32xf32>, vector<32x128xf32>, vector<2x128xf32> -> vector<2x128xf32>
    %550 = arith.addf %548, %549 : vector<2x128xf32>
    %551 = vector.extract_strided_slice %550 {offsets = [0, 0], sizes = [2, 32], strides = [1, 1]} : vector<2x128xf32> to vector<2x32xf32>
    %552 = arith.negf %551 : vector<2x32xf32>
    %553 = math.exp %552 : vector<2x32xf32>
    %cst_170 = arith.constant 1.000000e+00 : f32
    %554 = vector.broadcast %cst_170 : f32 to vector<2x32xf32>
    %555 = arith.addf %554, %553 : vector<2x32xf32>
    %556 = arith.divf %554, %555 : vector<2x32xf32>
    %557 = vector.extract_strided_slice %550 {offsets = [0, 32], sizes = [2, 32], strides = [1, 1]} : vector<2x128xf32> to vector<2x32xf32>
    %558 = arith.negf %557 : vector<2x32xf32>
    %559 = math.exp %558 : vector<2x32xf32>
    %cst_171 = arith.constant 1.000000e+00 : f32
    %560 = vector.broadcast %cst_171 : f32 to vector<2x32xf32>
    %561 = arith.addf %560, %559 : vector<2x32xf32>
    %562 = arith.divf %560, %561 : vector<2x32xf32>
    %563 = vector.extract_strided_slice %550 {offsets = [0, 64], sizes = [2, 32], strides = [1, 1]} : vector<2x128xf32> to vector<2x32xf32>
    %564 = math.tanh %563 : vector<2x32xf32>
    %565 = vector.extract_strided_slice %550 {offsets = [0, 96], sizes = [2, 32], strides = [1, 1]} : vector<2x128xf32> to vector<2x32xf32>
    %566 = arith.negf %565 : vector<2x32xf32>
    %567 = math.exp %566 : vector<2x32xf32>
    %cst_172 = arith.constant 1.000000e+00 : f32
    %568 = vector.broadcast %cst_172 : f32 to vector<2x32xf32>
    %569 = arith.addf %568, %567 : vector<2x32xf32>
    %570 = arith.divf %568, %569 : vector<2x32xf32>
    %571 = arith.mulf %562, %515 : vector<2x32xf32>
    %572 = arith.mulf %556, %564 : vector<2x32xf32>
    %573 = arith.addf %571, %572 : vector<2x32xf32>
    %574 = math.tanh %573 : vector<2x32xf32>
    %575 = arith.mulf %570, %574 : vector<2x32xf32>
    %c2_173 = arith.constant 2 : index
    %c0_174 = arith.constant 0 : index
    %576 = vector.load %arg13[%c2_173, %c0_174] : memref<16x64xf32, #tpu.memory_space<vmem>>, vector<2x32xf32>
    tpu.vector_store %arg13[%c2_173, %c0_174], %575 {strides = array<i32>} : memref<16x64xf32, #tpu.memory_space<vmem>>, vector<2x32xf32>,
    %c12_175 = arith.constant 12 : index
    %c128_176 = arith.constant 128 : index
    %577 = vector.load %arg18[%c12_175, %c128_176] : memref<16x256xf32, #tpu.memory_space<vmem>>, vector<2x128xf32>
    %cst_177 = arith.constant dense<0.000000e+00> : vector<2x128xf32>
    %578 = tpu.matmul %546, %485, %cst_177 {dimension_numbers = #tpu.dot_dimension_numbers<[1], [0], [0], [1], [0, 0, 1, 1], [], []>} : vector<2x32xf32>, vector<32x128xf32>, vector<2x128xf32> -> vector<2x128xf32>
    %579 = arith.addf %577, %578 : vector<2x128xf32>
    %580 = vector.extract_strided_slice %579 {offsets = [0, 0], sizes = [2, 32], strides = [1, 1]} : vector<2x128xf32> to vector<2x32xf32>
    %581 = arith.negf %580 : vector<2x32xf32>
    %582 = math.exp %581 : vector<2x32xf32>
    %cst_178 = arith.constant 1.000000e+00 : f32
    %583 = vector.broadcast %cst_178 : f32 to vector<2x32xf32>
    %584 = arith.addf %583, %582 : vector<2x32xf32>
    %585 = arith.divf %583, %584 : vector<2x32xf32>
    %586 = vector.extract_strided_slice %579 {offsets = [0, 32], sizes = [2, 32], strides = [1, 1]} : vector<2x128xf32> to vector<2x32xf32>
    %587 = arith.negf %586 : vector<2x32xf32>
    %588 = math.exp %587 : vector<2x32xf32>
    %cst_179 = arith.constant 1.000000e+00 : f32
    %589 = vector.broadcast %cst_179 : f32 to vector<2x32xf32>
    %590 = arith.addf %589, %588 : vector<2x32xf32>
    %591 = arith.divf %589, %590 : vector<2x32xf32>
    %592 = vector.extract_strided_slice %579 {offsets = [0, 64], sizes = [2, 32], strides = [1, 1]} : vector<2x128xf32> to vector<2x32xf32>
    %593 = math.tanh %592 : vector<2x32xf32>
    %594 = vector.extract_strided_slice %579 {offsets = [0, 96], sizes = [2, 32], strides = [1, 1]} : vector<2x128xf32> to vector<2x32xf32>
    %595 = arith.negf %594 : vector<2x32xf32>
    %596 = math.exp %595 : vector<2x32xf32>
    %cst_180 = arith.constant 1.000000e+00 : f32
    %597 = vector.broadcast %cst_180 : f32 to vector<2x32xf32>
    %598 = arith.addf %597, %596 : vector<2x32xf32>
    %599 = arith.divf %597, %598 : vector<2x32xf32>
    %600 = arith.mulf %591, %544 : vector<2x32xf32>
    %601 = arith.mulf %585, %593 : vector<2x32xf32>
    %602 = arith.addf %600, %601 : vector<2x32xf32>
    %603 = math.tanh %602 : vector<2x32xf32>
    %604 = arith.mulf %599, %603 : vector<2x32xf32>
    %c12_181 = arith.constant 12 : index
    %c32_182 = arith.constant 32 : index
    %605 = vector.load %arg13[%c12_181, %c32_182] : memref<16x64xf32, #tpu.memory_space<vmem>>, vector<2x32xf32>
    tpu.vector_store %arg13[%c12_181, %c32_182], %604 {strides = array<i32>} : memref<16x64xf32, #tpu.memory_space<vmem>>, vector<2x32xf32>,
    %c4_183 = arith.constant 4 : index
    %c0_184 = arith.constant 0 : index
    %606 = vector.load %arg18[%c4_183, %c0_184] : memref<16x256xf32, #tpu.memory_space<vmem>>, vector<2x128xf32>
    %cst_185 = arith.constant dense<0.000000e+00> : vector<2x128xf32>
    %607 = tpu.matmul %575, %484, %cst_185 {dimension_numbers = #tpu.dot_dimension_numbers<[1], [0], [0], [1], [0, 0, 1, 1], [], []>} : vector<2x32xf32>, vector<32x128xf32>, vector<2x128xf32> -> vector<2x128xf32>
    %608 = arith.addf %606, %607 : vector<2x128xf32>
    %609 = vector.extract_strided_slice %608 {offsets = [0, 0], sizes = [2, 32], strides = [1, 1]} : vector<2x128xf32> to vector<2x32xf32>
    %610 = arith.negf %609 : vector<2x32xf32>
    %611 = math.exp %610 : vector<2x32xf32>
    %cst_186 = arith.constant 1.000000e+00 : f32
    %612 = vector.broadcast %cst_186 : f32 to vector<2x32xf32>
    %613 = arith.addf %612, %611 : vector<2x32xf32>
    %614 = arith.divf %612, %613 : vector<2x32xf32>
    %615 = vector.extract_strided_slice %608 {offsets = [0, 32], sizes = [2, 32], strides = [1, 1]} : vector<2x128xf32> to vector<2x32xf32>
    %616 = arith.negf %615 : vector<2x32xf32>
    %617 = math.exp %616 : vector<2x32xf32>
    %cst_187 = arith.constant 1.000000e+00 : f32
    %618 = vector.broadcast %cst_187 : f32 to vector<2x32xf32>
    %619 = arith.addf %618, %617 : vector<2x32xf32>
    %620 = arith.divf %618, %619 : vector<2x32xf32>
    %621 = vector.extract_strided_slice %608 {offsets = [0, 64], sizes = [2, 32], strides = [1, 1]} : vector<2x128xf32> to vector<2x32xf32>
    %622 = math.tanh %621 : vector<2x32xf32>
    %623 = vector.extract_strided_slice %608 {offsets = [0, 96], sizes = [2, 32], strides = [1, 1]} : vector<2x128xf32> to vector<2x32xf32>
    %624 = arith.negf %623 : vector<2x32xf32>
    %625 = math.exp %624 : vector<2x32xf32>
    %cst_188 = arith.constant 1.000000e+00 : f32
    %626 = vector.broadcast %cst_188 : f32 to vector<2x32xf32>
    %627 = arith.addf %626, %625 : vector<2x32xf32>
    %628 = arith.divf %626, %627 : vector<2x32xf32>
    %629 = arith.mulf %620, %573 : vector<2x32xf32>
    %630 = arith.mulf %614, %622 : vector<2x32xf32>
    %631 = arith.addf %629, %630 : vector<2x32xf32>
    %632 = math.tanh %631 : vector<2x32xf32>
    %633 = arith.mulf %628, %632 : vector<2x32xf32>
    %c4_189 = arith.constant 4 : index
    %c0_190 = arith.constant 0 : index
    %634 = vector.load %arg13[%c4_189, %c0_190] : memref<16x64xf32, #tpu.memory_space<vmem>>, vector<2x32xf32>
    tpu.vector_store %arg13[%c4_189, %c0_190], %633 {strides = array<i32>} : memref<16x64xf32, #tpu.memory_space<vmem>>, vector<2x32xf32>,
    %c10_191 = arith.constant 10 : index
    %c128_192 = arith.constant 128 : index
    %635 = vector.load %arg18[%c10_191, %c128_192] : memref<16x256xf32, #tpu.memory_space<vmem>>, vector<2x128xf32>
    %cst_193 = arith.constant dense<0.000000e+00> : vector<2x128xf32>
    %636 = tpu.matmul %604, %485, %cst_193 {dimension_numbers = #tpu.dot_dimension_numbers<[1], [0], [0], [1], [0, 0, 1, 1], [], []>} : vector<2x32xf32>, vector<32x128xf32>, vector<2x128xf32> -> vector<2x128xf32>
    %637 = arith.addf %635, %636 : vector<2x128xf32>
    %638 = vector.extract_strided_slice %637 {offsets = [0, 0], sizes = [2, 32], strides = [1, 1]} : vector<2x128xf32> to vector<2x32xf32>
    %639 = arith.negf %638 : vector<2x32xf32>
    %640 = math.exp %639 : vector<2x32xf32>
    %cst_194 = arith.constant 1.000000e+00 : f32
    %641 = vector.broadcast %cst_194 : f32 to vector<2x32xf32>
    %642 = arith.addf %641, %640 : vector<2x32xf32>
    %643 = arith.divf %641, %642 : vector<2x32xf32>
    %644 = vector.extract_strided_slice %637 {offsets = [0, 32], sizes = [2, 32], strides = [1, 1]} : vector<2x128xf32> to vector<2x32xf32>
    %645 = arith.negf %644 : vector<2x32xf32>
    %646 = math.exp %645 : vector<2x32xf32>
    %cst_195 = arith.constant 1.000000e+00 : f32
    %647 = vector.broadcast %cst_195 : f32 to vector<2x32xf32>
    %648 = arith.addf %647, %646 : vector<2x32xf32>
    %649 = arith.divf %647, %648 : vector<2x32xf32>
    %650 = vector.extract_strided_slice %637 {offsets = [0, 64], sizes = [2, 32], strides = [1, 1]} : vector<2x128xf32> to vector<2x32xf32>
    %651 = math.tanh %650 : vector<2x32xf32>
    %652 = vector.extract_strided_slice %637 {offsets = [0, 96], sizes = [2, 32], strides = [1, 1]} : vector<2x128xf32> to vector<2x32xf32>
    %653 = arith.negf %652 : vector<2x32xf32>
    %654 = math.exp %653 : vector<2x32xf32>
    %cst_196 = arith.constant 1.000000e+00 : f32
    %655 = vector.broadcast %cst_196 : f32 to vector<2x32xf32>
    %656 = arith.addf %655, %654 : vector<2x32xf32>
    %657 = arith.divf %655, %656 : vector<2x32xf32>
    %658 = arith.mulf %649, %602 : vector<2x32xf32>
    %659 = arith.mulf %643, %651 : vector<2x32xf32>
    %660 = arith.addf %658, %659 : vector<2x32xf32>
    %661 = math.tanh %660 : vector<2x32xf32>
    %662 = arith.mulf %657, %661 : vector<2x32xf32>
    %c10_197 = arith.constant 10 : index
    %c32_198 = arith.constant 32 : index
    %663 = vector.load %arg13[%c10_197, %c32_198] : memref<16x64xf32, #tpu.memory_space<vmem>>, vector<2x32xf32>
    tpu.vector_store %arg13[%c10_197, %c32_198], %662 {strides = array<i32>} : memref<16x64xf32, #tpu.memory_space<vmem>>, vector<2x32xf32>,
    %c6_199 = arith.constant 6 : index
    %c0_200 = arith.constant 0 : index
    %664 = vector.load %arg18[%c6_199, %c0_200] : memref<16x256xf32, #tpu.memory_space<vmem>>, vector<2x128xf32>
    %cst_201 = arith.constant dense<0.000000e+00> : vector<2x128xf32>
    %665 = tpu.matmul %633, %484, %cst_201 {dimension_numbers = #tpu.dot_dimension_numbers<[1], [0], [0], [1], [0, 0, 1, 1], [], []>} : vector<2x32xf32>, vector<32x128xf32>, vector<2x128xf32> -> vector<2x128xf32>
    %666 = arith.addf %664, %665 : vector<2x128xf32>
    %667 = vector.extract_strided_slice %666 {offsets = [0, 0], sizes = [2, 32], strides = [1, 1]} : vector<2x128xf32> to vector<2x32xf32>
    %668 = arith.negf %667 : vector<2x32xf32>
    %669 = math.exp %668 : vector<2x32xf32>
    %cst_202 = arith.constant 1.000000e+00 : f32
    %670 = vector.broadcast %cst_202 : f32 to vector<2x32xf32>
    %671 = arith.addf %670, %669 : vector<2x32xf32>
    %672 = arith.divf %670, %671 : vector<2x32xf32>
    %673 = vector.extract_strided_slice %666 {offsets = [0, 32], sizes = [2, 32], strides = [1, 1]} : vector<2x128xf32> to vector<2x32xf32>
    %674 = arith.negf %673 : vector<2x32xf32>
    %675 = math.exp %674 : vector<2x32xf32>
    %cst_203 = arith.constant 1.000000e+00 : f32
    %676 = vector.broadcast %cst_203 : f32 to vector<2x32xf32>
    %677 = arith.addf %676, %675 : vector<2x32xf32>
    %678 = arith.divf %676, %677 : vector<2x32xf32>
    %679 = vector.extract_strided_slice %666 {offsets = [0, 64], sizes = [2, 32], strides = [1, 1]} : vector<2x128xf32> to vector<2x32xf32>
    %680 = math.tanh %679 : vector<2x32xf32>
    %681 = vector.extract_strided_slice %666 {offsets = [0, 96], sizes = [2, 32], strides = [1, 1]} : vector<2x128xf32> to vector<2x32xf32>
    %682 = arith.negf %681 : vector<2x32xf32>
    %683 = math.exp %682 : vector<2x32xf32>
    %cst_204 = arith.constant 1.000000e+00 : f32
    %684 = vector.broadcast %cst_204 : f32 to vector<2x32xf32>
    %685 = arith.addf %684, %683 : vector<2x32xf32>
    %686 = arith.divf %684, %685 : vector<2x32xf32>
    %687 = arith.mulf %678, %631 : vector<2x32xf32>
    %688 = arith.mulf %672, %680 : vector<2x32xf32>
    %689 = arith.addf %687, %688 : vector<2x32xf32>
    %690 = math.tanh %689 : vector<2x32xf32>
    %691 = arith.mulf %686, %690 : vector<2x32xf32>
    %c6_205 = arith.constant 6 : index
    %c0_206 = arith.constant 0 : index
    %692 = vector.load %arg13[%c6_205, %c0_206] : memref<16x64xf32, #tpu.memory_space<vmem>>, vector<2x32xf32>
    tpu.vector_store %arg13[%c6_205, %c0_206], %691 {strides = array<i32>} : memref<16x64xf32, #tpu.memory_space<vmem>>, vector<2x32xf32>,
    %c8_207 = arith.constant 8 : index
    %c128_208 = arith.constant 128 : index
    %693 = vector.load %arg18[%c8_207, %c128_208] : memref<16x256xf32, #tpu.memory_space<vmem>>, vector<2x128xf32>
    %cst_209 = arith.constant dense<0.000000e+00> : vector<2x128xf32>
    %694 = tpu.matmul %662, %485, %cst_209 {dimension_numbers = #tpu.dot_dimension_numbers<[1], [0], [0], [1], [0, 0, 1, 1], [], []>} : vector<2x32xf32>, vector<32x128xf32>, vector<2x128xf32> -> vector<2x128xf32>
    %695 = arith.addf %693, %694 : vector<2x128xf32>
    %696 = vector.extract_strided_slice %695 {offsets = [0, 0], sizes = [2, 32], strides = [1, 1]} : vector<2x128xf32> to vector<2x32xf32>
    %697 = arith.negf %696 : vector<2x32xf32>
    %698 = math.exp %697 : vector<2x32xf32>
    %cst_210 = arith.constant 1.000000e+00 : f32
    %699 = vector.broadcast %cst_210 : f32 to vector<2x32xf32>
    %700 = arith.addf %699, %698 : vector<2x32xf32>
    %701 = arith.divf %699, %700 : vector<2x32xf32>
    %702 = vector.extract_strided_slice %695 {offsets = [0, 32], sizes = [2, 32], strides = [1, 1]} : vector<2x128xf32> to vector<2x32xf32>
    %703 = arith.negf %702 : vector<2x32xf32>
    %704 = math.exp %703 : vector<2x32xf32>
    %cst_211 = arith.constant 1.000000e+00 : f32
    %705 = vector.broadcast %cst_211 : f32 to vector<2x32xf32>
    %706 = arith.addf %705, %704 : vector<2x32xf32>
    %707 = arith.divf %705, %706 : vector<2x32xf32>
    %708 = vector.extract_strided_slice %695 {offsets = [0, 64], sizes = [2, 32], strides = [1, 1]} : vector<2x128xf32> to vector<2x32xf32>
    %709 = math.tanh %708 : vector<2x32xf32>
    %710 = vector.extract_strided_slice %695 {offsets = [0, 96], sizes = [2, 32], strides = [1, 1]} : vector<2x128xf32> to vector<2x32xf32>
    %711 = arith.negf %710 : vector<2x32xf32>
    %712 = math.exp %711 : vector<2x32xf32>
    %cst_212 = arith.constant 1.000000e+00 : f32
    %713 = vector.broadcast %cst_212 : f32 to vector<2x32xf32>
    %714 = arith.addf %713, %712 : vector<2x32xf32>
    %715 = arith.divf %713, %714 : vector<2x32xf32>
    %716 = arith.mulf %707, %660 : vector<2x32xf32>
    %717 = arith.mulf %701, %709 : vector<2x32xf32>
    %718 = arith.addf %716, %717 : vector<2x32xf32>
    %719 = math.tanh %718 : vector<2x32xf32>
    %720 = arith.mulf %715, %719 : vector<2x32xf32>
    %c8_213 = arith.constant 8 : index
    %c32_214 = arith.constant 32 : index
    %721 = vector.load %arg13[%c8_213, %c32_214] : memref<16x64xf32, #tpu.memory_space<vmem>>, vector<2x32xf32>
    tpu.vector_store %arg13[%c8_213, %c32_214], %720 {strides = array<i32>} : memref<16x64xf32, #tpu.memory_space<vmem>>, vector<2x32xf32>,
    %c8_215 = arith.constant 8 : index
    %c0_216 = arith.constant 0 : index
    %722 = vector.load %arg18[%c8_215, %c0_216] : memref<16x256xf32, #tpu.memory_space<vmem>>, vector<2x128xf32>
    %cst_217 = arith.constant dense<0.000000e+00> : vector<2x128xf32>
    %723 = tpu.matmul %691, %484, %cst_217 {dimension_numbers = #tpu.dot_dimension_numbers<[1], [0], [0], [1], [0, 0, 1, 1], [], []>} : vector<2x32xf32>, vector<32x128xf32>, vector<2x128xf32> -> vector<2x128xf32>
    %724 = arith.addf %722, %723 : vector<2x128xf32>
    %725 = vector.extract_strided_slice %724 {offsets = [0, 0], sizes = [2, 32], strides = [1, 1]} : vector<2x128xf32> to vector<2x32xf32>
    %726 = arith.negf %725 : vector<2x32xf32>
    %727 = math.exp %726 : vector<2x32xf32>
    %cst_218 = arith.constant 1.000000e+00 : f32
    %728 = vector.broadcast %cst_218 : f32 to vector<2x32xf32>
    %729 = arith.addf %728, %727 : vector<2x32xf32>
    %730 = arith.divf %728, %729 : vector<2x32xf32>
    %731 = vector.extract_strided_slice %724 {offsets = [0, 32], sizes = [2, 32], strides = [1, 1]} : vector<2x128xf32> to vector<2x32xf32>
    %732 = arith.negf %731 : vector<2x32xf32>
    %733 = math.exp %732 : vector<2x32xf32>
    %cst_219 = arith.constant 1.000000e+00 : f32
    %734 = vector.broadcast %cst_219 : f32 to vector<2x32xf32>
    %735 = arith.addf %734, %733 : vector<2x32xf32>
    %736 = arith.divf %734, %735 : vector<2x32xf32>
    %737 = vector.extract_strided_slice %724 {offsets = [0, 64], sizes = [2, 32], strides = [1, 1]} : vector<2x128xf32> to vector<2x32xf32>
    %738 = math.tanh %737 : vector<2x32xf32>
    %739 = vector.extract_strided_slice %724 {offsets = [0, 96], sizes = [2, 32], strides = [1, 1]} : vector<2x128xf32> to vector<2x32xf32>
    %740 = arith.negf %739 : vector<2x32xf32>
    %741 = math.exp %740 : vector<2x32xf32>
    %cst_220 = arith.constant 1.000000e+00 : f32
    %742 = vector.broadcast %cst_220 : f32 to vector<2x32xf32>
    %743 = arith.addf %742, %741 : vector<2x32xf32>
    %744 = arith.divf %742, %743 : vector<2x32xf32>
    %745 = arith.mulf %736, %689 : vector<2x32xf32>
    %746 = arith.mulf %730, %738 : vector<2x32xf32>
    %747 = arith.addf %745, %746 : vector<2x32xf32>
    %748 = math.tanh %747 : vector<2x32xf32>
    %749 = arith.mulf %744, %748 : vector<2x32xf32>
    %c8_221 = arith.constant 8 : index
    %c0_222 = arith.constant 0 : index
    %750 = vector.load %arg13[%c8_221, %c0_222] : memref<16x64xf32, #tpu.memory_space<vmem>>, vector<2x32xf32>
    tpu.vector_store %arg13[%c8_221, %c0_222], %749 {strides = array<i32>} : memref<16x64xf32, #tpu.memory_space<vmem>>, vector<2x32xf32>,
    %c6_223 = arith.constant 6 : index
    %c128_224 = arith.constant 128 : index
    %751 = vector.load %arg18[%c6_223, %c128_224] : memref<16x256xf32, #tpu.memory_space<vmem>>, vector<2x128xf32>
    %cst_225 = arith.constant dense<0.000000e+00> : vector<2x128xf32>
    %752 = tpu.matmul %720, %485, %cst_225 {dimension_numbers = #tpu.dot_dimension_numbers<[1], [0], [0], [1], [0, 0, 1, 1], [], []>} : vector<2x32xf32>, vector<32x128xf32>, vector<2x128xf32> -> vector<2x128xf32>
    %753 = arith.addf %751, %752 : vector<2x128xf32>
    %754 = vector.extract_strided_slice %753 {offsets = [0, 0], sizes = [2, 32], strides = [1, 1]} : vector<2x128xf32> to vector<2x32xf32>
    %755 = arith.negf %754 : vector<2x32xf32>
    %756 = math.exp %755 : vector<2x32xf32>
    %cst_226 = arith.constant 1.000000e+00 : f32
    %757 = vector.broadcast %cst_226 : f32 to vector<2x32xf32>
    %758 = arith.addf %757, %756 : vector<2x32xf32>
    %759 = arith.divf %757, %758 : vector<2x32xf32>
    %760 = vector.extract_strided_slice %753 {offsets = [0, 32], sizes = [2, 32], strides = [1, 1]} : vector<2x128xf32> to vector<2x32xf32>
    %761 = arith.negf %760 : vector<2x32xf32>
    %762 = math.exp %761 : vector<2x32xf32>
    %cst_227 = arith.constant 1.000000e+00 : f32
    %763 = vector.broadcast %cst_227 : f32 to vector<2x32xf32>
    %764 = arith.addf %763, %762 : vector<2x32xf32>
    %765 = arith.divf %763, %764 : vector<2x32xf32>
    %766 = vector.extract_strided_slice %753 {offsets = [0, 64], sizes = [2, 32], strides = [1, 1]} : vector<2x128xf32> to vector<2x32xf32>
    %767 = math.tanh %766 : vector<2x32xf32>
    %768 = vector.extract_strided_slice %753 {offsets = [0, 96], sizes = [2, 32], strides = [1, 1]} : vector<2x128xf32> to vector<2x32xf32>
    %769 = arith.negf %768 : vector<2x32xf32>
    %770 = math.exp %769 : vector<2x32xf32>
    %cst_228 = arith.constant 1.000000e+00 : f32
    %771 = vector.broadcast %cst_228 : f32 to vector<2x32xf32>
    %772 = arith.addf %771, %770 : vector<2x32xf32>
    %773 = arith.divf %771, %772 : vector<2x32xf32>
    %774 = arith.mulf %765, %718 : vector<2x32xf32>
    %775 = arith.mulf %759, %767 : vector<2x32xf32>
    %776 = arith.addf %774, %775 : vector<2x32xf32>
    %777 = math.tanh %776 : vector<2x32xf32>
    %778 = arith.mulf %773, %777 : vector<2x32xf32>
    %c6_229 = arith.constant 6 : index
    %c32_230 = arith.constant 32 : index
    %779 = vector.load %arg13[%c6_229, %c32_230] : memref<16x64xf32, #tpu.memory_space<vmem>>, vector<2x32xf32>
    tpu.vector_store %arg13[%c6_229, %c32_230], %778 {strides = array<i32>} : memref<16x64xf32, #tpu.memory_space<vmem>>, vector<2x32xf32>,
    %c10_231 = arith.constant 10 : index
    %c0_232 = arith.constant 0 : index
    %780 = vector.load %arg18[%c10_231, %c0_232] : memref<16x256xf32, #tpu.memory_space<vmem>>, vector<2x128xf32>
    %cst_233 = arith.constant dense<0.000000e+00> : vector<2x128xf32>
    %781 = tpu.matmul %749, %484, %cst_233 {dimension_numbers = #tpu.dot_dimension_numbers<[1], [0], [0], [1], [0, 0, 1, 1], [], []>} : vector<2x32xf32>, vector<32x128xf32>, vector<2x128xf32> -> vector<2x128xf32>
    %782 = arith.addf %780, %781 : vector<2x128xf32>
    %783 = vector.extract_strided_slice %782 {offsets = [0, 0], sizes = [2, 32], strides = [1, 1]} : vector<2x128xf32> to vector<2x32xf32>
    %784 = arith.negf %783 : vector<2x32xf32>
    %785 = math.exp %784 : vector<2x32xf32>
    %cst_234 = arith.constant 1.000000e+00 : f32
    %786 = vector.broadcast %cst_234 : f32 to vector<2x32xf32>
    %787 = arith.addf %786, %785 : vector<2x32xf32>
    %788 = arith.divf %786, %787 : vector<2x32xf32>
    %789 = vector.extract_strided_slice %782 {offsets = [0, 32], sizes = [2, 32], strides = [1, 1]} : vector<2x128xf32> to vector<2x32xf32>
    %790 = arith.negf %789 : vector<2x32xf32>
    %791 = math.exp %790 : vector<2x32xf32>
    %cst_235 = arith.constant 1.000000e+00 : f32
    %792 = vector.broadcast %cst_235 : f32 to vector<2x32xf32>
    %793 = arith.addf %792, %791 : vector<2x32xf32>
    %794 = arith.divf %792, %793 : vector<2x32xf32>
    %795 = vector.extract_strided_slice %782 {offsets = [0, 64], sizes = [2, 32], strides = [1, 1]} : vector<2x128xf32> to vector<2x32xf32>
    %796 = math.tanh %795 : vector<2x32xf32>
    %797 = vector.extract_strided_slice %782 {offsets = [0, 96], sizes = [2, 32], strides = [1, 1]} : vector<2x128xf32> to vector<2x32xf32>
    %798 = arith.negf %797 : vector<2x32xf32>
    %799 = math.exp %798 : vector<2x32xf32>
    %cst_236 = arith.constant 1.000000e+00 : f32
    %800 = vector.broadcast %cst_236 : f32 to vector<2x32xf32>
    %801 = arith.addf %800, %799 : vector<2x32xf32>
    %802 = arith.divf %800, %801 : vector<2x32xf32>
    %803 = arith.mulf %794, %747 : vector<2x32xf32>
    %804 = arith.mulf %788, %796 : vector<2x32xf32>
    %805 = arith.addf %803, %804 : vector<2x32xf32>
    %806 = math.tanh %805 : vector<2x32xf32>
    %807 = arith.mulf %802, %806 : vector<2x32xf32>
    %c10_237 = arith.constant 10 : index
    %c0_238 = arith.constant 0 : index
    %808 = vector.load %arg13[%c10_237, %c0_238] : memref<16x64xf32, #tpu.memory_space<vmem>>, vector<2x32xf32>
    tpu.vector_store %arg13[%c10_237, %c0_238], %807 {strides = array<i32>} : memref<16x64xf32, #tpu.memory_space<vmem>>, vector<2x32xf32>,
    %c4_239 = arith.constant 4 : index
    %c128_240 = arith.constant 128 : index
    %809 = vector.load %arg18[%c4_239, %c128_240] : memref<16x256xf32, #tpu.memory_space<vmem>>, vector<2x128xf32>
    %cst_241 = arith.constant dense<0.000000e+00> : vector<2x128xf32>
    %810 = tpu.matmul %778, %485, %cst_241 {dimension_numbers = #tpu.dot_dimension_numbers<[1], [0], [0], [1], [0, 0, 1, 1], [], []>} : vector<2x32xf32>, vector<32x128xf32>, vector<2x128xf32> -> vector<2x128xf32>
    %811 = arith.addf %809, %810 : vector<2x128xf32>
    %812 = vector.extract_strided_slice %811 {offsets = [0, 0], sizes = [2, 32], strides = [1, 1]} : vector<2x128xf32> to vector<2x32xf32>
    %813 = arith.negf %812 : vector<2x32xf32>
    %814 = math.exp %813 : vector<2x32xf32>
    %cst_242 = arith.constant 1.000000e+00 : f32
    %815 = vector.broadcast %cst_242 : f32 to vector<2x32xf32>
    %816 = arith.addf %815, %814 : vector<2x32xf32>
    %817 = arith.divf %815, %816 : vector<2x32xf32>
    %818 = vector.extract_strided_slice %811 {offsets = [0, 32], sizes = [2, 32], strides = [1, 1]} : vector<2x128xf32> to vector<2x32xf32>
    %819 = arith.negf %818 : vector<2x32xf32>
    %820 = math.exp %819 : vector<2x32xf32>
    %cst_243 = arith.constant 1.000000e+00 : f32
    %821 = vector.broadcast %cst_243 : f32 to vector<2x32xf32>
    %822 = arith.addf %821, %820 : vector<2x32xf32>
    %823 = arith.divf %821, %822 : vector<2x32xf32>
    %824 = vector.extract_strided_slice %811 {offsets = [0, 64], sizes = [2, 32], strides = [1, 1]} : vector<2x128xf32> to vector<2x32xf32>
    %825 = math.tanh %824 : vector<2x32xf32>
    %826 = vector.extract_strided_slice %811 {offsets = [0, 96], sizes = [2, 32], strides = [1, 1]} : vector<2x128xf32> to vector<2x32xf32>
    %827 = arith.negf %826 : vector<2x32xf32>
    %828 = math.exp %827 : vector<2x32xf32>
    %cst_244 = arith.constant 1.000000e+00 : f32
    %829 = vector.broadcast %cst_244 : f32 to vector<2x32xf32>
    %830 = arith.addf %829, %828 : vector<2x32xf32>
    %831 = arith.divf %829, %830 : vector<2x32xf32>
    %832 = arith.mulf %823, %776 : vector<2x32xf32>
    %833 = arith.mulf %817, %825 : vector<2x32xf32>
    %834 = arith.addf %832, %833 : vector<2x32xf32>
    %835 = math.tanh %834 : vector<2x32xf32>
    %836 = arith.mulf %831, %835 : vector<2x32xf32>
    %c4_245 = arith.constant 4 : index
    %c32_246 = arith.constant 32 : index
    %837 = vector.load %arg13[%c4_245, %c32_246] : memref<16x64xf32, #tpu.memory_space<vmem>>, vector<2x32xf32>
    tpu.vector_store %arg13[%c4_245, %c32_246], %836 {strides = array<i32>} : memref<16x64xf32, #tpu.memory_space<vmem>>, vector<2x32xf32>,
    %c12_247 = arith.constant 12 : index
    %c0_248 = arith.constant 0 : index
    %838 = vector.load %arg18[%c12_247, %c0_248] : memref<16x256xf32, #tpu.memory_space<vmem>>, vector<2x128xf32>
    %cst_249 = arith.constant dense<0.000000e+00> : vector<2x128xf32>
    %839 = tpu.matmul %807, %484, %cst_249 {dimension_numbers = #tpu.dot_dimension_numbers<[1], [0], [0], [1], [0, 0, 1, 1], [], []>} : vector<2x32xf32>, vector<32x128xf32>, vector<2x128xf32> -> vector<2x128xf32>
    %840 = arith.addf %838, %839 : vector<2x128xf32>
    %841 = vector.extract_strided_slice %840 {offsets = [0, 0], sizes = [2, 32], strides = [1, 1]} : vector<2x128xf32> to vector<2x32xf32>
    %842 = arith.negf %841 : vector<2x32xf32>
    %843 = math.exp %842 : vector<2x32xf32>
    %cst_250 = arith.constant 1.000000e+00 : f32
    %844 = vector.broadcast %cst_250 : f32 to vector<2x32xf32>
    %845 = arith.addf %844, %843 : vector<2x32xf32>
    %846 = arith.divf %844, %845 : vector<2x32xf32>
    %847 = vector.extract_strided_slice %840 {offsets = [0, 32], sizes = [2, 32], strides = [1, 1]} : vector<2x128xf32> to vector<2x32xf32>
    %848 = arith.negf %847 : vector<2x32xf32>
    %849 = math.exp %848 : vector<2x32xf32>
    %cst_251 = arith.constant 1.000000e+00 : f32
    %850 = vector.broadcast %cst_251 : f32 to vector<2x32xf32>
    %851 = arith.addf %850, %849 : vector<2x32xf32>
    %852 = arith.divf %850, %851 : vector<2x32xf32>
    %853 = vector.extract_strided_slice %840 {offsets = [0, 64], sizes = [2, 32], strides = [1, 1]} : vector<2x128xf32> to vector<2x32xf32>
    %854 = math.tanh %853 : vector<2x32xf32>
    %855 = vector.extract_strided_slice %840 {offsets = [0, 96], sizes = [2, 32], strides = [1, 1]} : vector<2x128xf32> to vector<2x32xf32>
    %856 = arith.negf %855 : vector<2x32xf32>
    %857 = math.exp %856 : vector<2x32xf32>
    %cst_252 = arith.constant 1.000000e+00 : f32
    %858 = vector.broadcast %cst_252 : f32 to vector<2x32xf32>
    %859 = arith.addf %858, %857 : vector<2x32xf32>
    %860 = arith.divf %858, %859 : vector<2x32xf32>
    %861 = arith.mulf %852, %805 : vector<2x32xf32>
    %862 = arith.mulf %846, %854 : vector<2x32xf32>
    %863 = arith.addf %861, %862 : vector<2x32xf32>
    %864 = math.tanh %863 : vector<2x32xf32>
    %865 = arith.mulf %860, %864 : vector<2x32xf32>
    %c12_253 = arith.constant 12 : index
    %c0_254 = arith.constant 0 : index
    %866 = vector.load %arg13[%c12_253, %c0_254] : memref<16x64xf32, #tpu.memory_space<vmem>>, vector<2x32xf32>
    tpu.vector_store %arg13[%c12_253, %c0_254], %865 {strides = array<i32>} : memref<16x64xf32, #tpu.memory_space<vmem>>, vector<2x32xf32>,
    %c2_255 = arith.constant 2 : index
    %c128_256 = arith.constant 128 : index
    %867 = vector.load %arg18[%c2_255, %c128_256] : memref<16x256xf32, #tpu.memory_space<vmem>>, vector<2x128xf32>
    %cst_257 = arith.constant dense<0.000000e+00> : vector<2x128xf32>
    %868 = tpu.matmul %836, %485, %cst_257 {dimension_numbers = #tpu.dot_dimension_numbers<[1], [0], [0], [1], [0, 0, 1, 1], [], []>} : vector<2x32xf32>, vector<32x128xf32>, vector<2x128xf32> -> vector<2x128xf32>
    %869 = arith.addf %867, %868 : vector<2x128xf32>
    %870 = vector.extract_strided_slice %869 {offsets = [0, 0], sizes = [2, 32], strides = [1, 1]} : vector<2x128xf32> to vector<2x32xf32>
    %871 = arith.negf %870 : vector<2x32xf32>
    %872 = math.exp %871 : vector<2x32xf32>
    %cst_258 = arith.constant 1.000000e+00 : f32
    %873 = vector.broadcast %cst_258 : f32 to vector<2x32xf32>
    %874 = arith.addf %873, %872 : vector<2x32xf32>
    %875 = arith.divf %873, %874 : vector<2x32xf32>
    %876 = vector.extract_strided_slice %869 {offsets = [0, 32], sizes = [2, 32], strides = [1, 1]} : vector<2x128xf32> to vector<2x32xf32>
    %877 = arith.negf %876 : vector<2x32xf32>
    %878 = math.exp %877 : vector<2x32xf32>
    %cst_259 = arith.constant 1.000000e+00 : f32
    %879 = vector.broadcast %cst_259 : f32 to vector<2x32xf32>
    %880 = arith.addf %879, %878 : vector<2x32xf32>
    %881 = arith.divf %879, %880 : vector<2x32xf32>
    %882 = vector.extract_strided_slice %869 {offsets = [0, 64], sizes = [2, 32], strides = [1, 1]} : vector<2x128xf32> to vector<2x32xf32>
    %883 = math.tanh %882 : vector<2x32xf32>
    %884 = vector.extract_strided_slice %869 {offsets = [0, 96], sizes = [2, 32], strides = [1, 1]} : vector<2x128xf32> to vector<2x32xf32>
    %885 = arith.negf %884 : vector<2x32xf32>
    %886 = math.exp %885 : vector<2x32xf32>
    %cst_260 = arith.constant 1.000000e+00 : f32
    %887 = vector.broadcast %cst_260 : f32 to vector<2x32xf32>
    %888 = arith.addf %887, %886 : vector<2x32xf32>
    %889 = arith.divf %887, %888 : vector<2x32xf32>
    %890 = arith.mulf %881, %834 : vector<2x32xf32>
    %891 = arith.mulf %875, %883 : vector<2x32xf32>
    %892 = arith.addf %890, %891 : vector<2x32xf32>
    %893 = math.tanh %892 : vector<2x32xf32>
    %894 = arith.mulf %889, %893 : vector<2x32xf32>
    %c2_261 = arith.constant 2 : index
    %c32_262 = arith.constant 32 : index
    %895 = vector.load %arg13[%c2_261, %c32_262] : memref<16x64xf32, #tpu.memory_space<vmem>>, vector<2x32xf32>
    tpu.vector_store %arg13[%c2_261, %c32_262], %894 {strides = array<i32>} : memref<16x64xf32, #tpu.memory_space<vmem>>, vector<2x32xf32>,
    %c14_263 = arith.constant 14 : index
    %c0_264 = arith.constant 0 : index
    %896 = vector.load %arg18[%c14_263, %c0_264] : memref<16x256xf32, #tpu.memory_space<vmem>>, vector<2x128xf32>
    %cst_265 = arith.constant dense<0.000000e+00> : vector<2x128xf32>
    %897 = tpu.matmul %865, %484, %cst_265 {dimension_numbers = #tpu.dot_dimension_numbers<[1], [0], [0], [1], [0, 0, 1, 1], [], []>} : vector<2x32xf32>, vector<32x128xf32>, vector<2x128xf32> -> vector<2x128xf32>
    %898 = arith.addf %896, %897 : vector<2x128xf32>
    %899 = vector.extract_strided_slice %898 {offsets = [0, 0], sizes = [2, 32], strides = [1, 1]} : vector<2x128xf32> to vector<2x32xf32>
    %900 = arith.negf %899 : vector<2x32xf32>
    %901 = math.exp %900 : vector<2x32xf32>
    %cst_266 = arith.constant 1.000000e+00 : f32
    %902 = vector.broadcast %cst_266 : f32 to vector<2x32xf32>
    %903 = arith.addf %902, %901 : vector<2x32xf32>
    %904 = arith.divf %902, %903 : vector<2x32xf32>
    %905 = vector.extract_strided_slice %898 {offsets = [0, 32], sizes = [2, 32], strides = [1, 1]} : vector<2x128xf32> to vector<2x32xf32>
    %906 = arith.negf %905 : vector<2x32xf32>
    %907 = math.exp %906 : vector<2x32xf32>
    %cst_267 = arith.constant 1.000000e+00 : f32
    %908 = vector.broadcast %cst_267 : f32 to vector<2x32xf32>
    %909 = arith.addf %908, %907 : vector<2x32xf32>
    %910 = arith.divf %908, %909 : vector<2x32xf32>
    %911 = vector.extract_strided_slice %898 {offsets = [0, 64], sizes = [2, 32], strides = [1, 1]} : vector<2x128xf32> to vector<2x32xf32>
    %912 = math.tanh %911 : vector<2x32xf32>
    %913 = vector.extract_strided_slice %898 {offsets = [0, 96], sizes = [2, 32], strides = [1, 1]} : vector<2x128xf32> to vector<2x32xf32>
    %914 = arith.negf %913 : vector<2x32xf32>
    %915 = math.exp %914 : vector<2x32xf32>
    %cst_268 = arith.constant 1.000000e+00 : f32
    %916 = vector.broadcast %cst_268 : f32 to vector<2x32xf32>
    %917 = arith.addf %916, %915 : vector<2x32xf32>
    %918 = arith.divf %916, %917 : vector<2x32xf32>
    %919 = arith.mulf %910, %863 : vector<2x32xf32>
    %920 = arith.mulf %904, %912 : vector<2x32xf32>
    %921 = arith.addf %919, %920 : vector<2x32xf32>
    %922 = math.tanh %921 : vector<2x32xf32>
    %923 = arith.mulf %918, %922 : vector<2x32xf32>
    %c14_269 = arith.constant 14 : index
    %c0_270 = arith.constant 0 : index
    %924 = vector.load %arg13[%c14_269, %c0_270] : memref<16x64xf32, #tpu.memory_space<vmem>>, vector<2x32xf32>
    tpu.vector_store %arg13[%c14_269, %c0_270], %923 {strides = array<i32>} : memref<16x64xf32, #tpu.memory_space<vmem>>, vector<2x32xf32>,
    %c0_271 = arith.constant 0 : index
    %c128_272 = arith.constant 128 : index
    %925 = vector.load %arg18[%c0_271, %c128_272] : memref<16x256xf32, #tpu.memory_space<vmem>>, vector<2x128xf32>
    %cst_273 = arith.constant dense<0.000000e+00> : vector<2x128xf32>
    %926 = tpu.matmul %894, %485, %cst_273 {dimension_numbers = #tpu.dot_dimension_numbers<[1], [0], [0], [1], [0, 0, 1, 1], [], []>} : vector<2x32xf32>, vector<32x128xf32>, vector<2x128xf32> -> vector<2x128xf32>
    %927 = arith.addf %925, %926 : vector<2x128xf32>
    %928 = vector.extract_strided_slice %927 {offsets = [0, 0], sizes = [2, 32], strides = [1, 1]} : vector<2x128xf32> to vector<2x32xf32>
    %929 = arith.negf %928 : vector<2x32xf32>
    %930 = math.exp %929 : vector<2x32xf32>
    %cst_274 = arith.constant 1.000000e+00 : f32
    %931 = vector.broadcast %cst_274 : f32 to vector<2x32xf32>
    %932 = arith.addf %931, %930 : vector<2x32xf32>
    %933 = arith.divf %931, %932 : vector<2x32xf32>
    %934 = vector.extract_strided_slice %927 {offsets = [0, 32], sizes = [2, 32], strides = [1, 1]} : vector<2x128xf32> to vector<2x32xf32>
    %935 = arith.negf %934 : vector<2x32xf32>
    %936 = math.exp %935 : vector<2x32xf32>
    %cst_275 = arith.constant 1.000000e+00 : f32
    %937 = vector.broadcast %cst_275 : f32 to vector<2x32xf32>
    %938 = arith.addf %937, %936 : vector<2x32xf32>
    %939 = arith.divf %937, %938 : vector<2x32xf32>
    %940 = vector.extract_strided_slice %927 {offsets = [0, 64], sizes = [2, 32], strides = [1, 1]} : vector<2x128xf32> to vector<2x32xf32>
    %941 = math.tanh %940 : vector<2x32xf32>
    %942 = vector.extract_strided_slice %927 {offsets = [0, 96], sizes = [2, 32], strides = [1, 1]} : vector<2x128xf32> to vector<2x32xf32>
    %943 = arith.negf %942 : vector<2x32xf32>
    %944 = math.exp %943 : vector<2x32xf32>
    %cst_276 = arith.constant 1.000000e+00 : f32
    %945 = vector.broadcast %cst_276 : f32 to vector<2x32xf32>
    %946 = arith.addf %945, %944 : vector<2x32xf32>
    %947 = arith.divf %945, %946 : vector<2x32xf32>
    %948 = arith.mulf %939, %892 : vector<2x32xf32>
    %949 = arith.mulf %933, %941 : vector<2x32xf32>
    %950 = arith.addf %948, %949 : vector<2x32xf32>
    %951 = math.tanh %950 : vector<2x32xf32>
    %952 = arith.mulf %947, %951 : vector<2x32xf32>
    %c0_277 = arith.constant 0 : index
    %c32_278 = arith.constant 32 : index
    %953 = vector.load %arg13[%c0_277, %c32_278] : memref<16x64xf32, #tpu.memory_space<vmem>>, vector<2x32xf32>
    tpu.vector_store %arg13[%c0_277, %c32_278], %952 {strides = array<i32>} : memref<16x64xf32, #tpu.memory_space<vmem>>, vector<2x32xf32>,
    %c14_279 = arith.constant 14 : index
    %c0_280 = arith.constant 0 : index
    %954 = vector.load %arg13[%c14_279, %c0_280] : memref<16x64xf32, #tpu.memory_space<vmem>>, vector<2x64xf32>
    %c0_281 = arith.constant 0 : index
    %c0_282 = arith.constant 0 : index
    %955 = vector.load %arg9[%c0_281, %c0_282] : memref<64x8xf32, #tpu.memory_space<vmem>>, vector<64x8xf32>
    %cst_283 = arith.constant dense<0.000000e+00> : vector<2x8xf32>
    %956 = tpu.matmul %954, %955, %cst_283 {dimension_numbers = #tpu.dot_dimension_numbers<[1], [0], [0], [1], [0, 0, 1, 1], [], []>} : vector<2x64xf32>, vector<64x8xf32>, vector<2x8xf32> -> vector<2x8xf32>
    %c0_284 = arith.constant 0 : index
    %c0_285 = arith.constant 0 : index
    %957 = vector.load %arg10[%c0_284, %c0_285] : memref<1x8xf32, #tpu.memory_space<vmem>>, vector<1x8xf32>
    %958 = vector.broadcast %957 : vector<1x8xf32> to vector<2x8xf32>
    %959 = arith.addf %956, %958 : vector<2x8xf32>
    %c0_286 = arith.constant 0 : index
    %c0_287 = arith.constant 0 : index
    %960 = vector.load %arg11[%c0_286, %c0_287] : memref<64x16xf32, #tpu.memory_space<vmem>>, vector<64x16xf32>
    %cst_288 = arith.constant dense<0.000000e+00> : vector<2x16xf32>
    %961 = tpu.matmul %954, %960, %cst_288 {dimension_numbers = #tpu.dot_dimension_numbers<[1], [0], [0], [1], [0, 0, 1, 1], [], []>} : vector<2x64xf32>, vector<64x16xf32>, vector<2x16xf32> -> vector<2x16xf32>
    %c0_289 = arith.constant 0 : index
    %c0_290 = arith.constant 0 : index
    %962 = vector.load %arg12[%c0_289, %c0_290] : memref<1x16xf32, #tpu.memory_space<vmem>>, vector<1x16xf32>
    %963 = vector.broadcast %962 : vector<1x16xf32> to vector<2x16xf32>
    %964 = arith.addf %961, %963 : vector<2x16xf32>
    %c0_291 = arith.constant 0 : index
    %c0_292 = arith.constant 0 : index
    %965 = vector.load %arg14[%c0_291, %c0_292] : memref<2x8xf32, #tpu.memory_space<vmem>>, vector<2x8xf32>
    tpu.vector_store %arg14[%c0_291, %c0_292], %959 {strides = array<i32>} : memref<2x8xf32, #tpu.memory_space<vmem>>, vector<2x8xf32>,
    %c0_293 = arith.constant 0 : index
    %c0_294 = arith.constant 0 : index
    %966 = vector.load %arg15[%c0_293, %c0_294] : memref<2x16xf32, #tpu.memory_space<vmem>>, vector<2x16xf32>
    tpu.vector_store %arg15[%c0_293, %c0_294], %964 {strides = array<i32>} : memref<2x16xf32, #tpu.memory_space<vmem>>, vector<2x16xf32>,
    %967 = arith.mulf %959, %959 : vector<2x8xf32>
    %cst_295 = arith.constant dense<0.000000e+00> : vector<2xf32>
    %968 = vector.multi_reduction <add>, %967, %cst_295 [1] : vector<2x8xf32> to vector<2xf32>
    %969 = vector.shape_cast %968 : vector<2xf32> to vector<2x1xf32>
    %970 = math.rsqrt %969 : vector<2x1xf32>
    %cst_296 = arith.constant 3.1622777 : f32
    %971 = vector.broadcast %cst_296 : f32 to vector<2x1xf32>
    %972 = arith.mulf %971, %970 : vector<2x1xf32>
    %973 = vector.broadcast %972 : vector<2x1xf32> to vector<2x8xf32>
    %974 = arith.mulf %959, %973 : vector<2x8xf32>
    %c0_297 = arith.constant 0 : index
    %c0_298 = arith.constant 0 : index
    %975 = vector.load %arg16[%c0_297, %c0_298] : memref<2x8xf32, #tpu.memory_space<vmem>>, vector<2x8xf32>
    tpu.vector_store %arg16[%c0_297, %c0_298], %974 {strides = array<i32>} : memref<2x8xf32, #tpu.memory_space<vmem>>, vector<2x8xf32>,
    %976 = vector.extract_strided_slice %964 {offsets = [0, 0], sizes = [2, 8], strides = [1, 1]} : vector<2x16xf32> to vector<2x8xf32>
    %977 = vector.extract_strided_slice %964 {offsets = [0, 8], sizes = [2, 8], strides = [1, 1]} : vector<2x16xf32> to vector<2x8xf32>
    %978 = arith.mulf %976, %976 : vector<2x8xf32>
    %979 = arith.mulf %977, %977 : vector<2x8xf32>
    %980 = arith.addf %978, %979 : vector<2x8xf32>
    %981 = math.rsqrt %980 : vector<2x8xf32>
    %982 = arith.mulf %976, %981 : vector<2x8xf32>
    %983 = arith.mulf %977, %981 : vector<2x8xf32>
    %984 = tpu.concatenate %982, %983 in 1 : vector<2x8xf32>, vector<2x8xf32> -> vector<2x16xf32>
    %c0_299 = arith.constant 0 : index
    %c0_300 = arith.constant 0 : index
    %985 = vector.load %arg17[%c0_299, %c0_300] : memref<2x16xf32, #tpu.memory_space<vmem>>, vector<2x16xf32>
    tpu.vector_store %arg17[%c0_299, %c0_300], %984 {strides = array<i32>} : memref<2x16xf32, #tpu.memory_space<vmem>>, vector<2x16xf32>,
    return
  }
}

</mosaic_0001>

<bundles_post_ra>
// kernel: _lambda_.1
= control target key start
LH: loop header
LB: loop body
LE: loop exit
PB: predicated region body
PF: predicated region fallthrough
CT: control target
= control target key end

     0   :  { %s6380_s0 = inlined_call_operand.vmem [shape: f32[16,8], index: 0, kind: input, shape index: {}]   ;;  %s6381_s1 = inlined_call_operand.vmem [shape: f32[8,256], index: 1, kind: input, shape index: {}]   ;;  %s6382_s2 = inlined_call_operand.vmem [shape: f32[1,256], index: 2, kind: input, shape index: {}]   ;;  %s6383_s3 = inlined_call_operand.vmem [shape: f32[32,128], index: 3, kind: input, shape index: {}]   ;;  %s6384_s4 = inlined_call_operand.hbm [shape: f32[32,128], index: 4, kind: input, shape index: {}]   ;;  %s6385_s5 = inlined_call_operand.hbm [shape: f32[64,256], index: 5, kind: input, shape index: {}]   ;;  %s6386_s6 = inlined_call_operand.vmem [shape: f32[1,256], index: 6, kind: input, shape index: {}]   ;;  %s6387_s7 = inlined_call_operand.hbm [shape: f32[32,128], index: 7, kind: input, shape index: {}]   ;;  %s6388_s8 = inlined_call_operand.hbm [shape: f32[32,128], index: 8, kind: input, shape index: {}]   ;;  %s6389_s9 = inlined_call_operand.hbm [shape: f32[64,8], index: 9, kind: input, shape index: {}]   ;;  %s6390_s10 = inlined_call_operand.vmem [shape: f32[1,8], index: 10, kind: input, shape index: {}]   ;;  %s6391_s11 = inlined_call_operand.hbm [shape: f32[64,16], index: 11, kind: input, shape index: {}]   ;;  %s6392_s12 = inlined_call_operand.hbm [shape: f32[1,16], index: 12, kind: input, shape index: {}]   ;;  %s6393_s13 = inlined_call_operand.vmem [shape: f32[16,64], index: 13, kind: output, shape index: {0}]   ;;  %s6394_s14 = inlined_call_operand.hbm [shape: f32[2,8], index: 14, kind: output, shape index: {1}]   ;;  %s6395_s15 = inlined_call_operand.hbm [shape: f32[2,16], index: 15, kind: output, shape index: {2}]   ;;  %s6396_s16 = inlined_call_operand.vmem [shape: f32[2,8], index: 16, kind: output, shape index: {3}]   ;;  %s6397_s17 = inlined_call_operand.vmem [shape: f32[2,16], index: 17, kind: output, shape index: {4}]  }
   0x1   :  { %6400 = sst [smem:[#allocation25_spill]] %s6380_s0 }
   0x2   :  { %6401 = sst [smem:[#allocation26_spill]] %s6381_s1 }
   0x3   :  { %23 = vsyncpa [#allocation5], 0 }
   0x4   :  { %24 = vsyncpa [#allocation8], 0 }
   0x5   :  { %25 = vsyncpa [#allocation11], 0 }
   0x6   :  { %26 = vsyncpa [#allocation14], 0 }
   0x7   :  { %27 = vsyncpa [#allocation6], 0 }
   0x8   :  { %28 = vsyncpa [#allocation18], 0  ;;  %s5267_s24 = smov [#allocation7]  }
   0x9   :  { %s54_s25 = sshll.u32 %s5267_s24, 4  ;;  %s55_s25 = int_to_ptr.vmem [resolvable:$true] %s54_s25 }
   0xa   :  { %s5083_s26 = scalar_lea.vmem %s55_s25, 2048  ;;  %p5088_p1 = scmp.lt.s32.totalorder %s55_s25, %s55_s25 }
   0xb   :  { %p5084_p0 = scmp.ne.s32.totalorder %s55_s25, %s5083_s26  ;;  %p5089_p2 = scmp.lt.s32.totalorder %s5083_s26, %s5083_s26 }
   0xd   :  { %p5090_p3 = por %p5089_p2, %p5088_p1 }
   0xf   :  { %p5091_p4 = pnand %p5090_p3, %p5084_p0 }
  0x11   :  { %5094 = shalt.err (!%p5091_p4)
}
  0x12   :  { %s5268_s27 = smov 256   ;;  %s5269_s28 = smov 16  }
  0x13   :  { %60 = dma.hbm_to_vmem [thread:$0]  %s6385_s5, 2048, %s55_s25, [#allocation8], %s5268_s27, %s5268_s27, %s5269_s28  }
  0x14   :  { %s5270_s30 = smov [#allocation10]   ;;  %s5271_s19 = smov [#allocation13]  }
  0x15   :  { %s80_s18 = sshll.u32 %s5270_s30, 4  ;;  %s106_s1 = sshll.u32 %s5271_s19, 4  ;;  %s81_s18 = int_to_ptr.vmem [resolvable:$true] %s80_s18  ;;  %s107_s1 = int_to_ptr.vmem [resolvable:$true] %s106_s1 }
  0x16   :  { %s5103_s20 = scalar_lea.vmem %s81_s18, 512  ;;  %p5108_p6 = scmp.lt.s32.totalorder %s81_s18, %s81_s18 }
  0x17   :  { %p5104_p5 = scmp.ne.s32.totalorder %s81_s18, %s5103_s20  ;;  %p5109_p7 = scmp.lt.s32.totalorder %s5103_s20, %s5103_s20 }
  0x19   :  { %p5110_p8 = por %p5109_p7, %p5108_p6 }
  0x1b   :  { %p5111_p9 = pnand %p5110_p8, %p5104_p5 }
  0x1d   :  { %5114 = shalt.err (!%p5111_p9)
}
  0x1e   :  { %s5272_s21 = smov 128   ;;  %s5273_s22 = smov 8  }
  0x1f   :  { %86 = dma.hbm_to_vmem [thread:$0]  %s6388_s8, 512, %s81_s18, [#allocation11], %s5272_s21, %s5272_s21, %s5273_s22  }
  0x20   :  { %s5123_s5 = scalar_lea.vmem %s107_s1, 1024  ;;  %p5128_p11 = scmp.lt.s32.totalorder %s107_s1, %s107_s1 }
  0x21   :  { %p5124_p10 = scmp.ne.s32.totalorder %s107_s1, %s5123_s5  ;;  %p5129_p12 = scmp.lt.s32.totalorder %s5123_s5, %s5123_s5 }
  0x23   :  { %p5130_p13 = por %p5129_p12, %p5128_p11 }
  0x25   :  { %p5131_p0 = pnand %p5130_p13, %p5124_p10 }
  0x27   :  { %5134 = shalt.err (!%p5131_p0)
}
  0x28   :  { %112 = dma.hbm_to_vmem [thread:$0]  %s6391_s11, 1024, %s107_s1, [#allocation14], %s5272_s21, %s5272_s21, %s5273_s22  }
  0x29   :  { %s5274_s27 = smov [#allocation4]   ;;  %s5275_s29 = smov [#allocation9]  }
  0x2a   :  { %s42_s28 = sshll.u32 %s5274_s27, 4  ;;  %s68_s8 = sshll.u32 %s5275_s29, 4  ;;  %s43_s28 = int_to_ptr.vmem [resolvable:$true] %s42_s28  ;;  %s69_s8 = int_to_ptr.vmem [resolvable:$true] %s68_s8 }
  0x2b   :  { %s5143_s0 = scalar_lea.vmem %s43_s28, 512  ;;  %p5148_p2 = scmp.lt.s32.totalorder %s43_s28, %s43_s28 }
  0x2c   :  { %p5144_p1 = scmp.ne.s32.totalorder %s43_s28, %s5143_s0  ;;  %p5149_p3 = scmp.lt.s32.totalorder %s5143_s0, %s5143_s0 }
  0x2e   :  { %p5150_p4 = por %p5149_p3, %p5148_p2 }
  0x30   :  { %p5151_p5 = pnand %p5150_p4, %p5144_p1 }
  0x32   :  { %5154 = shalt.err (!%p5151_p5)
}
  0x33   :  { %48 = dma.hbm_to_vmem [thread:$0]  %s6384_s4, 512, %s43_s28, [#allocation5], %s5272_s21, %s5272_s21, %s5273_s22  }
  0x34   :  { %s5163_s11 = scalar_lea.vmem %s69_s8, 512  ;;  %p5168_p7 = scmp.lt.s32.totalorder %s69_s8, %s69_s8 }
  0x35   :  { %p5164_p6 = scmp.ne.s32.totalorder %s69_s8, %s5163_s11  ;;  %p5169_p8 = scmp.lt.s32.totalorder %s5163_s11, %s5163_s11 }
  0x37   :  { %p5170_p9 = por %p5169_p8, %p5168_p7 }
  0x39   :  { %p5171_p10 = pnand %p5170_p9, %p5164_p6 }
  0x3b   :  { %5174 = shalt.err (!%p5171_p10)
}
  0x3c   :  { %74 = dma.hbm_to_vmem [thread:$0]  %s6387_s7, 512, %s69_s8, [#allocation8], %s5272_s21, %s5272_s21, %s5273_s22  }
  0x3d   :  { %s5276_s20 = smov [#allocation12]   ;;  %s5277_s24 = smov [#allocation15]  }
  0x3e   :  { %s92_s23 = sshll.u32 %s5276_s20, 4  ;;  %s119_s4 = sshll.u32 %s5277_s24, 4  ;;  %s93_s23 = int_to_ptr.vmem [resolvable:$true] %s92_s23  ;;  %s120_s4 = int_to_ptr.vmem [resolvable:$true] %s119_s4 }
  0x3f   :  { %s5183_s5 = scalar_lea.vmem %s93_s23, 1024  ;;  %p5188_p12 = scmp.lt.s32.totalorder %s93_s23, %s93_s23 }
  0x40   :  { %p5184_p11 = scmp.ne.s32.totalorder %s93_s23, %s5183_s5  ;;  %p5189_p13 = scmp.lt.s32.totalorder %s5183_s5, %s5183_s5 }
  0x42   :  { %p5190_p0 = por %p5189_p13, %p5188_p12 }
  0x44   :  { %p5191_p1 = pnand %p5190_p0, %p5184_p11 }
  0x46   :  { %5194 = shalt.err (!%p5191_p1)
}
  0x47   :  { %98 = dma.hbm_to_vmem [thread:$0]  %s6389_s9, 1024, %s93_s23, [#allocation11], %s5272_s21, %s5272_s21, %s5273_s22  }
  0x48   :  { %s5203_s7 = scalar_lea.vmem %s120_s4, 16  ;;  %s5207_s27 = scalar_lea.vmem %s120_s4, 32 }
  0x49   :  { %p5204_p2 = scmp.ne.s32.totalorder %s120_s4, %s5203_s7  ;;  %p5208_p3 = scmp.lt.s32.totalorder %s120_s4, %s120_s4 }
  0x4a   :  { %p5209_p4 = scmp.lt.s32.totalorder %s5207_s27, %s5203_s7 }
  0x4c   :  { %p5210_p5 = por %p5209_p4, %p5208_p3 }
  0x4e   :  { %p5211_p6 = pnand %p5210_p5, %p5204_p2 }
  0x50   :  { %5214 = shalt.err (!%p5211_p6)
}
  0x51   :  { %122 = dma.hbm_to_vmem [thread:$0]  %s6392_s12, 16, %s120_s4, [#allocation14]  }
  0x52   :  { %5255 = dma.done.wait [#allocation5], 512  }
  0x53   :  { %5256 = vsyncadd [#allocation5], 4294966784 }
  0x54   :  { %5257 = dma.done.wait [#allocation8], 2560  }
  0x55   :  { %5258 = vsyncadd [#allocation8], 4294964736 }
  0x56   :  { %5259 = dma.done.wait [#allocation11], 1536  }
  0x57   :  { %5260 = vsyncadd [#allocation11], 4294965760 }
  0x58   :  { %5261 = dma.done.wait [#allocation14], 1040  }
  0x59   :  { %5262 = vsyncadd [#allocation14], 4294966256  ;;  %v5278_v0 = vmov 0.0   ;;  %vm5279_vm0 = vmmov 0   ;;  %s6402_s12 = sld [smem:[#allocation26_spill]]  ;;  %vm160_vm1 = vcmask 64512   ;;  %v150_v13 = vlaneseq }
  0x5a   :  { %231 = vmatprep.mubr.f32.mxu0 %v5278_v0  ;;  %4399 = vmatprep.subr.mxu1 %v5278_v0  ;;  %s6403_s11 = sld [smem:[#allocation25_spill]]  ;;  %v5427_v4 = vld [vmem:[%s6383_s3 + $0x18] sm:$0xff]  ;;  %v5433_v5 = vld [vmem:[%s6383_s3 + $0x10] sm:$0xff]  ;;  %v5435_v6 = vld [vmem:[#allocation4 + $0x18] sm:$0xff]  ;;  %s5281_s29 = smov 32   ;;  %vm257_vm2 = vcmask 261120  }
  0x5b   :  { %4407 = vmatprep.mubr.msk.f32.mxu1 %vm5279_vm0, %v5278_v0  ;;  %4400 = vmatpush3.msra.mxu1 %v5427_v4  ;;  %v5447_v8 = vld [vmem:[%s6383_s3 + $0x8] sm:$0xff]  ;;  %v5451_v9 = vld [vmem:[#allocation4 + $0x10] sm:$0xff]  ;;  %v5462_v11 = vld [vmem:[#allocation4 + $0x8] sm:$0xff]  ;;  %v5499_v14 = vshrl.u32 %v150_v13, 7  ;;  %vm360_vm3 = vcmask 254976   ;;  %vm575_vm4 = vcmask 257026  }
  0x5c   :  { %4401 = vmatprep.subr.mxu1 %v5278_v0  ;;  %v5458_v10 = vld [vmem:[%s6383_s3] sm:$0xff]  ;;  %v5468_v12 = vld [vmem:[#allocation4] sm:$0xff]  ;;  %vm1027_vm5 = vcmask 261126   ;;  %vm801_vm6 = vcmask 259076   ;;  %vm688_vm7 = vcmask 521476   ;;  %vm465_vm8 = vcmask 523526  }
  0x5d   :  { %4402 = vmatpush3.msra.mxu1 %v5433_v5  ;;  %v152_v15 = vsub.s32 0, %v5499_v14  ;;  %v148_v16 = vld [vmem:[%s6382_s2] sm:$0x3]  ;;  %v156_v17 = vsub.s32 1, %v5499_v14  ;;  %s5280_s2 = smov 64   ;;  %vm914_vm9 = vcmask 519426  }
  0x5e   :  { %4403 = vmatprep.subr.mxu1 %v5278_v0  ;;  %vm1137_vm10 = vcmask 517376   ;;  %vm2055_vm11 = vcmask 523264   ;;  %v5893_v14 = vld [vmem:[#allocation10 + $0x18] sm:$0xff]  ;;  %vm4082_vm12 = vcmask 58368   ;;  %vm4084_vm13 = vcmask 123904   ;;  %s5283_s7 = smov [#allocation16]  }
  0x5f   :  { %v147_v1 = vld [vmem:[%s6402_s12 + $0x8] sm:$0xff]  ;;  %v146_v2 = vld [vmem:[%s6402_s12] sm:$0xff]  ;;  %4404 = vmatpush3.msra.mxu1 %v5447_v8  ;;  %v153_v18 = vrot.slane %v148_v16, %v152_v15  ;;  %v157_v19 = vrot.slane %v148_v16, %v156_v17  ;;  %s5284_s27 = smov [#allocation17]  }
  0x60   :  { %v144_v3 = vld [vmem:[%s6403_s11] sm:$0xff]  ;;  %197 = vmatprep.subr.mxu0 %v147_v1  ;;  %v145_v7 = vld [vmem:[%s6403_s11 + $0x8] sm:$0xff]  ;;  %4405 = vmatprep.subr.mxu1 %v5278_v0  ;;  %s4127_s28 = sshll.u32 %s5284_s27, 4  ;;  %s4128_s28 = int_to_ptr.vmem [resolvable:$true] %s4127_s28 }
  0x61   :  { %198 = vmatpush1.msra.mxu0 %v146_v2  ;;  %4406 = vmatpush3.msra.mxu1 %v5458_v10 }
  0x62   :  { %4153 = vmatmul.mubr.msk.f32.vlgmr.msra.gmra.mxu0 %vm160_vm1, %v144_v3  ;;  %4410 = vmatprep.subr.mxu0 %v5278_v0 }
  0x63   :  { %237 = vmatprep.mubr.f32.mxu0 %v5278_v0  ;;  %4411 = vmatpush3.msra.mxu0 %v5435_v6 }
  0x64   :  { %4412 = vmatprep.subr.mxu0 %v5278_v0  ;;  %4408 = vmatmul.mubr.f32.vlgmr.msra.gmra.mxu1 %v5278_v0 }
  0x65   :  { %4413 = vmatpush3.msra.mxu0 %v5451_v9  ;;  %4421 = vmatprep.subr.mxu1 %v5278_v0 }
  0x66   :  { %4154 = vmatmul.mubr.msk.f32.gmra.mxu0 %vm160_vm1, %v145_v7  ;;  %4414 = vmatprep.subr.mxu0 %v5278_v0 }
  0x67   :  { %4415 = vmatpush3.msra.mxu0 %v5462_v11  ;;  %4418 = vmatprep.mubr.msk.f32.mxu0 %vm5279_vm0, %v5278_v0 }
  0x68   :  { %4416 = vmatprep.subr.mxu0 %v5278_v0  ;;  %4422 = vmatpush3.msra.mxu1 %v5427_v4 }
  0x69   :  { %4417 = vmatpush3.msra.mxu0 %v5468_v12  ;;  %4423 = vmatprep.subr.mxu1 %v5278_v0 }
  0x6a   :  { %4419 = vmatmul.mubr.f32.vlgmr.msra.gmra.mxu0 %v5278_v0  ;;  %4432 = vmatprep.subr.mxu0 %v5278_v0 }
  0x6b   :  { %4433 = vmatpush3.msra.mxu0 %v5435_v6  ;;  %4440 = vmatprep.mubr.msk.f32.mxu0 %vm5279_vm0, %v5278_v0 }
  0x6c   :  { %4434 = vmatprep.subr.mxu0 %v5278_v0  ;;  %4424 = vmatpush3.msra.mxu1 %v5433_v5 }
  0x6d   :  { %4435 = vmatpush3.msra.mxu0 %v5451_v9  ;;  %4425 = vmatprep.subr.mxu1 %v5278_v0 }
  0x6e   :  { %4436 = vmatprep.subr.mxu0 %v5278_v0  ;;  %4426 = vmatpush3.msra.mxu1 %v5447_v8 }
  0x6f   :  { %4437 = vmatpush3.msra.mxu0 %v5462_v11  ;;  %4427 = vmatprep.subr.mxu1 %v5278_v0 }
  0x70   :  { %4438 = vmatprep.subr.mxu0 %v5278_v0  ;;  %4428 = vmatpush3.msra.mxu1 %v5458_v10 }
  0x71   :  { %4439 = vmatpush3.msra.mxu0 %v5468_v12  ;;  %4429 = vmatprep.mubr.msk.f32.mxu1 %vm5279_vm0, %v5278_v0 }
  0x72   :  { %4454 = vmatprep.subr.mxu0 %v5278_v0  ;;  %4443 = vmatprep.subr.mxu1 %v5278_v0 }
 0x122   :  { %v233_v20 = vpop.f32.mrf.mxu0 }
 0x123   :  { %v234_v21 = vadd.f32 %v233_v20, %v153_v18 }
 0x124   :  { %v235_v22 = vpop.f32.mrf.mxu0  ;;  %v327_v28 = vpop.f32.mrf.mxu1 }
 0x125   :  { %244 = vst [vmem:[#allocation2 + $0x10] sm:$0xff] %v234_v21  ;;  %v236_v23 = vadd.f32 %v235_v22, %v157_v19 }
 0x126   :  { %v239_v24 = vpop.f32.mrf.mxu0  ;;  %v4409_v29 = vpop.f32.mrf.mxu1 }
 0x127   :  { %245 = vst [vmem:[#allocation2] sm:$0xff] %v236_v23  ;;  %v240_v25 = vadd.f32 %v239_v24, %v153_v18 }
 0x128   :  { %v241_v26 = vpop.f32.mrf.mxu0 }
 0x129   :  { %246 = vst [vmem:[#allocation2 + $0x18] sm:$0xff] %v240_v25  ;;  %v242_v27 = vadd.f32 %v241_v26, %v157_v19 }
 0x12a   :  { %v429_v30 = vpop.f32.mrf.mxu0 }
 0x12b   :  { %247 = vst [vmem:[#allocation2 + $0x8] sm:$0xff] %v242_v27  ;;  %v434_v32 = vrot.slane %v429_v30, 2 }
 0x12c   :  { %v4420_v31 = vpop.f32.mrf.mxu0  ;;  %v256_v39 = vld [vmem:[#allocation2 + $0x10] sm:$0x3] }
 0x12d   :  { %v331_v40 = vadd.f32 %v327_v28, %v256_v39 }
 0x12f   :  { %v4155_v49 = vmul.f32 -1.442695, %v331_v40 }
 0x132   :  { %v362_v33 = vld [vmem:[#allocation2 + $0x8] sm:$0xc0]  ;;  %v577_v7 = vld [vmem:[#allocation2 + $0x8] sm:$0x30] }
 0x133   :  { %v436_v34 = vadd.f32 %v434_v32, %v362_v33  ;;  %v467_v32 = vld [vmem:[#allocation2 + $0x10] sm:$0xc] }
 0x135   :  { %4807 = vtanh.f32 %v436_v34  ;;  %v4156_v36 = vmul.f32 -1.442695, %v436_v34 }
 0x137   :  { %4809 = vpow2.f32 %v4156_v36 }
 0x142   :  { %v4808_v35 = vpop.eup %4807 }
 0x143   :  { %446 = vrot.lane.b32.xlu0 %v4808_v35, %s5280_s2 }
 0x144   :  { %v4810_v37 = vpop.eup %4809 }
 0x145   :  { %v440_v38 = vadd.f32 1.0, %v4810_v37 }
 0x147   :  { %4811 = vrcp.f32 %v440_v38 }
 0x148   :  { %4813 = vtanh.f32 %v331_v40 }
 0x154   :  { %v4812_v41 = vpop.eup %4811 }
 0x155   :  { %v4814_v44 = vpop.eup %4813  ;;  %v444_v45 = vmul.f32 0.0, %v4812_v41 }
 0x1b5   :  { %v447_v42 = vpop.permute.xlu0 %446 }
 0x1b6   :  { %v449_v43 = vmul.f32 %v4812_v41, %v447_v42 }
 0x1b8   :  { %451 = vrot.lane.b32.xlu0 %v449_v43, %s5281_s29 }
 0x1bc   :  { %341 = vrot.lane.b32.xlu0 %v4814_v44, %s5280_s2 }
 0x22a   :  { %v452_v46 = vpop.permute.xlu0 %451 }
 0x22b   :  { %v5513_v47 = vadd.f32 %v452_v46, %v444_v45 }
 0x22d   :  { %4815 = vtanh.f32 %v5513_v47  ;;  %v665_v26 = vrot.slane %v5513_v47, 2 }
 0x22e   :  { %4817 = vpow2.f32 %v4155_v49  ;;  %v342_v55 = vpop.permute.xlu0 %341 }
 0x23a   :  { %v4816_v48 = vpop.eup %4815 }
 0x23b   :  { %457 = vrot.lane.b32.xlu1 %v4816_v48, %s5280_s2  ;;  %v4818_v50 = vpop.eup %4817 }
 0x23c   :  { %v335_v51 = vadd.f32 1.0, %v4818_v50 }
 0x23e   :  { %4819 = vrcp.f32 %v335_v51 }
 0x24b   :  { %v4820_v56 = vpop.eup %4819 }
 0x24c   :  { %v344_v57 = vmul.f32 %v4820_v56, %v342_v55  ;;  %v339_v59 = vmul.f32 0.0, %v4820_v56 }
 0x2ad   :  { %v458_v52 = vpop.permute.xlu1 %457 }
 0x2ae   :  { %v5517_v53 = vmul.f32 %v4812_v41, %v458_v52 }
 0x2b0   :  { %v578_v54 = vrot.slane %v5517_v53, 6 }
 0x2b2   :  { %579 = vrot.lane.b32.xlu1 %v578_v54, %s5281_s29 }
 0x2b6   :  { %346 = vrot.lane.b32.xlu1 %v344_v57, %s5281_s29 }
 0x324   :  { %v580_v58 = vpop.permute.xlu1 %579 }
 0x325   :  { %4441 = vmatmul.mubr.msk.f32.vlgmr.msra.gmra.mxu0 %vm257_vm2, %v580_v58  ;;  %v803_v58 = vld [vmem:[#allocation2 + $0x8] sm:$0xc] }
 0x326   :  { %4455 = vmatpush3.msra.mxu0 %v5435_v6  ;;  %4462 = vmatprep.mubr.msk.f32.mxu0 %vm5279_vm0, %v5278_v0 }
 0x327   :  { %4456 = vmatprep.subr.mxu0 %v5278_v0 }
 0x328   :  { %v347_v60 = vpop.permute.xlu1 %346  ;;  %4457 = vmatpush3.msra.mxu0 %v5451_v9 }
 0x329   :  { %v5528_v61 = vadd.f32 %v347_v60, %v339_v59  ;;  %4458 = vmatprep.subr.mxu0 %v5278_v0 }
 0x32a   :  { %4459 = vmatpush3.msra.mxu0 %v5462_v11 }
 0x32b   :  { %4821 = vtanh.f32 %v5528_v61  ;;  %4460 = vmatprep.subr.mxu0 %v5278_v0  ;;  %v552_v47 = vrot.slane %v5528_v61, 6 }
 0x32c   :  { %4461 = vmatpush3.msra.mxu0 %v5468_v12 }
 0x32d   :  { %4476 = vmatprep.subr.mxu0 %v5278_v0 }
 0x338   :  { %v4822_v62 = vpop.eup %4821 }
 0x339   :  { %352 = vrot.lane.b32.xlu1 %v4822_v62, %s5280_s2 }
 0x3ab   :  { %v353_v63 = vpop.permute.xlu1 %352 }
 0x3ac   :  { %v355_v1 = vmul.f32 %v4820_v56, %v353_v63 }
 0x3ae   :  { %357 = vrot.lane.b32.xlu1 %v355_v1, %s5281_s29 }
 0x3e5   :  { %v649_v2 = vpop.f32.mrf.mxu0 }
 0x3e6   :  { %v654_v3 = vrot.slane %v649_v2, 4 }
 0x3e7   :  { %v4442_v13 = vpop.f32.mrf.mxu0 }
 0x3e8   :  { %v656_v16 = vadd.f32 %v654_v3, %v577_v7 }
 0x3ea   :  { %4823 = vtanh.f32 %v656_v16  ;;  %v4160_v20 = vmul.f32 -1.442695, %v656_v16 }
 0x3ec   :  { %4825 = vpow2.f32 %v4160_v20 }
 0x3f7   :  { %v4824_v18 = vpop.eup %4823 }
 0x3f8   :  { %669 = vrot.lane.b32.xlu0 %v4824_v18, %s5280_s2 }
 0x3f9   :  { %v4826_v21 = vpop.eup %4825 }
 0x3fa   :  { %v660_v22 = vadd.f32 1.0, %v4826_v21 }
 0x3fc   :  { %4827 = vrcp.f32 %v660_v22 }
 0x409   :  { %v4828_v23 = vpop.eup %4827 }
 0x40a   :  { %v667_v27 = vmul.f32 %v4828_v23, %v665_v26 }
 0x420   :  { %v358_v19 = vpop.permute.xlu1 %357 }
 0x421   :  { %361 = vst.msk [vmem:[#allocation3] sm:$0x3] %vm360_vm3, %v358_v19  ;;  %4430 = vmatmul.mubr.msk.f32.vlgmr.msra.gmra.mxu1 %vm257_vm2, %v358_v19 }
 0x422   :  { %4444 = vmatpush3.msra.mxu1 %v5427_v4  ;;  %4451 = vmatprep.mubr.msk.f32.mxu1 %vm5279_vm0, %v5278_v0 }
 0x423   :  { %4445 = vmatprep.subr.mxu1 %v5278_v0 }
 0x424   :  { %4446 = vmatpush3.msra.mxu1 %v5433_v5 }
 0x425   :  { %4447 = vmatprep.subr.mxu1 %v5278_v0 }
 0x426   :  { %4448 = vmatpush3.msra.mxu1 %v5447_v8 }
 0x427   :  { %4449 = vmatprep.subr.mxu1 %v5278_v0 }
 0x428   :  { %4450 = vmatpush3.msra.mxu1 %v5458_v10 }
 0x429   :  { %4465 = vmatprep.subr.mxu1 %v5278_v0 }
 0x46a   :  { %v670_v24 = vpop.permute.xlu0 %669 }
 0x46b   :  { %v672_v25 = vmul.f32 %v4828_v23, %v670_v24 }
 0x46d   :  { %674 = vrot.lane.b32.xlu0 %v672_v25, %s5281_s29 }
 0x4df   :  { %v675_v28 = vpop.permute.xlu0 %674 }
 0x4e0   :  { %v5553_v29 = vadd.f32 %v675_v28, %v667_v27 }
 0x4e1   :  { %v536_v30 = vpop.f32.mrf.mxu1 }
 0x4e2   :  { %4829 = vtanh.f32 %v5553_v29  ;;  %v541_v31 = vrot.slane %v536_v30, 6  ;;  %v891_v16 = vrot.slane %v5553_v29, 2 }
 0x4e3   :  { %v4431_v33 = vpop.f32.mrf.mxu1 }
 0x4e4   :  { %v543_v34 = vadd.f32 %v541_v31, %v467_v32 }
 0x4e6   :  { %4831 = vtanh.f32 %v543_v34  ;;  %v4158_v37 = vmul.f32 -1.442695, %v543_v34 }
 0x4e8   :  { %4833 = vpow2.f32 %v4158_v37 }
 0x4ef   :  { %v4830_v35 = vpop.eup %4829 }
 0x4f0   :  { %680 = vrot.lane.b32.xlu0 %v4830_v35, %s5280_s2 }
 0x4f3   :  { %v4832_v36 = vpop.eup %4831 }
 0x4f4   :  { %556 = vrot.lane.b32.xlu0 %v4832_v36, %s5280_s2 }
 0x4f5   :  { %v4834_v38 = vpop.eup %4833 }
 0x4f6   :  { %v547_v39 = vadd.f32 1.0, %v4834_v38 }
 0x4f8   :  { %4835 = vrcp.f32 %v547_v39 }
 0x505   :  { %v4836_v44 = vpop.eup %4835 }
 0x506   :  { %v554_v48 = vmul.f32 %v4836_v44, %v552_v47  ;;  %v1029_v47 = vld [vmem:[#allocation2 + $0x8] sm:$0x3] }
 0x562   :  { %v681_v40 = vpop.permute.xlu0 %680 }
 0x563   :  { %v5558_v41 = vmul.f32 %v4828_v23, %v681_v40  ;;  %v690_v23 = vld [vmem:[#allocation2 + $0x10] sm:$0x30] }
 0x565   :  { %v804_v42 = vrot.slane %v5558_v41, 4 }
 0x566   :  { %v557_v43 = vpop.permute.xlu0 %556 }
 0x567   :  { %805 = vrot.lane.b32.xlu1 %v804_v42, %s5281_s29  ;;  %v559_v45 = vmul.f32 %v4836_v44, %v557_v43 }
 0x56b   :  { %561 = vrot.lane.b32.xlu1 %v559_v45, %s5281_s29 }
 0x5d9   :  { %v806_v46 = vpop.permute.xlu1 %805 }
 0x5da   :  { %4463 = vmatmul.mubr.msk.f32.vlgmr.msra.gmra.mxu0 %vm257_vm2, %v806_v46 }
 0x5db   :  { %4477 = vmatpush3.msra.mxu0 %v5435_v6  ;;  %4484 = vmatprep.mubr.msk.f32.mxu0 %vm5279_vm0, %v5278_v0 }
 0x5dc   :  { %4478 = vmatprep.subr.mxu0 %v5278_v0 }
 0x5dd   :  { %v562_v49 = vpop.permute.xlu1 %561  ;;  %4479 = vmatpush3.msra.mxu0 %v5451_v9 }
 0x5de   :  { %v5570_v50 = vadd.f32 %v562_v49, %v554_v48  ;;  %4480 = vmatprep.subr.mxu0 %v5278_v0 }
 0x5df   :  { %4481 = vmatpush3.msra.mxu0 %v5462_v11 }
 0x5e0   :  { %4837 = vtanh.f32 %v5570_v50  ;;  %4482 = vmatprep.subr.mxu0 %v5278_v0  ;;  %v778_v38 = vrot.slane %v5570_v50, 6 }
 0x5e1   :  { %4483 = vmatpush3.msra.mxu0 %v5468_v12 }
 0x5e2   :  { %4498 = vmatprep.subr.mxu0 %v5278_v0 }
 0x5ed   :  { %v4838_v51 = vpop.eup %4837 }
 0x5ee   :  { %567 = vrot.lane.b32.xlu1 %v4838_v51, %s5280_s2 }
 0x660   :  { %v568_v52 = vpop.permute.xlu1 %567 }
 0x661   :  { %v5579_v54 = vmul.f32 %v4836_v44, %v568_v52 }
 0x663   :  { %v691_v55 = vrot.slane %v5579_v54, 2 }
 0x665   :  { %692 = vrot.lane.b32.xlu1 %v691_v55, %s5281_s29 }
 0x69a   :  { %v875_v56 = vpop.f32.mrf.mxu0 }
 0x69b   :  { %v880_v57 = vrot.slane %v875_v56, 6 }
 0x69c   :  { %v4464_v59 = vpop.f32.mrf.mxu0 }
 0x69d   :  { %v882_v60 = vadd.f32 %v880_v57, %v803_v58 }
 0x69f   :  { %4839 = vtanh.f32 %v882_v60  ;;  %v4164_v63 = vmul.f32 -1.442695, %v882_v60 }
 0x6a1   :  { %4841 = vpow2.f32 %v4164_v63 }
 0x6ac   :  { %v4840_v61 = vpop.eup %4839 }
 0x6ad   :  { %895 = vrot.lane.b32.xlu0 %v4840_v61, %s5280_s2 }
 0x6ae   :  { %v4842_v1 = vpop.eup %4841 }
 0x6af   :  { %v886_v2 = vadd.f32 1.0, %v4842_v1 }
 0x6b1   :  { %4843 = vrcp.f32 %v886_v2 }
 0x6be   :  { %v4844_v3 = vpop.eup %4843 }
 0x6bf   :  { %v893_v18 = vmul.f32 %v4844_v3, %v891_v16 }
 0x6d7   :  { %v693_v62 = vpop.permute.xlu1 %692 }
 0x6d8   :  { %4452 = vmatmul.mubr.msk.f32.vlgmr.msra.gmra.mxu1 %vm257_vm2, %v693_v62 }
 0x6d9   :  { %4466 = vmatpush3.msra.mxu1 %v5427_v4  ;;  %4473 = vmatprep.mubr.msk.f32.mxu1 %vm5279_vm0, %v5278_v0 }
 0x6da   :  { %4467 = vmatprep.subr.mxu1 %v5278_v0 }
 0x6db   :  { %4468 = vmatpush3.msra.mxu1 %v5433_v5 }
 0x6dc   :  { %4469 = vmatprep.subr.mxu1 %v5278_v0 }
 0x6dd   :  { %4470 = vmatpush3.msra.mxu1 %v5447_v8 }
 0x6de   :  { %4471 = vmatprep.subr.mxu1 %v5278_v0 }
 0x6df   :  { %4472 = vmatpush3.msra.mxu1 %v5458_v10 }
 0x6e0   :  { %4487 = vmatprep.subr.mxu1 %v5278_v0 }
 0x71f   :  { %v896_v7 = vpop.permute.xlu0 %895 }
 0x720   :  { %v898_v13 = vmul.f32 %v4844_v3, %v896_v7  ;;  %v916_v7 = vld [vmem:[#allocation2 + $0x10] sm:$0xc0] }
 0x722   :  { %900 = vrot.lane.b32.xlu0 %v898_v13, %s5281_s29 }
 0x794   :  { %v901_v19 = vpop.permute.xlu0 %900 }
 0x795   :  { %v5597_v20 = vadd.f32 %v901_v19, %v893_v18 }
 0x797   :  { %4845 = vtanh.f32 %v5597_v20  ;;  %v1114_v61 = vrot.slane %v5597_v20, 2 }
 0x798   :  { %v762_v21 = vpop.f32.mrf.mxu1 }
 0x799   :  { %v767_v22 = vrot.slane %v762_v21, 4 }
 0x79a   :  { %v4453_v24 = vpop.f32.mrf.mxu1 }
 0x79b   :  { %v769_v25 = vadd.f32 %v767_v22, %v690_v23 }
 0x79d   :  { %4847 = vtanh.f32 %v769_v25  ;;  %v4162_v28 = vmul.f32 -1.442695, %v769_v25 }
 0x79f   :  { %4849 = vpow2.f32 %v4162_v28 }
 0x7a4   :  { %v4846_v26 = vpop.eup %4845 }
 0x7a5   :  { %906 = vrot.lane.b32.xlu0 %v4846_v26, %s5280_s2 }
 0x7aa   :  { %v4848_v27 = vpop.eup %4847 }
 0x7ab   :  { %782 = vrot.lane.b32.xlu0 %v4848_v27, %s5280_s2 }
 0x7ac   :  { %v4850_v29 = vpop.eup %4849 }
 0x7ad   :  { %v773_v30 = vadd.f32 1.0, %v4850_v29 }
 0x7af   :  { %4851 = vrcp.f32 %v773_v30 }
 0x7bc   :  { %v4852_v34 = vpop.eup %4851 }
 0x7bd   :  { %v780_v39 = vmul.f32 %v4852_v34, %v778_v38 }
 0x817   :  { %v907_v31 = vpop.permute.xlu0 %906 }
 0x818   :  { %v5602_v32 = vmul.f32 %v4844_v3, %v907_v31 }
 0x81a   :  { %v1030_v33 = vrot.slane %v5602_v32, 2 }
 0x81c   :  { %1031 = vrot.lane.b32.xlu1 %v1030_v33, %s5281_s29 }
 0x81d   :  { %v783_v35 = vpop.permute.xlu0 %782 }
 0x81e   :  { %v785_v36 = vmul.f32 %v4852_v34, %v783_v35 }
 0x820   :  { %787 = vrot.lane.b32.xlu1 %v785_v36, %s5281_s29 }
 0x88e   :  { %v1032_v37 = vpop.permute.xlu1 %1031 }
 0x88f   :  { %4485 = vmatmul.mubr.msk.f32.vlgmr.msra.gmra.mxu0 %vm257_vm2, %v1032_v37 }
 0x890   :  { %4499 = vmatpush3.msra.mxu0 %v5435_v6  ;;  %4506 = vmatprep.mubr.msk.f32.mxu0 %vm5279_vm0, %v5278_v0 }
 0x891   :  { %4500 = vmatprep.subr.mxu0 %v5278_v0 }
 0x892   :  { %v788_v40 = vpop.permute.xlu1 %787  ;;  %4501 = vmatpush3.msra.mxu0 %v5451_v9 }
 0x893   :  { %v5614_v42 = vadd.f32 %v788_v40, %v780_v39  ;;  %4502 = vmatprep.subr.mxu0 %v5278_v0  ;;  %v1248_v40 = vld [vmem:[#allocation2] sm:$0xc0] }
 0x894   :  { %4503 = vmatpush3.msra.mxu0 %v5462_v11 }
 0x895   :  { %4853 = vtanh.f32 %v5614_v42  ;;  %4504 = vmatprep.subr.mxu0 %v5278_v0  ;;  %v1004_v29 = vrot.slane %v5614_v42, 6 }
 0x896   :  { %4505 = vmatpush3.msra.mxu0 %v5468_v12 }
 0x897   :  { %4520 = vmatprep.subr.mxu0 %v5278_v0 }
 0x8a2   :  { %v4854_v43 = vpop.eup %4853 }
 0x8a3   :  { %793 = vrot.lane.b32.xlu1 %v4854_v43, %s5280_s2 }
 0x915   :  { %v794_v44 = vpop.permute.xlu1 %793 }
 0x916   :  { %v5623_v45 = vmul.f32 %v4852_v34, %v794_v44 }
 0x918   :  { %v917_v46 = vrot.slane %v5623_v45, 4 }
 0x91a   :  { %918 = vrot.lane.b32.xlu1 %v917_v46, %s5281_s29 }
 0x94f   :  { %v1101_v48 = vpop.f32.mrf.mxu0 }
 0x950   :  { %v1105_v49 = vadd.f32 %v1101_v48, %v1029_v47 }
 0x951   :  { %v4486_v50 = vpop.f32.mrf.mxu0 }
 0x952   :  { %4855 = vtanh.f32 %v1105_v49  ;;  %v4168_v55 = vmul.f32 -1.442695, %v1105_v49 }
 0x954   :  { %4857 = vpow2.f32 %v4168_v55 }
 0x95f   :  { %v4856_v51 = vpop.eup %4855 }
 0x960   :  { %1118 = vrot.lane.b32.xlu0 %v4856_v51, %s5280_s2 }
 0x961   :  { %v4858_v56 = vpop.eup %4857 }
 0x962   :  { %v1109_v57 = vadd.f32 1.0, %v4858_v56 }
 0x964   :  { %4859 = vrcp.f32 %v1109_v57 }
 0x971   :  { %v4860_v58 = vpop.eup %4859 }
 0x972   :  { %v1116_v62 = vmul.f32 %v4860_v58, %v1114_v61 }
 0x98c   :  { %v919_v52 = vpop.permute.xlu1 %918 }
 0x98d   :  { %4474 = vmatmul.mubr.msk.f32.vlgmr.msra.gmra.mxu1 %vm257_vm2, %v919_v52 }
 0x98e   :  { %4488 = vmatpush3.msra.mxu1 %v5427_v4  ;;  %4495 = vmatprep.mubr.msk.f32.mxu1 %vm5279_vm0, %v5278_v0 }
 0x98f   :  { %4489 = vmatprep.subr.mxu1 %v5278_v0 }
 0x990   :  { %4490 = vmatpush3.msra.mxu1 %v5433_v5 }
 0x991   :  { %4491 = vmatprep.subr.mxu1 %v5278_v0 }
 0x992   :  { %4492 = vmatpush3.msra.mxu1 %v5447_v8 }
 0x993   :  { %4493 = vmatprep.subr.mxu1 %v5278_v0 }
 0x994   :  { %4494 = vmatpush3.msra.mxu1 %v5458_v10 }
 0x995   :  { %4509 = vmatprep.subr.mxu1 %v5278_v0 }
 0x9d2   :  { %v1119_v59 = vpop.permute.xlu0 %1118 }
 0x9d3   :  { %v1121_v60 = vmul.f32 %v4860_v58, %v1119_v59  ;;  %v1139_v59 = vld [vmem:[#allocation2 + $0x18] sm:$0x3] }
 0x9d5   :  { %1123 = vrot.lane.b32.xlu0 %v1121_v60, %s5281_s29 }
 0xa47   :  { %v1124_v63 = vpop.permute.xlu0 %1123 }
 0xa48   :  { %v5641_v1 = vadd.f32 %v1124_v63, %v1116_v62 }
 0xa4a   :  { %4861 = vtanh.f32 %v5641_v1  ;;  %v1335_v55 = vrot.slane %v5641_v1, 2 }
 0xa4d   :  { %v988_v2 = vpop.f32.mrf.mxu1 }
 0xa4e   :  { %v993_v3 = vrot.slane %v988_v2, 2 }
 0xa4f   :  { %v4475_v13 = vpop.f32.mrf.mxu1 }
 0xa50   :  { %v995_v16 = vadd.f32 %v993_v3, %v916_v7 }
 0xa52   :  { %4863 = vtanh.f32 %v995_v16  ;;  %v4166_v21 = vmul.f32 -1.442695, %v995_v16 }
 0xa54   :  { %4865 = vpow2.f32 %v4166_v21 }
 0xa57   :  { %v4862_v18 = vpop.eup %4861 }
 0xa58   :  { %1129 = vrot.lane.b32.xlu0 %v4862_v18, %s5280_s2 }
 0xa5f   :  { %v4864_v19 = vpop.eup %4863 }
 0xa60   :  { %1008 = vrot.lane.b32.xlu0 %v4864_v19, %s5280_s2 }
 0xa61   :  { %v4866_v20 = vpop.eup %4865 }
 0xa62   :  { %v999_v22 = vadd.f32 1.0, %v4866_v20 }
 0xa64   :  { %4867 = vrcp.f32 %v999_v22 }
 0xa71   :  { %v4868_v25 = vpop.eup %4867 }
 0xa72   :  { %v1006_v30 = vmul.f32 %v4868_v25, %v1004_v29 }
 0xaca   :  { %v1130_v23 = vpop.permute.xlu0 %1129 }
 0xacb   :  { %v5646_v24 = vmul.f32 %v4860_v58, %v1130_v23 }
 0xacd   :  { %1249 = vrot.lane.b32.xlu1 %v5646_v24, %s5281_s29 }
 0xad2   :  { %v1009_v26 = vpop.permute.xlu0 %1008 }
 0xad3   :  { %v1011_v27 = vmul.f32 %v4868_v25, %v1009_v26 }
 0xad5   :  { %1013 = vrot.lane.b32.xlu1 %v1011_v27, %s5281_s29 }
 0xb3f   :  { %v1250_v28 = vpop.permute.xlu1 %1249 }
 0xb40   :  { %4507 = vmatmul.mubr.msk.f32.vlgmr.msra.gmra.mxu0 %vm257_vm2, %v1250_v28 }
 0xb41   :  { %4521 = vmatpush3.msra.mxu0 %v5435_v6  ;;  %4528 = vmatprep.mubr.msk.f32.mxu0 %vm5279_vm0, %v5278_v0 }
 0xb42   :  { %4522 = vmatprep.subr.mxu0 %v5278_v0 }
 0xb43   :  { %4523 = vmatpush3.msra.mxu0 %v5451_v9 }
 0xb44   :  { %4524 = vmatprep.subr.mxu0 %v5278_v0 }
 0xb45   :  { %4525 = vmatpush3.msra.mxu0 %v5462_v11 }
 0xb46   :  { %4526 = vmatprep.subr.mxu0 %v5278_v0 }
 0xb47   :  { %v1014_v31 = vpop.permute.xlu1 %1013  ;;  %4527 = vmatpush3.msra.mxu0 %v5468_v12 }
 0xb48   :  { %v5662_v33 = vadd.f32 %v1014_v31, %v1006_v30  ;;  %4542 = vmatprep.subr.mxu0 %v5278_v0 }
 0xb4a   :  { %4869 = vtanh.f32 %v5662_v33  ;;  %v1224_v23 = vrot.slane %v5662_v33, 6 }
 0xb57   :  { %v4870_v34 = vpop.eup %4869 }
 0xb58   :  { %1019 = vrot.lane.b32.xlu1 %v4870_v34, %s5280_s2  ;;  %v1468_v34 = vld [vmem:[#allocation2] sm:$0x30] }
 0xbca   :  { %v1020_v35 = vpop.permute.xlu1 %1019 }
 0xbcb   :  { %v5667_v36 = vmul.f32 %v4868_v25, %v1020_v35 }
 0xbcd   :  { %v1140_v37 = vrot.slane %v5667_v36, 6 }
 0xbcf   :  { %1141 = vrot.lane.b32.xlu1 %v1140_v37, %s5281_s29 }
 0xc00   :  { %v1319_v38 = vpop.f32.mrf.mxu0 }
 0xc01   :  { %v1324_v39 = vrot.slane %v1319_v38, 2 }
 0xc02   :  { %v4508_v42 = vpop.f32.mrf.mxu0 }
 0xc03   :  { %v1326_v43 = vadd.f32 %v1324_v39, %v1248_v40 }
 0xc05   :  { %4871 = vtanh.f32 %v1326_v43  ;;  %v4172_v47 = vmul.f32 -1.442695, %v1326_v43 }
 0xc07   :  { %4873 = vpow2.f32 %v4172_v47 }
 0xc12   :  { %v4872_v44 = vpop.eup %4871 }
 0xc13   :  { %1339 = vrot.lane.b32.xlu0 %v4872_v44, %s5280_s2 }
 0xc14   :  { %v4874_v48 = vpop.eup %4873 }
 0xc15   :  { %v1330_v49 = vadd.f32 1.0, %v4874_v48 }
 0xc17   :  { %4875 = vrcp.f32 %v1330_v49 }
 0xc24   :  { %v4876_v50 = vpop.eup %4875 }
 0xc25   :  { %v1337_v56 = vmul.f32 %v4876_v50, %v1335_v55 }
 0xc41   :  { %v1142_v46 = vpop.permute.xlu1 %1141 }
 0xc42   :  { %4496 = vmatmul.mubr.msk.f32.vlgmr.msra.gmra.mxu1 %vm257_vm2, %v1142_v46 }
 0xc43   :  { %4510 = vmatpush3.msra.mxu1 %v5427_v4  ;;  %4517 = vmatprep.mubr.msk.f32.mxu1 %vm5279_vm0, %v5278_v0 }
 0xc44   :  { %4511 = vmatprep.subr.mxu1 %v5278_v0 }
 0xc45   :  { %4512 = vmatpush3.msra.mxu1 %v5433_v5 }
 0xc46   :  { %4513 = vmatprep.subr.mxu1 %v5278_v0 }
 0xc47   :  { %4514 = vmatpush3.msra.mxu1 %v5447_v8 }
 0xc48   :  { %4515 = vmatprep.subr.mxu1 %v5278_v0 }
 0xc49   :  { %4516 = vmatpush3.msra.mxu1 %v5458_v10 }
 0xc4a   :  { %4531 = vmatprep.subr.mxu1 %v5278_v0 }
 0xc85   :  { %v1340_v51 = vpop.permute.xlu0 %1339 }
 0xc86   :  { %v1342_v52 = vmul.f32 %v4876_v50, %v1340_v51 }
 0xc88   :  { %1344 = vrot.lane.b32.xlu0 %v1342_v52, %s5281_s29 }
 0xcfa   :  { %v1345_v57 = vpop.permute.xlu0 %1344 }
 0xcfb   :  { %v5685_v58 = vadd.f32 %v1345_v57, %v1337_v56 }
 0xcfd   :  { %4877 = vtanh.f32 %v5685_v58 }
 0xd02   :  { %v1211_v60 = vpop.f32.mrf.mxu1 }
 0xd03   :  { %v1215_v61 = vadd.f32 %v1211_v60, %v1139_v59 }
 0xd04   :  { %v4497_v62 = vpop.f32.mrf.mxu1 }
 0xd05   :  { %4879 = vtanh.f32 %v1215_v61  ;;  %v4170_v3 = vmul.f32 -1.442695, %v1215_v61 }
 0xd07   :  { %4881 = vpow2.f32 %v4170_v3 }
 0xd0a   :  { %v4878_v63 = vpop.eup %4877 }
 0xd0b   :  { %1350 = vrot.lane.b32.xlu0 %v4878_v63, %s5280_s2 }
 0xd12   :  { %v4880_v2 = vpop.eup %4879 }
 0xd13   :  { %1228 = vrot.lane.b32.xlu0 %v4880_v2, %s5280_s2 }
 0xd14   :  { %v4882_v1 = vpop.eup %4881 }
 0xd15   :  { %v1219_v7 = vadd.f32 1.0, %v4882_v1 }
 0xd17   :  { %4883 = vrcp.f32 %v1219_v7 }
 0xd24   :  { %v4884_v19 = vpop.eup %4883 }
 0xd25   :  { %v1226_v25 = vmul.f32 %v4884_v19, %v1224_v23  ;;  %v1692_v23 = vld [vmem:[#allocation2] sm:$0xc] }
 0xd7d   :  { %v1351_v13 = vpop.permute.xlu0 %1350 }
 0xd7e   :  { %v5690_v16 = vmul.f32 %v4876_v50, %v1351_v13  ;;  %v1359_v50 = vld [vmem:[#allocation2 + $0x18] sm:$0xc] }
 0xd80   :  { %v1469_v18 = vrot.slane %v5690_v16, 6 }
 0xd82   :  { %1470 = vrot.lane.b32.xlu1 %v1469_v18, %s5281_s29 }
 0xd85   :  { %v1229_v21 = vpop.permute.xlu0 %1228 }
 0xd86   :  { %v1231_v20 = vmul.f32 %v4884_v19, %v1229_v21 }
 0xd88   :  { %1233 = vrot.lane.b32.xlu1 %v1231_v20, %s5281_s29 }
 0xdf4   :  { %v1471_v22 = vpop.permute.xlu1 %1470 }
 0xdf5   :  { %4529 = vmatmul.mubr.msk.f32.vlgmr.msra.gmra.mxu0 %vm257_vm2, %v1471_v22 }
 0xdf6   :  { %4543 = vmatpush3.msra.mxu0 %v5435_v6  ;;  %4550 = vmatprep.mubr.msk.f32.mxu0 %vm5279_vm0, %v5278_v0 }
 0xdf7   :  { %4544 = vmatprep.subr.mxu0 %v5278_v0 }
 0xdf8   :  { %4545 = vmatpush3.msra.mxu0 %v5451_v9 }
 0xdf9   :  { %4546 = vmatprep.subr.mxu0 %v5278_v0 }
 0xdfa   :  { %v1234_v26 = vpop.permute.xlu1 %1233  ;;  %4547 = vmatpush3.msra.mxu0 %v5462_v11 }
 0xdfb   :  { %v5704_v27 = vadd.f32 %v1234_v26, %v1226_v25  ;;  %4548 = vmatprep.subr.mxu0 %v5278_v0 }
 0xdfc   :  { %4549 = vmatpush3.msra.mxu0 %v5468_v12 }
 0xdfd   :  { %4885 = vtanh.f32 %v5704_v27  ;;  %4564 = vmatprep.subr.mxu0 %v5278_v0  ;;  %v1444_v7 = vrot.slane %v5704_v27, 6 }
 0xe0a   :  { %v4886_v28 = vpop.eup %4885 }
 0xe0b   :  { %1239 = vrot.lane.b32.xlu1 %v4886_v28, %s5280_s2  ;;  %v5067_v28 = vld [vmem:[%s6383_s3 + $0x18] sm:$0xff] }
 0xe7d   :  { %v1240_v29 = vpop.permute.xlu1 %1239 }
 0xe7e   :  { %v1242_v30 = vmul.f32 %v4884_v19, %v1240_v29  ;;  %v5068_v29 = vld [vmem:[%s6383_s3 + $0x10] sm:$0xff] }
 0xe80   :  { %1244 = vrot.lane.b32.xlu1 %v1242_v30, %s5281_s29  ;;  %v5069_v30 = vld [vmem:[%s6383_s3 + $0x8] sm:$0xff] }
 0xeb5   :  { %v1540_v31 = vpop.f32.mrf.mxu0 }
 0xeb6   :  { %v1545_v33 = vrot.slane %v1540_v31, 4  ;;  %v5070_v31 = vld [vmem:[%s6383_s3] sm:$0xff] }
 0xeb7   :  { %v4530_v35 = vpop.f32.mrf.mxu0 }
 0xeb8   :  { %v1547_v37 = vadd.f32 %v1545_v33, %v1468_v34 }
 0xeba   :  { %4887 = vtanh.f32 %v1547_v37  ;;  %v4176_v40 = vmul.f32 -1.442695, %v1547_v37 }
 0xebc   :  { %4889 = vpow2.f32 %v4176_v40 }
 0xec7   :  { %v4888_v38 = vpop.eup %4887 }
 0xec8   :  { %1560 = vrot.lane.b32.xlu0 %v4888_v38, %s5280_s2 }
 0xef2   :  { %v5713_v39 = vpop.permute.xlu1 %1244 }
 0xef3   :  { %4518 = vmatmul.mubr.msk.f32.vlgmr.msra.gmra.mxu1 %vm257_vm2, %v5713_v39 }
 0xef4   :  { %4532 = vmatpush3.msra.mxu1 %v5427_v4  ;;  %4539 = vmatprep.mubr.msk.f32.mxu1 %vm5279_vm0, %v5278_v0  ;;  %v4890_v4 = vpop.eup %4889 }
 0xef5   :  { %4533 = vmatprep.subr.mxu1 %v5278_v0  ;;  %v1551_v42 = vadd.f32 1.0, %v4890_v4 }
 0xef6   :  { %4534 = vmatpush3.msra.mxu1 %v5433_v5  ;;  %v1556_v5 = vrot.slane %v5685_v58, 2 }
 0xef7   :  { %4535 = vmatprep.subr.mxu1 %v5278_v0  ;;  %4891 = vrcp.f32 %v1551_v42 }
 0xef8   :  { %4536 = vmatpush3.msra.mxu1 %v5447_v8 }
 0xef9   :  { %4537 = vmatprep.subr.mxu1 %v5278_v0 }
 0xefa   :  { %4538 = vmatpush3.msra.mxu1 %v5458_v10 }
 0xefb   :  { %4553 = vmatprep.subr.mxu1 %v5278_v0 }
 0xf04   :  { %v4892_v43 = vpop.eup %4891 }
 0xf05   :  { %v1558_v47 = vmul.f32 %v4892_v43, %v1556_v5 }
 0xf3a   :  { %v1561_v44 = vpop.permute.xlu0 %1560 }
 0xf3b   :  { %v1563_v46 = vmul.f32 %v4892_v43, %v1561_v44 }
 0xf3d   :  { %1565 = vrot.lane.b32.xlu0 %v1563_v46, %s5281_s29 }
 0xfaf   :  { %v1566_v8 = vpop.permute.xlu0 %1565 }
 0xfb0   :  { %v5729_v48 = vadd.f32 %v1566_v8, %v1558_v47  ;;  %v1580_v47 = vld [vmem:[#allocation2 + $0x18] sm:$0x30] }
 0xfb2   :  { %4893 = vtanh.f32 %v5729_v48  ;;  %v1780_v4 = vrot.slane %v5729_v48, 2 }
 0xfb3   :  { %v1428_v10 = vpop.f32.mrf.mxu1 }
 0xfb4   :  { %v1433_v49 = vrot.slane %v1428_v10, 6 }
 0xfb5   :  { %v4519_v51 = vpop.f32.mrf.mxu1 }
 0xfb6   :  { %v1435_v52 = vadd.f32 %v1433_v49, %v1359_v50 }
 0xfb8   :  { %4895 = vtanh.f32 %v1435_v52  ;;  %v4174_v57 = vmul.f32 -1.442695, %v1435_v52 }
 0xfba   :  { %4897 = vpow2.f32 %v4174_v57 }
 0xfbf   :  { %v4894_v55 = vpop.eup %4893 }
 0xfc0   :  { %1571 = vrot.lane.b32.xlu0 %v4894_v55, %s5280_s2 }
 0xfc5   :  { %v4896_v56 = vpop.eup %4895 }
 0xfc6   :  { %1448 = vrot.lane.b32.xlu0 %v4896_v56, %s5280_s2 }
 0xfc7   :  { %v4898_v58 = vpop.eup %4897 }
 0xfc8   :  { %v1439_v59 = vadd.f32 1.0, %v4898_v58 }
 0xfca   :  { %4899 = vrcp.f32 %v1439_v59 }
 0xfd7   :  { %v4900_v63 = vpop.eup %4899 }
 0xfd8   :  { %v1446_v13 = vmul.f32 %v4900_v63, %v1444_v7 }
0x1032   :  { %v1572_v60 = vpop.permute.xlu0 %1571 }
0x1033   :  { %v5734_v61 = vmul.f32 %v4892_v43, %v1572_v60 }
0x1035   :  { %v1693_v62 = vrot.slane %v5734_v61, 4 }
0x1037   :  { %1694 = vrot.lane.b32.xlu1 %v1693_v62, %s5281_s29 }
0x1038   :  { %v1449_v2 = vpop.permute.xlu0 %1448 }
0x1039   :  { %v1451_v3 = vmul.f32 %v4900_v63, %v1449_v2 }
0x103b   :  { %1453 = vrot.lane.b32.xlu1 %v1451_v3, %s5281_s29 }
0x10a9   :  { %v1695_v1 = vpop.permute.xlu1 %1694 }
0x10aa   :  { %4551 = vmatmul.mubr.msk.f32.vlgmr.msra.gmra.mxu0 %vm257_vm2, %v1695_v1 }
0x10ab   :  { %4565 = vmatpush3.msra.mxu0 %v5435_v6  ;;  %4572 = vmatprep.mubr.msk.f32.mxu0 %vm5279_vm0, %v5278_v0 }
0x10ac   :  { %4566 = vmatprep.subr.mxu0 %v5278_v0 }
0x10ad   :  { %v1454_v18 = vpop.permute.xlu1 %1453  ;;  %4567 = vmatpush3.msra.mxu0 %v5451_v9 }
0x10ae   :  { %v5746_v19 = vadd.f32 %v1454_v18, %v1446_v13  ;;  %4568 = vmatprep.subr.mxu0 %v5278_v0 }
0x10af   :  { %4569 = vmatpush3.msra.mxu0 %v5462_v11 }
0x10b0   :  { %4901 = vtanh.f32 %v5746_v19  ;;  %4570 = vmatprep.subr.mxu0 %v5278_v0 }
0x10b1   :  { %4571 = vmatpush3.msra.mxu0 %v5468_v12 }
0x10b2   :  { %4575 = vmatprep.subr.mxu0 %v5278_v0 }
0x10bd   :  { %v4902_v6 = vpop.eup %4901 }
0x10be   :  { %1459 = vrot.lane.b32.xlu1 %v4902_v6, %s5280_s2 }
0x1130   :  { %v1460_v21 = vpop.permute.xlu1 %1459 }
0x1131   :  { %v5755_v20 = vmul.f32 %v4900_v63, %v1460_v21  ;;  %v1668_v63 = vrot.slane %v5746_v19, 6  ;;  %v1916_v19 = vld [vmem:[#allocation2] sm:$0x3] }
0x1133   :  { %v1581_v9 = vrot.slane %v5755_v20, 2 }
0x1135   :  { %1582 = vrot.lane.b32.xlu1 %v1581_v9, %s5281_s29 }
0x116a   :  { %v1764_v22 = vpop.f32.mrf.mxu0 }
0x116b   :  { %v1769_v11 = vrot.slane %v1764_v22, 6 }
0x116c   :  { %v4552_v25 = vpop.f32.mrf.mxu0 }
0x116d   :  { %v1771_v26 = vadd.f32 %v1769_v11, %v1692_v23 }
0x116f   :  { %4903 = vtanh.f32 %v1771_v26  ;;  %v4180_v33 = vmul.f32 -1.442695, %v1771_v26 }
0x1171   :  { %4905 = vpow2.f32 %v4180_v33 }
0x117c   :  { %v4904_v27 = vpop.eup %4903 }
0x117d   :  { %1784 = vrot.lane.b32.xlu0 %v4904_v27, %s5280_s2 }
0x117e   :  { %v4906_v34 = vpop.eup %4905 }
0x117f   :  { %v1775_v35 = vadd.f32 1.0, %v4906_v34 }
0x1181   :  { %4907 = vrcp.f32 %v1775_v35 }
0x118e   :  { %v4908_v37 = vpop.eup %4907 }
0x118f   :  { %v1782_v42 = vmul.f32 %v4908_v37, %v1780_v4 }
0x11a7   :  { %v1583_v12 = vpop.permute.xlu1 %1582 }
0x11a8   :  { %4540 = vmatmul.mubr.msk.f32.vlgmr.msra.gmra.mxu1 %vm257_vm2, %v1583_v12 }
0x11a9   :  { %4554 = vmatpush3.msra.mxu1 %v5067_v28  ;;  %4561 = vmatprep.mubr.msk.f32.mxu1 %vm5279_vm0, %v5278_v0 }
0x11aa   :  { %4555 = vmatprep.subr.mxu1 %v5278_v0 }
0x11ab   :  { %4556 = vmatpush3.msra.mxu1 %v5068_v29 }
0x11ac   :  { %4557 = vmatprep.subr.mxu1 %v5278_v0 }
0x11ad   :  { %4558 = vmatpush3.msra.mxu1 %v5069_v30 }
0x11ae   :  { %4559 = vmatprep.subr.mxu1 %v5278_v0 }
0x11af   :  { %4560 = vmatpush3.msra.mxu1 %v5070_v31 }
0x11ef   :  { %v1785_v38 = vpop.permute.xlu0 %1784 }
0x11f0   :  { %v1787_v40 = vmul.f32 %v4908_v37, %v1785_v38  ;;  %v1804_v38 = vld [vmem:[#allocation2 + $0x18] sm:$0xc0] }
0x11f2   :  { %1789 = vrot.lane.b32.xlu0 %v1787_v40, %s5281_s29 }
0x1264   :  { %v1790_v43 = vpop.permute.xlu0 %1789 }
0x1265   :  { %v5780_v44 = vadd.f32 %v1790_v43, %v1782_v42  ;;  %v2042_v42 = vld [vmem:[#allocation7 + $0x78] sm:$0xff]  ;;  %v2041_v43 = vld [vmem:[#allocation7 + $0x70] sm:$0xff] }
0x1266   :  { %2078 = vmatprep.subr.mxu1 %v2042_v42 }
0x1267   :  { %4909 = vtanh.f32 %v5780_v44  ;;  %v2001_v29 = vrot.slane %v5780_v44, 2  ;;  %v2040_v44 = vld [vmem:[#allocation7 + $0x68] sm:$0xff] }
0x1268   :  { %v1652_v46 = vpop.f32.mrf.mxu1 }
0x1269   :  { %v1657_v5 = vrot.slane %v1652_v46, 4  ;;  %v2039_v46 = vld [vmem:[#allocation7 + $0x60] sm:$0xff] }
0x126a   :  { %v4541_v8 = vpop.f32.mrf.mxu1 }
0x126b   :  { %v1659_v10 = vadd.f32 %v1657_v5, %v1580_v47  ;;  %v2038_v5 = vld [vmem:[#allocation7 + $0x58] sm:$0xff]  ;;  %v2037_v47 = vld [vmem:[#allocation7 + $0x50] sm:$0xff]  ;;  %v2036_v8 = vld [vmem:[#allocation7 + $0x48] sm:$0xff] }
0x126d   :  { %4911 = vtanh.f32 %v1659_v10  ;;  %v4178_v51 = vmul.f32 -1.442695, %v1659_v10  ;;  %v2035_v10 = vld [vmem:[#allocation7 + $0x40] sm:$0xff] }
0x126f   :  { %4913 = vpow2.f32 %v4178_v51  ;;  %v2033_v51 = vld [vmem:[#allocation7 + $0x30] sm:$0xff] }
0x1274   :  { %v4910_v49 = vpop.eup %4909 }
0x1275   :  { %1795 = vrot.lane.b32.xlu0 %v4910_v49, %s5280_s2 }
0x127a   :  { %v4912_v50 = vpop.eup %4911 }
0x127b   :  { %1672 = vrot.lane.b32.xlu0 %v4912_v50, %s5280_s2  ;;  %v2034_v50 = vld [vmem:[#allocation7 + $0x38] sm:$0xff] }
0x127c   :  { %v4914_v48 = vpop.eup %4913 }
0x127d   :  { %v1663_v52 = vadd.f32 1.0, %v4914_v48  ;;  %v2031_v48 = vld [vmem:[#allocation7 + $0x20] sm:$0xff] }
0x127f   :  { %4915 = vrcp.f32 %v1663_v52  ;;  %v2030_v52 = vld [vmem:[#allocation7 + $0x18] sm:$0xff] }
0x128c   :  { %v4916_v58 = vpop.eup %4915 }
0x128d   :  { %v1670_v2 = vmul.f32 %v4916_v58, %v1668_v63 }
0x12e7   :  { %v1796_v55 = vpop.permute.xlu0 %1795 }
0x12e8   :  { %v5785_v56 = vmul.f32 %v4908_v37, %v1796_v55  ;;  %v2029_v55 = vld [vmem:[#allocation7 + $0x10] sm:$0xff] }
0x12ea   :  { %v1917_v57 = vrot.slane %v5785_v56, 2 }
0x12ec   :  { %1918 = vrot.lane.b32.xlu1 %v1917_v57, %s5281_s29  ;;  %v2028_v57 = vld [vmem:[#allocation7 + $0x8] sm:$0xff] }
0x12ed   :  { %v1673_v59 = vpop.permute.xlu0 %1672 }
0x12ee   :  { %v1675_v60 = vmul.f32 %v4916_v58, %v1673_v59  ;;  %v5827_v59 = vld [vmem:[#allocation9 + $0x18] sm:$0xff] }
0x12f0   :  { %1677 = vrot.lane.b32.xlu1 %v1675_v60, %s5281_s29  ;;  %v5829_v60 = vld [vmem:[#allocation9 + $0x10] sm:$0xff] }
0x135e   :  { %v1919_v62 = vpop.permute.xlu1 %1918 }
0x135f   :  { %4573 = vmatmul.mubr.msk.f32.vlgmr.msra.gmra.mxu0 %vm257_vm2, %v1919_v62 }
0x1360   :  { %4583 = vmatprep.mubr.msk.f32.mxu0 %vm5279_vm0, %v5278_v0  ;;  %4576 = vmatpush3.msra.mxu0 %v5827_v59 }
0x1361   :  { %4577 = vmatprep.subr.mxu0 %v5278_v0 }
0x1362   :  { %v1678_v3 = vpop.permute.xlu1 %1677  ;;  %4578 = vmatpush3.msra.mxu0 %v5829_v60 }
0x1363   :  { %v5794_v1 = vadd.f32 %v1678_v3, %v1670_v2  ;;  %v5834_v2 = vld [vmem:[#allocation9 + $0x8] sm:$0xff]  ;;  %4579 = vmatprep.subr.mxu0 %v5278_v0 }
0x1364   :  { %4580 = vmatpush3.msra.mxu0 %v5834_v2 }
0x1365   :  { %4917 = vtanh.f32 %v5794_v1  ;;  %4581 = vmatprep.subr.mxu0 %v5278_v0 }
0x1372   :  { %v4918_v7 = vpop.eup %4917 }
0x1373   :  { %1683 = vrot.lane.b32.xlu1 %v4918_v7, %s5280_s2  ;;  %v5839_v7 = vld [vmem:[#allocation9] sm:$0xff] }
0x1374   :  { %4582 = vmatpush3.msra.mxu0 %v5839_v7 }
0x1375   :  { %4584 = vmatmul.mubr.f32.vlgmr.msra.gmra.mxu0 %v5278_v0  ;;  %4586 = vmatprep.subr.mxu0 %v5278_v0 }
0x1376   :  { %4594 = vmatprep.mubr.msk.f32.mxu0 %vm5279_vm0, %v5278_v0  ;;  %4587 = vmatpush3.msra.mxu0 %v5893_v14 }
0x1377   :  { %4588 = vmatprep.subr.mxu0 %v5278_v0 }
0x13e5   :  { %v1684_v13 = vpop.permute.xlu1 %1683 }
0x13e6   :  { %v5798_v18 = vmul.f32 %v4916_v58, %v1684_v13 }
0x13e8   :  { %v1805_v6 = vrot.slane %v5798_v18, 4 }
0x13ea   :  { %1806 = vrot.lane.b32.xlu1 %v1805_v6, %s5281_s29 }
0x13ee   :  { %572 = vrot.lane.b32.xlu1 %v5579_v54, %s5281_s29 }
0x13f2   :  { %1024 = vrot.lane.b32.xlu1 %v5667_v36, %s5281_s29 }
0x13f6   :  { %1576 = vrot.lane.b32.xlu1 %v5734_v61, %s5280_s2 }
0x141f   :  { %v1988_v21 = vpop.f32.mrf.mxu0 }
0x1420   :  { %v1992_v9 = vadd.f32 %v1988_v21, %v1916_v19 }
0x1421   :  { %v4574_v22 = vpop.f32.mrf.mxu0 }
0x1422   :  { %4919 = vtanh.f32 %v1992_v9  ;;  %v4184_v61 = vmul.f32 -1.442695, %v1992_v9 }
0x1424   :  { %4921 = vpow2.f32 %v4184_v61 }
0x142f   :  { %v4920_v11 = vpop.eup %4919 }
0x1430   :  { %2005 = vrot.lane.b32.xlu0 %v4920_v11, %s5280_s2 }
0x1431   :  { %v4922_v25 = vpop.eup %4921 }
0x1432   :  { %v1996_v26 = vadd.f32 1.0, %v4922_v25 }
0x1434   :  { %4923 = vrcp.f32 %v1996_v26 }
0x1441   :  { %v5813_v27 = vpop.eup %4923 }
0x1442   :  { %v2003_v30 = vmul.f32 %v5813_v27, %v2001_v29 }
0x145c   :  { %v1807_v23 = vpop.permute.xlu1 %1806 }
0x145d   :  { %4562 = vmatmul.mubr.msk.f32.vlgmr.msra.gmra.mxu1 %vm257_vm2, %v1807_v23 }
0x145e   :  { %2126 = vmatprep.mubr.f32.mxu1 %v5278_v0  ;;  %2079 = vmatpush1.msra.mxu1 %v2041_v43  ;;  %v5905_v43 = vld [vmem:[#allocation10] sm:$0xff] }
0x145f   :  { %2080 = vmatprep.subr.mxu1 %v2040_v44 }
0x1460   :  { %v573_v54 = vpop.permute.xlu1 %572  ;;  %2081 = vmatpush1.msra.mxu1 %v2039_v46 }
0x1461   :  { %576 = vst.msk [vmem:[#allocation3] sm:$0xc] %vm575_vm4, %v573_v54  ;;  %2082 = vmatprep.subr.mxu1 %v2038_v5 }
0x1462   :  { %2083 = vmatpush1.msra.mxu1 %v2037_v47 }
0x1463   :  { %2084 = vmatprep.subr.mxu1 %v2036_v8 }
0x1464   :  { %v1025_v36 = vpop.permute.xlu1 %1024  ;;  %2085 = vmatpush1.msra.mxu1 %v2035_v10 }
0x1465   :  { %1028 = vst.msk [vmem:[#allocation3] sm:$0xc0] %vm1027_vm5, %v1025_v36  ;;  %2086 = vmatprep.subr.mxu1 %v2034_v50  ;;  %v1892_v36 = vrot.slane %v5794_v1, 6  ;;  %v2218_v1 = vpop.f32.mrf.mxu0 }
0x1466   :  { %2087 = vmatpush1.msra.mxu1 %v2033_v51 }
0x1468   :  { %v1577_v6 = vpop.permute.xlu1 %1576 }
0x14a2   :  { %v2006_v12 = vpop.permute.xlu0 %2005 }
0x14a3   :  { %v2008_v28 = vmul.f32 %v5813_v27, %v2006_v12  ;;  %v4585_v12 = vpop.f32.mrf.mxu0 }
0x14a5   :  { %2010 = vrot.lane.b32.xlu0 %v2008_v28, %s5281_s29 }
0x1517   :  { %v2011_v31 = vpop.permute.xlu0 %2010 }
0x1518   :  { %v2013_v33 = vadd.f32 %v2011_v31, %v2003_v30 }
0x151a   :  { %4925 = vtanh.f32 %v2013_v33 }
0x151d   :  { %v1876_v34 = vpop.f32.mrf.mxu1 }
0x151e   :  { %v1881_v37 = vrot.slane %v1876_v34, 2 }
0x151f   :  { %v4563_v35 = vpop.f32.mrf.mxu1 }
0x1520   :  { %v1883_v40 = vadd.f32 %v1881_v37, %v1804_v38 }
0x1522   :  { %4927 = vtanh.f32 %v1883_v40  ;;  %v4182_v49 = vmul.f32 -1.442695, %v1883_v40 }
0x1524   :  { %4929 = vpow2.f32 %v4182_v49 }
0x1527   :  { %v4926_v4 = vpop.eup %4925 }
0x1528   :  { %2016 = vrot.lane.b32.xlu0 %v4926_v4, %s5280_s2 }
0x152c   :  { %798 = vrot.lane.b32.xlu0 %v5623_v45, %s5281_s29 }
0x152f   :  { %v4928_v45 = vpop.eup %4927 }
0x1530   :  { %1355 = vrot.lane.b32.xlu0 %v5690_v16, %s5280_s2  ;;  %v2032_v16 = vld [vmem:[#allocation7 + $0x28] sm:$0xff] }
0x1531   :  { %2088 = vmatprep.subr.mxu1 %v2032_v16  ;;  %v4930_v58 = vpop.eup %4929 }
0x1532   :  { %2089 = vmatpush1.msra.mxu1 %v2031_v48  ;;  %v1887_v62 = vadd.f32 1.0, %v4930_v58 }
0x1533   :  { %2090 = vmatprep.subr.mxu1 %v2030_v52 }
0x1534   :  { %1800 = vrot.lane.b32.xlu0 %v5785_v56, %s5280_s2  ;;  %v2027_v56 = vld [vmem:[#allocation7] sm:$0xff]  ;;  %2091 = vmatpush1.msra.mxu1 %v2029_v55  ;;  %4931 = vrcp.f32 %v1887_v62 }
0x1535   :  { %2092 = vmatprep.subr.mxu1 %v2028_v57 }
0x1536   :  { %2093 = vmatpush1.msra.mxu1 %v2027_v56 }
0x1537   :  { %4597 = vmatprep.subr.mxu1 %v5278_v0 }
0x1538   :  { %1896 = vrot.lane.b32.xlu0 %v4928_v45, %s5280_s2 }
0x1541   :  { %v4932_v9 = vpop.eup %4931 }
0x1542   :  { %v1894_v61 = vmul.f32 %v4932_v9, %v1892_v36 }
0x159a   :  { %v2017_v63 = vpop.permute.xlu0 %2016 }
0x159b   :  { %v2019_v3 = vmul.f32 %v5813_v27, %v2017_v63 }
0x159d   :  { %2021 = vrot.lane.b32.xlu1 %v2019_v3, %s5280_s2 }
0x159e   :  { %v799_v13 = vpop.permute.xlu0 %798 }
0x159f   :  { %802 = vst.msk [vmem:[#allocation3] sm:$0x30] %vm801_vm6, %v799_v13 }
0x15a0   :  { %1579 = vst.msk [vmem:[#allocation3] sm:$0x30] %vm688_vm7, %v1577_v6 }
0x15a2   :  { %v1356_v19 = vpop.permute.xlu0 %1355 }
0x15a3   :  { %1358 = vst.msk [vmem:[#allocation3] sm:$0xc0] %vm465_vm8, %v1356_v19 }
0x15a6   :  { %v1801_v21 = vpop.permute.xlu0 %1800 }
0x15a7   :  { %1803 = vst.msk [vmem:[#allocation3] sm:$0xc] %vm914_vm9, %v1801_v21 }
0x15aa   :  { %v1897_v22 = vpop.permute.xlu0 %1896 }
0x15ab   :  { %v1899_v11 = vmul.f32 %v4932_v9, %v1897_v22 }
0x15ad   :  { %1901 = vrot.lane.b32.xlu1 %v1899_v11, %s5281_s29 }
0x160f   :  { %v2022_v23 = vpop.permute.xlu1 %2021 }
0x1610   :  { %2024 = vst.msk [vmem:[#allocation3] sm:$0x3] %vm1137_vm10, %v2022_v23 }
0x1617   :  { %v2025_v54 = vld [vmem:[#allocation3] sm:$0xff] }
0x1618   :  { %4185 = vmatmul.mubr.msk.f32.vlgmr.msra.gmra.mxu1 %vm2055_vm11, %v2025_v54 }
0x1619   :  { %2132 = vmatprep.mubr.f32.mxu1 %v5278_v0  ;;  %4598 = vmatpush3.msra.mxu1 %v5827_v59 }
0x161a   :  { %4599 = vmatprep.subr.mxu1 %v5278_v0 }
0x161b   :  { %4600 = vmatpush3.msra.mxu1 %v5829_v60 }
0x161c   :  { %4601 = vmatprep.subr.mxu1 %v5278_v0 }
0x161d   :  { %4602 = vmatpush3.msra.mxu1 %v5834_v2 }
0x161e   :  { %4603 = vmatprep.subr.mxu1 %v5278_v0 }
0x161f   :  { %v1902_v25 = vpop.permute.xlu1 %1901  ;;  %4604 = vmatpush3.msra.mxu1 %v5839_v7 }
0x1620   :  { %v1904_v26 = vadd.f32 %v1902_v25, %v1894_v61  ;;  %4619 = vmatprep.subr.mxu1 %v5278_v0 }
0x1622   :  { %4933 = vtanh.f32 %v1904_v26 }
0x162f   :  { %v4934_v27 = vpop.eup %4933 }
0x1630   :  { %1907 = vrot.lane.b32.xlu0 %v4934_v27, %s5280_s2 }
0x1634   :  { %462 = vrot.lane.b32.xlu0 %v5517_v53, %s5280_s2  ;;  %v2043_v53 = vld [vmem:[%s6386_s6] sm:$0x3] }
0x1638   :  { %911 = vrot.lane.b32.xlu0 %v5602_v32, %s5280_s2  ;;  %v5882_v32 = vrot.slane %v2043_v53, %v152_v15  ;;  %v5895_v15 = vld [vmem:[#allocation10 + $0x10] sm:$0xff] }
0x1639   :  { %4589 = vmatpush3.msra.mxu0 %v5895_v15 }
0x163a   :  { %4590 = vmatprep.subr.mxu0 %v5278_v0 }
0x163c   :  { %1464 = vrot.lane.b32.xlu0 %v5755_v20, %s5281_s29  ;;  %v5886_v20 = vrot.slane %v2043_v53, %v156_v17  ;;  %v5901_v17 = vld [vmem:[#allocation10 + $0x8] sm:$0xff] }
0x163d   :  { %4591 = vmatpush3.msra.mxu0 %v5901_v17 }
0x163e   :  { %4592 = vmatprep.subr.mxu0 %v5278_v0 }
0x163f   :  { %4593 = vmatpush3.msra.mxu0 %v5905_v43 }
0x1640   :  { %4595 = vmatmul.mubr.f32.vlgmr.msra.gmra.mxu0 %v5278_v0  ;;  %4608 = vmatprep.subr.mxu0 %v5278_v0 }
0x1641   :  { %4609 = vmatpush3.msra.mxu0 %v5893_v14  ;;  %4616 = vmatprep.mubr.msk.f32.mxu0 %vm5279_vm0, %v5278_v0 }
0x1642   :  { %4610 = vmatprep.subr.mxu0 %v5278_v0 }
0x1643   :  { %4611 = vmatpush3.msra.mxu0 %v5895_v15 }
0x1644   :  { %4612 = vmatprep.subr.mxu0 %v5278_v0 }
0x1645   :  { %4613 = vmatpush3.msra.mxu0 %v5901_v17 }
0x1646   :  { %4614 = vmatprep.subr.mxu0 %v5278_v0 }
0x1647   :  { %4615 = vmatpush3.msra.mxu0 %v5905_v43 }
0x1648   :  { %4630 = vmatprep.subr.mxu0 %v5278_v0 }
0x16a2   :  { %v1908_v28 = vpop.permute.xlu0 %1907 }
0x16a3   :  { %v1910_v29 = vmul.f32 %v4932_v9, %v1908_v28 }
0x16a5   :  { %1912 = vrot.lane.b32.xlu0 %v1910_v29, %s5281_s29 }
0x16a6   :  { %v463_v30 = vpop.permute.xlu0 %462 }
0x16a7   :  { %466 = vst.msk [vmem:[#allocation3 + $0x8] sm:$0xc0] %vm465_vm8, %v463_v30 }
0x16aa   :  { %v912_v31 = vpop.permute.xlu0 %911 }
0x16ab   :  { %915 = vst.msk [vmem:[#allocation3 + $0x8] sm:$0xc] %vm914_vm9, %v912_v31 }
0x16ae   :  { %v1465_v33 = vpop.permute.xlu0 %1464 }
0x16af   :  { %1467 = vst.msk [vmem:[#allocation3 + $0x8] sm:$0xc] %vm575_vm4, %v1465_v33 }
0x16d8   :  { %v2128_v34 = vpop.f32.mrf.mxu1 }
0x16d9   :  { %v2129_v35 = vadd.f32 %v2128_v34, %v5882_v32 }
0x16da   :  { %v2130_v37 = vpop.f32.mrf.mxu1 }
0x16db   :  { %2139 = vst [vmem:[#allocation2 + $0x10] sm:$0xff] %v2129_v35  ;;  %v2131_v38 = vadd.f32 %v2130_v37, %v5886_v20 }
0x16dd   :  { %2140 = vst [vmem:[#allocation2] sm:$0xff] %v2131_v38 }
0x16e2   :  { %v2151_v40 = vld [vmem:[#allocation2 + $0x10] sm:$0x3]  ;;  %v2356_v28 = vld [vmem:[#allocation2 + $0x10] sm:$0xc] }
0x16e3   :  { %v2222_v4 = vadd.f32 %v2218_v1, %v2151_v40 }
0x16e5   :  { %4935 = vtanh.f32 %v2222_v4 }
0x16f2   :  { %v4936_v42 = vpop.eup %4935 }
0x16f3   :  { %2232 = vrot.lane.b32.xlu1 %v4936_v42, %s5280_s2 }
0x16f7   :  { %685 = vrot.lane.b32.xlu1 %v5558_v41, %s5280_s2 }
0x16fb   :  { %1134 = vrot.lane.b32.xlu1 %v5646_v24, %s5280_s2  ;;  %v4187_v24 = vmul.f32 -1.442695, %v2222_v4 }
0x16fd   :  { %4937 = vpow2.f32 %v4187_v24 }
0x16ff   :  { %1688 = vrot.lane.b32.xlu1 %v5798_v18, %s5281_s29 }
0x1700   :  { %v2319_v50 = vpop.f32.mrf.mxu0 }
0x1701   :  { %v2324_v62 = vrot.slane %v2319_v50, 2 }
0x1702   :  { %v4596_v51 = vpop.f32.mrf.mxu0 }
0x170a   :  { %v4938_v18 = vpop.eup %4937 }
0x170b   :  { %v2226_v44 = vadd.f32 1.0, %v4938_v18 }
0x170d   :  { %4939 = vrcp.f32 %v2226_v44 }
0x1717   :  { %v1913_v41 = vpop.permute.xlu0 %1912 }
0x1718   :  { %1915 = vst.msk [vmem:[#allocation3 + $0x8] sm:$0xc0] %vm1027_vm5, %v1913_v41 }
0x171a   :  { %v4940_v46 = vpop.eup %4939 }
0x171b   :  { %v2230_v16 = vmul.f32 0.0, %v4940_v46 }
0x1765   :  { %v2233_v5 = vpop.permute.xlu1 %2232 }
0x1766   :  { %v2235_v47 = vmul.f32 %v4940_v46, %v2233_v5 }
0x1768   :  { %2237 = vrot.lane.b32.xlu1 %v2235_v47, %s5281_s29 }
0x1769   :  { %v686_v8 = vpop.permute.xlu1 %685 }
0x176a   :  { %689 = vst.msk [vmem:[#allocation3 + $0x8] sm:$0x30] %vm688_vm7, %v686_v8 }
0x176d   :  { %v1135_v10 = vpop.permute.xlu1 %1134 }
0x176e   :  { %1138 = vst.msk [vmem:[#allocation3 + $0x8] sm:$0x3] %vm1137_vm10, %v1135_v10 }
0x176f   :  { %1247 = vst.msk [vmem:[#allocation3 + $0x8] sm:$0x3] %vm360_vm3, %v5713_v39 }
0x1771   :  { %v1689_v45 = vpop.permute.xlu1 %1688 }
0x1772   :  { %1691 = vst.msk [vmem:[#allocation3 + $0x8] sm:$0x30] %vm801_vm6, %v1689_v45 }
0x1779   :  { %v2026_v49 = vld [vmem:[#allocation3 + $0x8] sm:$0xff] }
0x177a   :  { %4186 = vmatmul.mubr.msk.f32.gmra.mxu1 %vm2055_vm11, %v2026_v49 }
0x177b   :  { %4605 = vmatprep.mubr.msk.f32.mxu1 %vm5279_vm0, %v5278_v0 }
0x17da   :  { %v2238_v48 = vpop.permute.xlu1 %2237 }
0x17db   :  { %v5934_v52 = vadd.f32 %v2238_v48, %v2230_v16 }
0x17dd   :  { %4941 = vtanh.f32 %v5934_v52  ;;  %v2441_v42 = vrot.slane %v5934_v52, 6 }
0x17ea   :  { %v4942_v55 = vpop.eup %4941 }
0x17eb   :  { %2243 = vrot.lane.b32.xlu0 %v4942_v55, %s5280_s2 }
0x183a   :  { %v2134_v39 = vpop.f32.mrf.mxu1 }
0x183b   :  { %v2135_v57 = vadd.f32 %v2134_v39, %v5882_v32 }
0x183c   :  { %v2136_v56 = vpop.f32.mrf.mxu1 }
0x183d   :  { %2141 = vst [vmem:[#allocation2 + $0x18] sm:$0xff] %v2135_v57  ;;  %v2137_v58 = vadd.f32 %v2136_v56, %v5886_v20 }
0x183f   :  { %2142 = vst [vmem:[#allocation2 + $0x8] sm:$0xff] %v2137_v58 }
0x1846   :  { %v2252_v63 = vld [vmem:[#allocation2 + $0x8] sm:$0xc0]  ;;  %v2465_v47 = vld [vmem:[#allocation2 + $0x8] sm:$0x30] }
0x1847   :  { %v2326_v3 = vadd.f32 %v2324_v62, %v2252_v63 }
0x1849   :  { %4943 = vtanh.f32 %v2326_v3  ;;  %v4188_v21 = vmul.f32 -1.442695, %v2326_v3 }
0x184b   :  { %4945 = vpow2.f32 %v4188_v21  ;;  %v2577_v21 = vld [vmem:[#allocation2 + $0x10] sm:$0x30] }
0x1856   :  { %v4944_v13 = vpop.eup %4943 }
0x1857   :  { %2336 = vrot.lane.b32.xlu0 %v4944_v13, %s5280_s2 }
0x1858   :  { %v4946_v9 = vpop.eup %4945 }
0x1859   :  { %v2330_v22 = vadd.f32 1.0, %v4946_v9 }
0x185b   :  { %4947 = vrcp.f32 %v2330_v22 }
0x185d   :  { %v2244_v6 = vpop.permute.xlu0 %2243 }
0x185e   :  { %v2246_v19 = vmul.f32 %v4940_v46, %v2244_v6 }
0x1860   :  { %2248 = vrot.lane.b32.xlu1 %v2246_v19, %s5281_s29 }
0x1868   :  { %v4948_v11 = vpop.eup %4947 }
0x1869   :  { %v2334_v61 = vmul.f32 0.0, %v4948_v11 }
0x18c9   :  { %v2337_v23 = vpop.permute.xlu0 %2336 }
0x18ca   :  { %v2339_v54 = vmul.f32 %v4948_v11, %v2337_v23 }
0x18cc   :  { %2341 = vrot.lane.b32.xlu1 %v2339_v54, %s5281_s29 }
0x18d2   :  { %v2249_v36 = vpop.permute.xlu1 %2248 }
0x18d3   :  { %2251 = vst.msk [vmem:[%s6393_s13] sm:$0x3] %vm360_vm3, %v2249_v36  ;;  %4606 = vmatmul.mubr.msk.f32.vlgmr.msra.gmra.mxu1 %vm257_vm2, %v2249_v36 }
0x18d4   :  { %4620 = vmatpush3.msra.mxu1 %v5827_v59  ;;  %4627 = vmatprep.mubr.msk.f32.mxu1 %vm5279_vm0, %v5278_v0 }
0x18d5   :  { %4621 = vmatprep.subr.mxu1 %v5278_v0 }
0x18d6   :  { %4622 = vmatpush3.msra.mxu1 %v5829_v60 }
0x18d7   :  { %4623 = vmatprep.subr.mxu1 %v5278_v0 }
0x18d8   :  { %4624 = vmatpush3.msra.mxu1 %v5834_v2 }
0x18d9   :  { %4625 = vmatprep.subr.mxu1 %v5278_v0 }
0x18da   :  { %4626 = vmatpush3.msra.mxu1 %v5839_v7 }
0x18db   :  { %4641 = vmatprep.subr.mxu1 %v5278_v0 }
0x193e   :  { %v2342_v25 = vpop.permute.xlu1 %2341 }
0x193f   :  { %v5958_v26 = vadd.f32 %v2342_v25, %v2334_v61 }
0x1941   :  { %4949 = vtanh.f32 %v5958_v26  ;;  %v2553_v58 = vrot.slane %v5958_v26, 2 }
0x194e   :  { %v4950_v27 = vpop.eup %4949 }
0x194f   :  { %2347 = vrot.lane.b32.xlu1 %v4950_v27, %s5280_s2 }
0x1993   :  { %v2425_v1 = vpop.f32.mrf.mxu1 }
0x1994   :  { %v2430_v12 = vrot.slane %v2425_v1, 6 }
0x1995   :  { %v4607_v29 = vpop.f32.mrf.mxu1 }
0x1996   :  { %v2432_v30 = vadd.f32 %v2430_v12, %v2356_v28 }
0x1998   :  { %4951 = vtanh.f32 %v2432_v30  ;;  %v4190_v20 = vmul.f32 -1.442695, %v2432_v30 }
0x199a   :  { %4953 = vpow2.f32 %v4190_v20 }
0x19a5   :  { %v4952_v31 = vpop.eup %4951 }
0x19a6   :  { %2445 = vrot.lane.b32.xlu0 %v4952_v31, %s5280_s2 }
0x19a7   :  { %v4954_v34 = vpop.eup %4953 }
0x19a8   :  { %v2436_v35 = vadd.f32 1.0, %v4954_v34 }
0x19aa   :  { %4955 = vrcp.f32 %v2436_v35  ;;  %v2689_v35 = vld [vmem:[#allocation2 + $0x8] sm:$0xc] }
0x19b7   :  { %v4956_v37 = vpop.eup %4955 }
0x19b8   :  { %v2443_v41 = vmul.f32 %v4956_v37, %v2441_v42 }
0x19c1   :  { %v2348_v33 = vpop.permute.xlu1 %2347 }
0x19c2   :  { %v5963_v53 = vmul.f32 %v4948_v11, %v2348_v33 }
0x19c4   :  { %v2466_v32 = vrot.slane %v5963_v53, 6 }
0x19c6   :  { %2467 = vrot.lane.b32.xlu1 %v2466_v32, %s5281_s29 }
0x1a18   :  { %v2446_v38 = vpop.permute.xlu0 %2445 }
0x1a19   :  { %v2448_v40 = vmul.f32 %v4956_v37, %v2446_v38 }
0x1a1b   :  { %2450 = vrot.lane.b32.xlu0 %v2448_v40, %s5281_s29 }
0x1a38   :  { %v2468_v4 = vpop.permute.xlu1 %2467 }
0x1a39   :  { %4617 = vmatmul.mubr.msk.f32.vlgmr.msra.gmra.mxu0 %vm257_vm2, %v2468_v4 }
0x1a3a   :  { %4631 = vmatpush3.msra.mxu0 %v5893_v14  ;;  %4638 = vmatprep.mubr.msk.f32.mxu0 %vm5279_vm0, %v5278_v0 }
0x1a3b   :  { %4632 = vmatprep.subr.mxu0 %v5278_v0 }
0x1a3c   :  { %4633 = vmatpush3.msra.mxu0 %v5895_v15 }
0x1a3d   :  { %4634 = vmatprep.subr.mxu0 %v5278_v0 }
0x1a3e   :  { %4635 = vmatpush3.msra.mxu0 %v5901_v17 }
0x1a3f   :  { %4636 = vmatprep.subr.mxu0 %v5278_v0 }
0x1a40   :  { %4637 = vmatpush3.msra.mxu0 %v5905_v43 }
0x1a41   :  { %4652 = vmatprep.subr.mxu0 %v5278_v0 }
0x1a8d   :  { %v2451_v24 = vpop.permute.xlu0 %2450 }
0x1a8e   :  { %v5980_v18 = vadd.f32 %v2451_v24, %v2443_v41 }
0x1a90   :  { %4957 = vtanh.f32 %v5980_v18  ;;  %v2665_v29 = vrot.slane %v5980_v18, 6 }
0x1a9d   :  { %v4958_v44 = vpop.eup %4957 }
0x1a9e   :  { %2456 = vrot.lane.b32.xlu0 %v4958_v44, %s5280_s2 }
0x1af9   :  { %v2537_v46 = vpop.f32.mrf.mxu0 }
0x1afa   :  { %v2542_v5 = vrot.slane %v2537_v46, 4 }
0x1afb   :  { %v4618_v8 = vpop.f32.mrf.mxu0 }
0x1afc   :  { %v2544_v10 = vadd.f32 %v2542_v5, %v2465_v47 }
0x1afe   :  { %4959 = vtanh.f32 %v2544_v10  ;;  %v4192_v16 = vmul.f32 -1.442695, %v2544_v10 }
0x1b00   :  { %4961 = vpow2.f32 %v4192_v16 }
0x1b0b   :  { %v4960_v45 = vpop.eup %4959 }
0x1b0c   :  { %2557 = vrot.lane.b32.xlu0 %v4960_v45, %s5280_s2 }
0x1b0d   :  { %v4962_v48 = vpop.eup %4961 }
0x1b0e   :  { %v2548_v52 = vadd.f32 1.0, %v4962_v48 }
0x1b10   :  { %v2457_v49 = vpop.permute.xlu0 %2456  ;;  %4963 = vrcp.f32 %v2548_v52 }
0x1b11   :  { %v5985_v50 = vmul.f32 %v4956_v37, %v2457_v49 }
0x1b13   :  { %v2578_v51 = vrot.slane %v5985_v50, 2 }
0x1b15   :  { %2579 = vrot.lane.b32.xlu1 %v2578_v51, %s5281_s29 }
0x1b1d   :  { %v4964_v55 = vpop.eup %4963 }
0x1b1e   :  { %v2555_v62 = vmul.f32 %v4964_v55, %v2553_v58 }
0x1b7e   :  { %v2558_v39 = vpop.permute.xlu0 %2557 }
0x1b7f   :  { %v2560_v57 = vmul.f32 %v4964_v55, %v2558_v39 }
0x1b81   :  { %2562 = vrot.lane.b32.xlu1 %v2560_v57, %s5281_s29 }
0x1b87   :  { %v2580_v56 = vpop.permute.xlu1 %2579 }
0x1b88   :  { %4628 = vmatmul.mubr.msk.f32.vlgmr.msra.gmra.mxu1 %vm257_vm2, %v2580_v56 }
0x1b89   :  { %4642 = vmatpush3.msra.mxu1 %v5827_v59  ;;  %4649 = vmatprep.mubr.msk.f32.mxu1 %vm5279_vm0, %v5278_v0 }
0x1b8a   :  { %4643 = vmatprep.subr.mxu1 %v5278_v0 }
0x1b8b   :  { %4644 = vmatpush3.msra.mxu1 %v5829_v60 }
0x1b8c   :  { %4645 = vmatprep.subr.mxu1 %v5278_v0 }
0x1b8d   :  { %4646 = vmatpush3.msra.mxu1 %v5834_v2 }
0x1b8e   :  { %4647 = vmatprep.subr.mxu1 %v5278_v0 }
0x1b8f   :  { %4648 = vmatpush3.msra.mxu1 %v5839_v7 }
0x1b90   :  { %4663 = vmatprep.subr.mxu1 %v5278_v0 }
0x1bf3   :  { %v2563_v63 = vpop.permute.xlu1 %2562 }
0x1bf4   :  { %v6002_v3 = vadd.f32 %v2563_v63, %v2555_v62 }
0x1bf6   :  { %4965 = vtanh.f32 %v6002_v3  ;;  %v2777_v10 = vrot.slane %v6002_v3, 2 }
0x1c03   :  { %v4966_v13 = vpop.eup %4965 }
0x1c04   :  { %2568 = vrot.lane.b32.xlu1 %v4966_v13, %s5280_s2 }
0x1c48   :  { %v2649_v6 = vpop.f32.mrf.mxu1 }
0x1c49   :  { %v2654_v19 = vrot.slane %v2649_v6, 4 }
0x1c4a   :  { %v4629_v9 = vpop.f32.mrf.mxu1 }
0x1c4b   :  { %v2656_v22 = vadd.f32 %v2654_v19, %v2577_v21 }
0x1c4d   :  { %4967 = vtanh.f32 %v2656_v22  ;;  %v4194_v61 = vmul.f32 -1.442695, %v2656_v22 }
0x1c4f   :  { %4969 = vpow2.f32 %v4194_v61 }
0x1c5a   :  { %v4968_v11 = vpop.eup %4967 }
0x1c5b   :  { %2669 = vrot.lane.b32.xlu0 %v4968_v11, %s5280_s2 }
0x1c5c   :  { %v4970_v25 = vpop.eup %4969 }
0x1c5d   :  { %v2660_v26 = vadd.f32 1.0, %v4970_v25 }
0x1c5f   :  { %4971 = vrcp.f32 %v2660_v26  ;;  %v2913_v26 = vld [vmem:[#allocation2 + $0x8] sm:$0x3] }
0x1c6c   :  { %v4972_v27 = vpop.eup %4971 }
0x1c6d   :  { %v2667_v30 = vmul.f32 %v4972_v27, %v2665_v29 }
0x1c76   :  { %v2569_v23 = vpop.permute.xlu1 %2568 }
0x1c77   :  { %v6007_v54 = vmul.f32 %v4964_v55, %v2569_v23  ;;  %v2801_v55 = vld [vmem:[#allocation2 + $0x10] sm:$0xc0] }
0x1c79   :  { %v2690_v36 = vrot.slane %v6007_v54, 4 }
0x1c7b   :  { %2691 = vrot.lane.b32.xlu1 %v2690_v36, %s5281_s29 }
0x1ccd   :  { %v2670_v1 = vpop.permute.xlu0 %2669 }
0x1cce   :  { %v2672_v12 = vmul.f32 %v4972_v27, %v2670_v1 }
0x1cd0   :  { %2674 = vrot.lane.b32.xlu0 %v2672_v12, %s5281_s29 }
0x1ced   :  { %v2692_v28 = vpop.permute.xlu1 %2691 }
0x1cee   :  { %4639 = vmatmul.mubr.msk.f32.vlgmr.msra.gmra.mxu0 %vm257_vm2, %v2692_v28 }
0x1cef   :  { %4653 = vmatpush3.msra.mxu0 %v5893_v14  ;;  %4660 = vmatprep.mubr.msk.f32.mxu0 %vm5279_vm0, %v5278_v0 }
0x1cf0   :  { %4654 = vmatprep.subr.mxu0 %v5278_v0 }
0x1cf1   :  { %4655 = vmatpush3.msra.mxu0 %v5895_v15 }
0x1cf2   :  { %4656 = vmatprep.subr.mxu0 %v5278_v0 }
0x1cf3   :  { %4657 = vmatpush3.msra.mxu0 %v5901_v17 }
0x1cf4   :  { %4658 = vmatprep.subr.mxu0 %v5278_v0 }
0x1cf5   :  { %4659 = vmatpush3.msra.mxu0 %v5905_v43 }
0x1cf6   :  { %4674 = vmatprep.subr.mxu0 %v5278_v0 }
0x1d42   :  { %v2675_v31 = vpop.permute.xlu0 %2674 }
0x1d43   :  { %v6024_v33 = vadd.f32 %v2675_v31, %v2667_v30 }
0x1d45   :  { %4973 = vtanh.f32 %v6024_v33  ;;  %v2889_v11 = vrot.slane %v6024_v33, 6 }
0x1d52   :  { %v4974_v32 = vpop.eup %4973 }
0x1d53   :  { %2680 = vrot.lane.b32.xlu0 %v4974_v32, %s5280_s2 }
0x1dae   :  { %v2761_v20 = vpop.f32.mrf.mxu0 }
0x1daf   :  { %v2766_v34 = vrot.slane %v2761_v20, 6 }
0x1db0   :  { %v4640_v37 = vpop.f32.mrf.mxu0 }
0x1db1   :  { %v2768_v38 = vadd.f32 %v2766_v34, %v2689_v35 }
0x1db3   :  { %4975 = vtanh.f32 %v2768_v38  ;;  %v4196_v24 = vmul.f32 -1.442695, %v2768_v38 }
0x1db5   :  { %4977 = vpow2.f32 %v4196_v24 }
0x1dc0   :  { %v4976_v40 = vpop.eup %4975 }
0x1dc1   :  { %2781 = vrot.lane.b32.xlu0 %v4976_v40, %s5280_s2 }
0x1dc2   :  { %v4978_v18 = vpop.eup %4977 }
0x1dc3   :  { %v2772_v44 = vadd.f32 1.0, %v4978_v18 }
0x1dc5   :  { %v2681_v4 = vpop.permute.xlu0 %2680  ;;  %4979 = vrcp.f32 %v2772_v44  ;;  %v3022_v44 = vld [vmem:[#allocation2 + $0x18] sm:$0x3] }
0x1dc6   :  { %v6029_v42 = vmul.f32 %v4972_v27, %v2681_v4 }
0x1dc8   :  { %v2802_v41 = vrot.slane %v6029_v42, 4 }
0x1dca   :  { %2803 = vrot.lane.b32.xlu1 %v2802_v41, %s5281_s29 }
0x1dd2   :  { %v4980_v46 = vpop.eup %4979 }
0x1dd3   :  { %v2779_v45 = vmul.f32 %v4980_v46, %v2777_v10 }
0x1e33   :  { %v2782_v5 = vpop.permute.xlu0 %2781 }
0x1e34   :  { %v2784_v47 = vmul.f32 %v4980_v46, %v2782_v5 }
0x1e36   :  { %2786 = vrot.lane.b32.xlu1 %v2784_v47, %s5281_s29 }
0x1e3c   :  { %v2804_v8 = vpop.permute.xlu1 %2803 }
0x1e3d   :  { %4650 = vmatmul.mubr.msk.f32.vlgmr.msra.gmra.mxu1 %vm257_vm2, %v2804_v8 }
0x1e3e   :  { %4664 = vmatpush3.msra.mxu1 %v5827_v59  ;;  %4671 = vmatprep.mubr.msk.f32.mxu1 %vm5279_vm0, %v5278_v0 }
0x1e3f   :  { %4665 = vmatprep.subr.mxu1 %v5278_v0 }
0x1e40   :  { %4666 = vmatpush3.msra.mxu1 %v5829_v60 }
0x1e41   :  { %4667 = vmatprep.subr.mxu1 %v5278_v0 }
0x1e42   :  { %4668 = vmatpush3.msra.mxu1 %v5834_v2 }
0x1e43   :  { %4669 = vmatprep.subr.mxu1 %v5278_v0 }
0x1e44   :  { %4670 = vmatpush3.msra.mxu1 %v5839_v7 }
0x1e45   :  { %4685 = vmatprep.subr.mxu1 %v5278_v0 }
0x1ea8   :  { %v2787_v49 = vpop.permute.xlu1 %2786 }
0x1ea9   :  { %v6046_v51 = vadd.f32 %v2787_v49, %v2779_v45 }
0x1eab   :  { %4981 = vtanh.f32 %v6046_v51  ;;  %v2998_v40 = vrot.slane %v6046_v51, 2 }
0x1eb8   :  { %v4982_v16 = vpop.eup %4981 }
0x1eb9   :  { %2792 = vrot.lane.b32.xlu1 %v4982_v16, %s5280_s2 }
0x1efd   :  { %v2873_v48 = vpop.f32.mrf.mxu1 }
0x1efe   :  { %v2878_v52 = vrot.slane %v2873_v48, 2 }
0x1eff   :  { %v4651_v39 = vpop.f32.mrf.mxu1 }
0x1f00   :  { %v2880_v57 = vadd.f32 %v2878_v52, %v2801_v55 }
0x1f02   :  { %4983 = vtanh.f32 %v2880_v57  ;;  %v4198_v3 = vmul.f32 -1.442695, %v2880_v57 }
0x1f04   :  { %4985 = vpow2.f32 %v4198_v3 }
0x1f0f   :  { %v4984_v56 = vpop.eup %4983 }
0x1f10   :  { %2893 = vrot.lane.b32.xlu0 %v4984_v56, %s5280_s2 }
0x1f11   :  { %v4986_v13 = vpop.eup %4985 }
0x1f12   :  { %v2884_v6 = vadd.f32 1.0, %v4986_v13 }
0x1f14   :  { %4987 = vrcp.f32 %v2884_v6 }
0x1f21   :  { %v4988_v19 = vpop.eup %4987 }
0x1f22   :  { %v2891_v23 = vmul.f32 %v4988_v19, %v2889_v11 }
0x1f2b   :  { %v2793_v58 = vpop.permute.xlu1 %2792 }
0x1f2c   :  { %v6051_v62 = vmul.f32 %v4980_v46, %v2793_v58 }
0x1f2e   :  { %v2914_v63 = vrot.slane %v6051_v62, 2 }
0x1f30   :  { %2915 = vrot.lane.b32.xlu1 %v2914_v63, %s5281_s29 }
0x1f82   :  { %v2894_v21 = vpop.permute.xlu0 %2893 }
0x1f83   :  { %v2896_v9 = vmul.f32 %v4988_v19, %v2894_v21 }
0x1f85   :  { %2898 = vrot.lane.b32.xlu0 %v2896_v9, %s5281_s29 }
0x1fa2   :  { %v2916_v22 = vpop.permute.xlu1 %2915 }
0x1fa3   :  { %4661 = vmatmul.mubr.msk.f32.vlgmr.msra.gmra.mxu0 %vm257_vm2, %v2916_v22 }
0x1fa4   :  { %4675 = vmatpush3.msra.mxu0 %v5893_v14  ;;  %4682 = vmatprep.mubr.msk.f32.mxu0 %vm5279_vm0, %v5278_v0 }
0x1fa5   :  { %4676 = vmatprep.subr.mxu0 %v5278_v0 }
0x1fa6   :  { %4677 = vmatpush3.msra.mxu0 %v5895_v15 }
0x1fa7   :  { %4678 = vmatprep.subr.mxu0 %v5278_v0 }
0x1fa8   :  { %4679 = vmatpush3.msra.mxu0 %v5901_v17 }
0x1fa9   :  { %4680 = vmatprep.subr.mxu0 %v5278_v0 }
0x1faa   :  { %4681 = vmatpush3.msra.mxu0 %v5905_v43 }
0x1fab   :  { %4696 = vmatprep.subr.mxu0 %v5278_v0 }
0x1ff7   :  { %v2899_v36 = vpop.permute.xlu0 %2898 }
0x1ff8   :  { %v6068_v61 = vadd.f32 %v2899_v36, %v2891_v23 }
0x1ffa   :  { %4989 = vtanh.f32 %v6068_v61  ;;  %v3107_v57 = vrot.slane %v6068_v61, 6 }
0x2007   :  { %v4990_v25 = vpop.eup %4989 }
0x2008   :  { %2904 = vrot.lane.b32.xlu0 %v4990_v25, %s5280_s2 }
0x2063   :  { %v2985_v27 = vpop.f32.mrf.mxu0 }
0x2064   :  { %v2989_v1 = vadd.f32 %v2985_v27, %v2913_v26 }
0x2065   :  { %v4662_v12 = vpop.f32.mrf.mxu0 }
0x2066   :  { %4991 = vtanh.f32 %v2989_v1  ;;  %v4200_v33 = vmul.f32 -1.442695, %v2989_v1 }
0x2068   :  { %4993 = vpow2.f32 %v4200_v33 }
0x2073   :  { %v4992_v28 = vpop.eup %4991 }
0x2074   :  { %3002 = vrot.lane.b32.xlu0 %v4992_v28, %s5280_s2 }
0x2075   :  { %v4994_v32 = vpop.eup %4993 }
0x2076   :  { %v2993_v20 = vadd.f32 1.0, %v4994_v32 }
0x2078   :  { %4995 = vrcp.f32 %v2993_v20 }
0x207a   :  { %v2905_v29 = vpop.permute.xlu0 %2904 }
0x207b   :  { %v6073_v30 = vmul.f32 %v4988_v19, %v2905_v29  ;;  %v3131_v19 = vld [vmem:[#allocation2] sm:$0xc0] }
0x207d   :  { %v3023_v31 = vrot.slane %v6073_v30, 6 }
0x207f   :  { %3024 = vrot.lane.b32.xlu1 %v3023_v31, %s5281_s29 }
0x2085   :  { %v4996_v34 = vpop.eup %4995 }
0x2086   :  { %v3000_v4 = vmul.f32 %v4996_v34, %v2998_v40 }
0x20e6   :  { %v3003_v35 = vpop.permute.xlu0 %3002 }
0x20e7   :  { %v3005_v37 = vmul.f32 %v4996_v34, %v3003_v35 }
0x20e9   :  { %3007 = vrot.lane.b32.xlu1 %v3005_v37, %s5281_s29 }
0x20f1   :  { %v3025_v38 = vpop.permute.xlu1 %3024 }
0x20f2   :  { %4672 = vmatmul.mubr.msk.f32.vlgmr.msra.gmra.mxu1 %vm257_vm2, %v3025_v38 }
0x20f3   :  { %4686 = vmatpush3.msra.mxu1 %v5827_v59  ;;  %4693 = vmatprep.mubr.msk.f32.mxu1 %vm5279_vm0, %v5278_v0 }
0x20f4   :  { %4687 = vmatprep.subr.mxu1 %v5278_v0 }
0x20f5   :  { %4688 = vmatpush3.msra.mxu1 %v5829_v60 }
0x20f6   :  { %4689 = vmatprep.subr.mxu1 %v5278_v0 }
0x20f7   :  { %4690 = vmatpush3.msra.mxu1 %v5834_v2 }
0x20f8   :  { %4691 = vmatprep.subr.mxu1 %v5278_v0 }
0x20f9   :  { %4692 = vmatpush3.msra.mxu1 %v5839_v7 }
0x20fa   :  { %4707 = vmatprep.subr.mxu1 %v5278_v0 }
0x215b   :  { %v3008_v41 = vpop.permute.xlu1 %3007 }
0x215c   :  { %v6090_v24 = vadd.f32 %v3008_v41, %v3000_v4 }
0x215e   :  { %4997 = vtanh.f32 %v6090_v24  ;;  %v3218_v28 = vrot.slane %v6090_v24, 2 }
0x216b   :  { %v4998_v18 = vpop.eup %4997 }
0x216c   :  { %3013 = vrot.lane.b32.xlu1 %v4998_v18, %s5280_s2 }
0x21b2   :  { %v3094_v46 = vpop.f32.mrf.mxu1 }
0x21b3   :  { %v3098_v5 = vadd.f32 %v3094_v46, %v3022_v44 }
0x21b4   :  { %v4673_v47 = vpop.f32.mrf.mxu1 }
0x21b5   :  { %4999 = vtanh.f32 %v3098_v5  ;;  %v4202_v49 = vmul.f32 -1.442695, %v3098_v5 }
0x21b7   :  { %5001 = vpow2.f32 %v4202_v49 }
0x21c2   :  { %v5000_v8 = vpop.eup %4999 }
0x21c3   :  { %3111 = vrot.lane.b32.xlu0 %v5000_v8, %s5280_s2 }
0x21c4   :  { %v5002_v51 = vpop.eup %5001 }
0x21c5   :  { %v3102_v16 = vadd.f32 1.0, %v5002_v51 }
0x21c7   :  { %5003 = vrcp.f32 %v3102_v16 }
0x21d4   :  { %v5004_v48 = vpop.eup %5003 }
0x21d5   :  { %v3109_v56 = vmul.f32 %v5004_v48, %v3107_v57 }
0x21de   :  { %v3014_v10 = vpop.permute.xlu1 %3013 }
0x21df   :  { %v6095_v45 = vmul.f32 %v4996_v34, %v3014_v10 }
0x21e1   :  { %3132 = vrot.lane.b32.xlu1 %v6095_v45, %s5281_s29 }
0x2235   :  { %v3112_v52 = vpop.permute.xlu0 %3111 }
0x2236   :  { %v3114_v55 = vmul.f32 %v5004_v48, %v3112_v52 }
0x2238   :  { %3116 = vrot.lane.b32.xlu0 %v3114_v55, %s5281_s29 }
0x2253   :  { %v3133_v39 = vpop.permute.xlu1 %3132 }
0x2254   :  { %4683 = vmatmul.mubr.msk.f32.vlgmr.msra.gmra.mxu0 %vm257_vm2, %v3133_v39 }
0x2255   :  { %4697 = vmatpush3.msra.mxu0 %v5893_v14  ;;  %4704 = vmatprep.mubr.msk.f32.mxu0 %vm5279_vm0, %v5278_v0 }
0x2256   :  { %4698 = vmatprep.subr.mxu0 %v5278_v0 }
0x2257   :  { %4699 = vmatpush3.msra.mxu0 %v5895_v15 }
0x2258   :  { %4700 = vmatprep.subr.mxu0 %v5278_v0 }
0x2259   :  { %4701 = vmatpush3.msra.mxu0 %v5901_v17 }
0x225a   :  { %4702 = vmatprep.subr.mxu0 %v5278_v0 }
0x225b   :  { %4703 = vmatpush3.msra.mxu0 %v5905_v43 }
0x225c   :  { %4718 = vmatprep.subr.mxu0 %v5278_v0 }
0x22aa   :  { %v3117_v58 = vpop.permute.xlu0 %3116 }
0x22ab   :  { %v6112_v63 = vadd.f32 %v3117_v58, %v3109_v56 }
0x22ad   :  { %5005 = vtanh.f32 %v6112_v63  ;;  %v3327_v5 = vrot.slane %v6112_v63, 6 }
0x22ba   :  { %v5006_v3 = vpop.eup %5005 }
0x22bb   :  { %3122 = vrot.lane.b32.xlu0 %v5006_v3, %s5280_s2 }
0x2314   :  { %v3202_v13 = vpop.f32.mrf.mxu0 }
0x2315   :  { %v3207_v6 = vrot.slane %v3202_v13, 2 }
0x2316   :  { %v4684_v21 = vpop.f32.mrf.mxu0 }
0x2317   :  { %v3209_v9 = vadd.f32 %v3207_v6, %v3131_v19 }
0x2319   :  { %5007 = vtanh.f32 %v3209_v9  ;;  %v4204_v36 = vmul.f32 -1.442695, %v3209_v9 }
0x231b   :  { %5009 = vpow2.f32 %v4204_v36  ;;  %v5074_v36 = vld [vmem:[#allocation9] sm:$0xff] }
0x2326   :  { %v5008_v22 = vpop.eup %5007 }
0x2327   :  { %3222 = vrot.lane.b32.xlu0 %v5008_v22, %s5280_s2  ;;  %v5071_v22 = vld [vmem:[#allocation9 + $0x18] sm:$0xff] }
0x2328   :  { %v5010_v61 = vpop.eup %5009 }
0x2329   :  { %v3213_v25 = vadd.f32 1.0, %v5010_v61 }
0x232b   :  { %5011 = vrcp.f32 %v3213_v25 }
0x232d   :  { %v3123_v11 = vpop.permute.xlu0 %3122 }
0x232e   :  { %v3125_v23 = vmul.f32 %v5004_v48, %v3123_v11  ;;  %v3351_v48 = vld [vmem:[#allocation2] sm:$0x30] }
0x232f   :  { %v5072_v11 = vld [vmem:[#allocation9 + $0x10] sm:$0xff] }
0x2330   :  { %3127 = vrot.lane.b32.xlu1 %v3125_v23, %s5281_s29  ;;  %v5073_v23 = vld [vmem:[#allocation9 + $0x8] sm:$0xff] }
0x2338   :  { %v5012_v26 = vpop.eup %5011 }
0x2399   :  { %v3223_v27 = vpop.permute.xlu0 %3222 }
0x239a   :  { %v3225_v1 = vmul.f32 %v5012_v26, %v3223_v27 }
0x239c   :  { %3227 = vrot.lane.b32.xlu1 %v3225_v1, %s5281_s29 }
0x23a2   :  { %v6119_v12 = vpop.permute.xlu1 %3127 }
0x23a3   :  { %4694 = vmatmul.mubr.msk.f32.vlgmr.msra.gmra.mxu1 %vm257_vm2, %v6119_v12 }
0x23a4   :  { %4708 = vmatpush3.msra.mxu1 %v5827_v59  ;;  %4715 = vmatprep.mubr.msk.f32.mxu1 %vm5279_vm0, %v5278_v0  ;;  %v3220_v59 = vmul.f32 %v5012_v26, %v3218_v28 }
0x23a5   :  { %4709 = vmatprep.subr.mxu1 %v5278_v0 }
0x23a6   :  { %4710 = vmatpush3.msra.mxu1 %v5829_v60 }
0x23a7   :  { %4711 = vmatprep.subr.mxu1 %v5278_v0 }
0x23a8   :  { %4712 = vmatpush3.msra.mxu1 %v5834_v2  ;;  %v3242_v2 = vld [vmem:[#allocation2 + $0x18] sm:$0xc] }
0x23a9   :  { %4713 = vmatprep.subr.mxu1 %v5278_v0 }
0x23aa   :  { %4714 = vmatpush3.msra.mxu1 %v5839_v7 }
0x23ab   :  { %4729 = vmatprep.subr.mxu1 %v5278_v0 }
0x240e   :  { %v3228_v29 = vpop.permute.xlu1 %3227 }
0x240f   :  { %v6134_v31 = vadd.f32 %v3228_v29, %v3220_v59  ;;  %v3463_v29 = vld [vmem:[#allocation2 + $0x18] sm:$0x30] }
0x2411   :  { %5013 = vtanh.f32 %v6134_v31  ;;  %v3439_v61 = vrot.slane %v6134_v31, 2 }
0x241e   :  { %v5014_v33 = vpop.eup %5013 }
0x241f   :  { %3233 = vrot.lane.b32.xlu1 %v5014_v33, %s5280_s2 }
0x2463   :  { %v3311_v60 = vpop.f32.mrf.mxu1 }
0x2464   :  { %v3316_v32 = vrot.slane %v3311_v60, 6 }
0x2465   :  { %v4695_v20 = vpop.f32.mrf.mxu1 }
0x2466   :  { %v3318_v34 = vadd.f32 %v3316_v32, %v3242_v2 }
0x2468   :  { %5015 = vtanh.f32 %v3318_v34  ;;  %v4206_v40 = vmul.f32 -1.442695, %v3318_v34 }
0x246a   :  { %5017 = vpow2.f32 %v4206_v40 }
0x2475   :  { %v5016_v7 = vpop.eup %5015 }
0x2476   :  { %3331 = vrot.lane.b32.xlu0 %v5016_v7, %s5280_s2 }
0x2477   :  { %v5018_v4 = vpop.eup %5017 }
0x2478   :  { %v3322_v41 = vadd.f32 1.0, %v5018_v4 }
0x247a   :  { %5019 = vrcp.f32 %v3322_v41 }
0x2487   :  { %v5020_v24 = vpop.eup %5019 }
0x2488   :  { %v3329_v47 = vmul.f32 %v5020_v24, %v3327_v5 }
0x2491   :  { %v3234_v35 = vpop.permute.xlu1 %3233 }
0x2492   :  { %v6139_v37 = vmul.f32 %v5012_v26, %v3234_v35 }
0x2494   :  { %v3352_v38 = vrot.slane %v6139_v37, 6 }
0x2496   :  { %3353 = vrot.lane.b32.xlu1 %v3352_v38, %s5281_s29 }
0x24e8   :  { %v3332_v18 = vpop.permute.xlu0 %3331 }
0x24e9   :  { %v3334_v44 = vmul.f32 %v5020_v24, %v3332_v18 }
0x24eb   :  { %3336 = vrot.lane.b32.xlu0 %v3334_v44, %s5281_s29 }
0x2508   :  { %v3354_v46 = vpop.permute.xlu1 %3353 }
0x2509   :  { %4705 = vmatmul.mubr.msk.f32.vlgmr.msra.gmra.mxu0 %vm257_vm2, %v3354_v46 }
0x250a   :  { %4719 = vmatpush3.msra.mxu0 %v5893_v14  ;;  %4726 = vmatprep.mubr.msk.f32.mxu0 %vm5279_vm0, %v5278_v0 }
0x250b   :  { %4720 = vmatprep.subr.mxu0 %v5278_v0 }
0x250c   :  { %4721 = vmatpush3.msra.mxu0 %v5895_v15 }
0x250d   :  { %4722 = vmatprep.subr.mxu0 %v5278_v0 }
0x250e   :  { %4723 = vmatpush3.msra.mxu0 %v5901_v17 }
0x250f   :  { %4724 = vmatprep.subr.mxu0 %v5278_v0 }
0x2510   :  { %4725 = vmatpush3.msra.mxu0 %v5905_v43 }
0x2511   :  { %4740 = vmatprep.subr.mxu0 %v5278_v0 }
0x255d   :  { %v3337_v8 = vpop.permute.xlu0 %3336 }
0x255e   :  { %v6156_v10 = vadd.f32 %v3337_v8, %v3329_v47 }
0x2560   :  { %5021 = vtanh.f32 %v6156_v10 }
0x256d   :  { %v5022_v49 = vpop.eup %5021 }
0x256e   :  { %3342 = vrot.lane.b32.xlu0 %v5022_v49, %s5280_s2 }
0x25c9   :  { %v3423_v51 = vpop.f32.mrf.mxu0 }
0x25ca   :  { %v3428_v16 = vrot.slane %v3423_v51, 4 }
0x25cb   :  { %v4706_v52 = vpop.f32.mrf.mxu0 }
0x25cc   :  { %v3430_v55 = vadd.f32 %v3428_v16, %v3351_v48 }
0x25ce   :  { %5023 = vtanh.f32 %v3430_v55  ;;  %v4208_v63 = vmul.f32 -1.442695, %v3430_v55 }
0x25d0   :  { %5025 = vpow2.f32 %v4208_v63 }
0x25db   :  { %v5024_v39 = vpop.eup %5023 }
0x25dc   :  { %3443 = vrot.lane.b32.xlu0 %v5024_v39, %s5280_s2 }
0x25dd   :  { %v5026_v3 = vpop.eup %5025 }
0x25de   :  { %v3434_v13 = vadd.f32 1.0, %v5026_v3 }
0x25e0   :  { %v3343_v57 = vpop.permute.xlu0 %3342  ;;  %5027 = vrcp.f32 %v3434_v13 }
0x25e1   :  { %v6161_v56 = vmul.f32 %v5020_v24, %v3343_v57  ;;  %v3551_v24 = vrot.slane %v6156_v10, 6 }
0x25e3   :  { %v3464_v58 = vrot.slane %v6161_v56, 2 }
0x25e5   :  { %3465 = vrot.lane.b32.xlu1 %v3464_v58, %s5281_s29 }
0x25ed   :  { %v5028_v6 = vpop.eup %5027 }
0x25ee   :  { %v3441_v25 = vmul.f32 %v5028_v6, %v3439_v61 }
0x264e   :  { %v3444_v19 = vpop.permute.xlu0 %3443 }
0x264f   :  { %v3446_v21 = vmul.f32 %v5028_v6, %v3444_v19 }
0x2651   :  { %3448 = vrot.lane.b32.xlu1 %v3446_v21, %s5281_s29 }
0x2657   :  { %v3466_v9 = vpop.permute.xlu1 %3465 }
0x2658   :  { %4716 = vmatmul.mubr.msk.f32.vlgmr.msra.gmra.mxu1 %vm257_vm2, %v3466_v9 }
0x2659   :  { %4730 = vmatpush3.msra.mxu1 %v5071_v22  ;;  %4737 = vmatprep.mubr.msk.f32.mxu1 %vm5279_vm0, %v5278_v0  ;;  %v3687_v22 = vld [vmem:[#allocation2 + $0x18] sm:$0xc0] }
0x265a   :  { %4731 = vmatprep.subr.mxu1 %v5278_v0 }
0x265b   :  { %4732 = vmatpush3.msra.mxu1 %v5072_v11 }
0x265c   :  { %4733 = vmatprep.subr.mxu1 %v5278_v0 }
0x265d   :  { %4734 = vmatpush3.msra.mxu1 %v5073_v23 }
0x265e   :  { %4735 = vmatprep.subr.mxu1 %v5278_v0 }
0x265f   :  { %4736 = vmatpush3.msra.mxu1 %v5074_v36 }
0x2660   :  { %4751 = vmatprep.subr.mxu1 %v5278_v0 }
0x26c3   :  { %v3449_v26 = vpop.permute.xlu1 %3448 }
0x26c4   :  { %v6174_v27 = vadd.f32 %v3449_v26, %v3441_v25 }
0x26c6   :  { %5029 = vtanh.f32 %v6174_v27  ;;  %v3663_v63 = vrot.slane %v6174_v27, 2 }
0x26d3   :  { %v5030_v1 = vpop.eup %5029 }
0x26d4   :  { %3454 = vrot.lane.b32.xlu1 %v5030_v1, %s5280_s2 }
0x2718   :  { %v3535_v28 = vpop.f32.mrf.mxu1 }
0x2719   :  { %v3540_v59 = vrot.slane %v3535_v28, 4 }
0x271a   :  { %v4717_v33 = vpop.f32.mrf.mxu1 }
0x271b   :  { %v3542_v60 = vadd.f32 %v3540_v59, %v3463_v29 }
0x271d   :  { %5031 = vtanh.f32 %v3542_v60  ;;  %v4210_v34 = vmul.f32 -1.442695, %v3542_v60 }
0x271f   :  { %5033 = vpow2.f32 %v4210_v34 }
0x272a   :  { %v5032_v32 = vpop.eup %5031 }
0x272b   :  { %3555 = vrot.lane.b32.xlu0 %v5032_v32, %s5280_s2 }
0x272c   :  { %v5034_v7 = vpop.eup %5033 }
0x272d   :  { %v3546_v35 = vadd.f32 1.0, %v5034_v7 }
0x272f   :  { %5035 = vrcp.f32 %v3546_v35  ;;  %v3799_v35 = vld [vmem:[#allocation2] sm:$0x3] }
0x273c   :  { %v5036_v38 = vpop.eup %5035 }
0x2746   :  { %v3455_v2 = vpop.permute.xlu1 %3454 }
0x2747   :  { %v6179_v31 = vmul.f32 %v5028_v6, %v3455_v2 }
0x2749   :  { %v3576_v20 = vrot.slane %v6179_v31, 4 }
0x274b   :  { %3577 = vrot.lane.b32.xlu1 %v3576_v20, %s5281_s29 }
0x279d   :  { %v3556_v40 = vpop.permute.xlu0 %3555 }
0x279e   :  { %v3558_v4 = vmul.f32 %v5036_v38, %v3556_v40 }
0x27a0   :  { %3560 = vrot.lane.b32.xlu0 %v3558_v4, %s5281_s29 }
0x27bd   :  { %v3578_v41 = vpop.permute.xlu1 %3577 }
0x27be   :  { %4727 = vmatmul.mubr.msk.f32.vlgmr.msra.gmra.mxu0 %vm257_vm2, %v3578_v41  ;;  %v3916_v41 = vld [vmem:[#allocation12 + $0x38] sm:$0xff] }
0x27bf   :  { %4741 = vmatpush3.msra.mxu0 %v5893_v14  ;;  %4748 = vmatprep.mubr.msk.f32.mxu0 %vm5279_vm0, %v5278_v0  ;;  %v3553_v14 = vmul.f32 %v5036_v38, %v3551_v24  ;;  %v4004_v24 = vld [vmem:[#allocation13 + $0x38] sm:$0xff] }
0x27c0   :  { %4742 = vmatprep.subr.mxu0 %v5278_v0 }
0x27c1   :  { %4743 = vmatpush3.msra.mxu0 %v5895_v15 }
0x27c2   :  { %4744 = vmatprep.subr.mxu0 %v5278_v0 }
0x27c3   :  { %4745 = vmatpush3.msra.mxu0 %v5901_v17  ;;  %v3575_v17 = vld [vmem:[#allocation2] sm:$0xc] }
0x27c4   :  { %4746 = vmatprep.subr.mxu0 %v5278_v0 }
0x27c5   :  { %4747 = vmatpush3.msra.mxu0 %v5905_v43 }
0x27c6   :  { %4770 = vmatprep.subr.mxu0 %v5278_v0 }
0x2812   :  { %v3561_v18 = vpop.permute.xlu0 %3560 }
0x2813   :  { %v6196_v44 = vadd.f32 %v3561_v18, %v3553_v14  ;;  %v3915_v14 = vld [vmem:[#allocation12 + $0x30] sm:$0xff] }
0x2814   :  { %v4003_v18 = vld [vmem:[#allocation13 + $0x30] sm:$0xff] }
0x2815   :  { %5037 = vtanh.f32 %v6196_v44 }
0x2822   :  { %v5038_v46 = vpop.eup %5037 }
0x2823   :  { %3566 = vrot.lane.b32.xlu0 %v5038_v46, %s5280_s2  ;;  %v4002_v46 = vld [vmem:[#allocation13 + $0x28] sm:$0xff] }
0x287e   :  { %v3647_v15 = vpop.f32.mrf.mxu0 }
0x287f   :  { %v3652_v5 = vrot.slane %v3647_v15, 6  ;;  %v3913_v15 = vld [vmem:[#allocation12 + $0x20] sm:$0xff] }
0x2880   :  { %v4728_v47 = vpop.f32.mrf.mxu0 }
0x2881   :  { %v3654_v8 = vadd.f32 %v3652_v5, %v3575_v17  ;;  %v4001_v5 = vld [vmem:[#allocation13 + $0x20] sm:$0xff]  ;;  %v3912_v17 = vld [vmem:[#allocation12 + $0x18] sm:$0xff] }
0x2882   :  { %v4000_v47 = vld [vmem:[#allocation13 + $0x18] sm:$0xff] }
0x2883   :  { %5039 = vtanh.f32 %v3654_v8  ;;  %v4212_v16 = vmul.f32 -1.442695, %v3654_v8  ;;  %v3911_v8 = vld [vmem:[#allocation12 + $0x10] sm:$0xff] }
0x2885   :  { %5041 = vpow2.f32 %v4212_v16  ;;  %v3998_v16 = vld [vmem:[#allocation13 + $0x8] sm:$0xff] }
0x2890   :  { %v5040_v43 = vpop.eup %5039 }
0x2891   :  { %3667 = vrot.lane.b32.xlu0 %v5040_v43, %s5280_s2  ;;  %v3999_v43 = vld [vmem:[#allocation13 + $0x10] sm:$0xff] }
0x2892   :  { %v5042_v48 = vpop.eup %5041 }
0x2893   :  { %v3658_v52 = vadd.f32 1.0, %v5042_v48  ;;  %v3909_v48 = vld [vmem:[#allocation12] sm:$0xff] }
0x2895   :  { %v3567_v49 = vpop.permute.xlu0 %3566  ;;  %5043 = vrcp.f32 %v3658_v52  ;;  %v3997_v52 = vld [vmem:[#allocation13] sm:$0xff] }
0x2896   :  { %v6201_v10 = vmul.f32 %v5036_v38, %v3567_v49  ;;  %v3910_v49 = vld [vmem:[#allocation12 + $0x8] sm:$0xff] }
0x2898   :  { %v3688_v51 = vrot.slane %v6201_v10, 4 }
0x289a   :  { %3689 = vrot.lane.b32.xlu1 %v3688_v51, %s5281_s29 }
0x28a2   :  { %v5044_v55 = vpop.eup %5043 }
0x28a3   :  { %v3665_v3 = vmul.f32 %v5044_v55, %v3663_v63 }
0x2903   :  { %v3668_v39 = vpop.permute.xlu0 %3667 }
0x2904   :  { %v3670_v57 = vmul.f32 %v5044_v55, %v3668_v39 }
0x2906   :  { %3672 = vrot.lane.b32.xlu1 %v3670_v57, %s5281_s29 }
0x290c   :  { %v3690_v58 = vpop.permute.xlu1 %3689 }
0x290d   :  { %4738 = vmatmul.mubr.msk.f32.vlgmr.msra.gmra.mxu1 %vm257_vm2, %v3690_v58 }
0x290e   :  { %4767 = vmatprep.mubr.msk.f32.mxu1 %vm5279_vm0, %v5278_v0  ;;  %4752 = vmatpush3.msra.mxu1 %v3916_v41 }
0x290f   :  { %4753 = vmatprep.subr.mxu1 %v5278_v0 }
0x2910   :  { %4754 = vmatpush3.msra.mxu1 %v3915_v14 }
0x2911   :  { %4755 = vmatprep.subr.mxu1 %v5278_v0 }
0x2978   :  { %v3673_v13 = vpop.permute.xlu1 %3672 }
0x2979   :  { %v6210_v6 = vadd.f32 %v3673_v13, %v3665_v3 }
0x297b   :  { %5045 = vtanh.f32 %v6210_v6 }
0x2988   :  { %v5046_v19 = vpop.eup %5045 }
0x2989   :  { %3678 = vrot.lane.b32.xlu1 %v5046_v19, %s5280_s2 }
0x29cd   :  { %v3759_v21 = vpop.f32.mrf.mxu1 }
0x29ce   :  { %v3764_v9 = vrot.slane %v3759_v21, 2 }
0x29cf   :  { %v4739_v11 = vpop.f32.mrf.mxu1 }
0x29d0   :  { %v3766_v23 = vadd.f32 %v3764_v9, %v3687_v22  ;;  %v3884_v9 = vrot.slane %v6210_v6, 2 }
0x29d2   :  { %5047 = vtanh.f32 %v3766_v23  ;;  %v4214_v27 = vmul.f32 -1.442695, %v3766_v23 }
0x29d4   :  { %5049 = vpow2.f32 %v4214_v27 }
0x29df   :  { %v5048_v36 = vpop.eup %5047 }
0x29e0   :  { %3779 = vrot.lane.b32.xlu0 %v5048_v36, %s5280_s2 }
0x29e1   :  { %v5050_v1 = vpop.eup %5049 }
0x29e2   :  { %v3770_v28 = vadd.f32 1.0, %v5050_v1 }
0x29e4   :  { %5051 = vrcp.f32 %v3770_v28 }
0x29f1   :  { %v6221_v59 = vpop.eup %5051 }
0x29fb   :  { %v3679_v61 = vpop.permute.xlu1 %3678 }
0x29fc   :  { %v6215_v25 = vmul.f32 %v5044_v55, %v3679_v61 }
0x29fe   :  { %v3800_v26 = vrot.slane %v6215_v25, 2 }
0x2a00   :  { %3801 = vrot.lane.b32.xlu1 %v3800_v26, %s5281_s29 }
0x2a04   :  { %2352 = vrot.lane.b32.xlu1 %v5963_v53, %s5280_s2  ;;  %v3775_v53 = vrot.slane %v6196_v44, 6  ;;  %v3914_v44 = vld [vmem:[#allocation12 + $0x28] sm:$0xff] }
0x2a05   :  { %4756 = vmatpush3.msra.mxu1 %v3914_v44 }
0x2a06   :  { %v3777_v2 = vmul.f32 %v6221_v59, %v3775_v53  ;;  %4757 = vmatprep.subr.mxu1 %v5278_v0 }
0x2a07   :  { %4758 = vmatpush3.msra.mxu1 %v3913_v15 }
0x2a08   :  { %4759 = vmatprep.subr.mxu1 %v5278_v0 }
0x2a09   :  { %4760 = vmatpush3.msra.mxu1 %v3912_v17 }
0x2a0a   :  { %4761 = vmatprep.subr.mxu1 %v5278_v0 }
0x2a0b   :  { %4762 = vmatpush3.msra.mxu1 %v3911_v8 }
0x2a0c   :  { %4763 = vmatprep.subr.mxu1 %v5278_v0 }
0x2a0d   :  { %4764 = vmatpush3.msra.mxu1 %v3910_v49 }
0x2a0e   :  { %4765 = vmatprep.subr.mxu1 %v5278_v0 }
0x2a0f   :  { %4766 = vmatpush3.msra.mxu1 %v3909_v48 }
0x2a52   :  { %v3780_v29 = vpop.permute.xlu0 %3779 }
0x2a53   :  { %v3782_v33 = vmul.f32 %v6221_v59, %v3780_v29 }
0x2a55   :  { %3784 = vrot.lane.b32.xlu0 %v3782_v33, %s5281_s29 }
0x2a72   :  { %v3802_v60 = vpop.permute.xlu1 %3801 }
0x2a73   :  { %4749 = vmatmul.mubr.msk.f32.vlgmr.msra.gmra.mxu0 %vm257_vm2, %v3802_v60 }
0x2a74   :  { %4786 = vmatprep.mubr.msk.f32.mxu0 %vm5279_vm0, %v5278_v0  ;;  %4771 = vmatpush3.msra.mxu0 %v4004_v24 }
0x2a75   :  { %4772 = vmatprep.subr.mxu0 %v5278_v0 }
0x2a76   :  { %v2353_v32 = vpop.permute.xlu1 %2352  ;;  %4773 = vmatpush3.msra.mxu0 %v4003_v18 }
0x2a77   :  { %2355 = vst.msk [vmem:[%s6393_s13 + $0x8] sm:$0xc0] %vm465_vm8, %v2353_v32  ;;  %4774 = vmatprep.subr.mxu0 %v5278_v0 }
0x2a78   :  { %4775 = vmatpush3.msra.mxu0 %v4002_v46 }
0x2a79   :  { %4776 = vmatprep.subr.mxu0 %v5278_v0 }
0x2a7a   :  { %4777 = vmatpush3.msra.mxu0 %v4001_v5 }
0x2a7b   :  { %4778 = vmatprep.subr.mxu0 %v5278_v0 }
0x2a7c   :  { %4779 = vmatpush3.msra.mxu0 %v4000_v47 }
0x2a7d   :  { %4780 = vmatprep.subr.mxu0 %v5278_v0 }
0x2a7e   :  { %4781 = vmatpush3.msra.mxu0 %v3999_v43 }
0x2a7f   :  { %4782 = vmatprep.subr.mxu0 %v5278_v0 }
0x2a80   :  { %4783 = vmatpush3.msra.mxu0 %v3998_v16 }
0x2a81   :  { %4784 = vmatprep.subr.mxu0 %v5278_v0 }
0x2a82   :  { %4785 = vmatpush3.msra.mxu0 %v3997_v52 }
0x2ac7   :  { %v3785_v20 = vpop.permute.xlu0 %3784 }
0x2ac8   :  { %v3787_v34 = vadd.f32 %v3785_v20, %v3777_v2 }
0x2aca   :  { %5053 = vtanh.f32 %v3787_v34 }
0x2ad7   :  { %v5054_v7 = vpop.eup %5053 }
0x2ad8   :  { %3790 = vrot.lane.b32.xlu0 %v5054_v7, %s5280_s2 }
0x2b33   :  { %v3871_v38 = vpop.f32.mrf.mxu0 }
0x2b34   :  { %v3875_v40 = vadd.f32 %v3871_v38, %v3799_v35 }
0x2b35   :  { %v4750_v4 = vpop.f32.mrf.mxu0 }
0x2b36   :  { %5055 = vtanh.f32 %v3875_v40  ;;  %v4216_v57 = vmul.f32 -1.442695, %v3875_v40 }
0x2b38   :  { %5057 = vpow2.f32 %v4216_v57 }
0x2b43   :  { %v5056_v51 = vpop.eup %5055 }
0x2b44   :  { %3888 = vrot.lane.b32.xlu1 %v5056_v51, %s5280_s2 }
0x2b45   :  { %v5058_v58 = vpop.eup %5057 }
0x2b46   :  { %v3879_v63 = vadd.f32 1.0, %v5058_v58 }
0x2b48   :  { %5059 = vrcp.f32 %v3879_v63 }
0x2b4a   :  { %v3791_v55 = vpop.permute.xlu0 %3790 }
0x2b4b   :  { %v3793_v39 = vmul.f32 %v6221_v59, %v3791_v55 }
0x2b4d   :  { %3795 = vrot.lane.b32.xlu0 %v3793_v39, %s5281_s29 }
0x2b55   :  { %v6252_v3 = vpop.eup %5059 }
0x2b56   :  { %v3886_v22 = vmul.f32 %v6252_v3, %v3884_v9 }
0x2bb6   :  { %v3889_v13 = vpop.permute.xlu1 %3888 }
0x2bb7   :  { %v3891_v19 = vmul.f32 %v6252_v3, %v3889_v13 }
0x2bb9   :  { %3893 = vrot.lane.b32.xlu0 %v3891_v19, %s5281_s29 }
0x2bbf   :  { %v3796_v0 = vpop.permute.xlu0 %3795 }
0x2bc0   :  { %3798 = vst.msk [vmem:[%s6393_s13 + $0x8] sm:$0xc0] %vm1027_vm5, %v3796_v0 }
0x2bc7   :  { %v3908_v21 = vld [vmem:[%s6393_s13 + $0xe] sm:$0x3] }
0x2bc8   :  { %4768 = vmatmul.mubr.msk.f32.vlgmr.msra.gmra.mxu1 %vm2055_vm11, %v3908_v21  ;;  %4787 = vmatmul.mubr.msk.f32.vlgmr.msra.gmra.mxu0 %vm2055_vm11, %v3908_v21 }
0x2c2b   :  { %v3894_v11 = vpop.permute.xlu0 %3893 }
0x2c2c   :  { %v3896_v23 = vadd.f32 %v3894_v11, %v3886_v22 }
0x2c2e   :  { %5061 = vtanh.f32 %v3896_v23 }
0x2c3b   :  { %v5062_v36 = vpop.eup %5061 }
0x2c3c   :  { %3899 = vrot.lane.b32.xlu0 %v5062_v36, %s5280_s2 }
0x2c40   :  { %2461 = vrot.lane.b32.xlu0 %v5985_v50, %s5281_s29  ;;  %v4217_v50 = vld [vmem:[%s6390_s10] ss:$0 sm:$0xff]  ;;  %s5282_s10 = smov 120  }
0x2c44   :  { %2573 = vrot.lane.b32.xlu0 %v6007_v54, %s5280_s2  ;;  %v4219_v54 = vld [vmem:[#allocation15] ss:$0 sm:$0xff] }
0x2c48   :  { %2685 = vrot.lane.b32.xlu0 %v6029_v42, %s5281_s29 }
0x2c4c   :  { %2797 = vrot.lane.b32.xlu0 %v6051_v62, %s5280_s2 }
0x2c50   :  { %2909 = vrot.lane.b32.xlu0 %v6073_v30, %s5281_s29 }
0x2c54   :  { %3018 = vrot.lane.b32.xlu0 %v6095_v45, %s5280_s2 }
0x2c58   :  { %3238 = vrot.lane.b32.xlu0 %v6139_v37, %s5280_s2 }
0x2c5c   :  { %3347 = vrot.lane.b32.xlu0 %v6161_v56, %s5281_s29 }
0x2c60   :  { %3571 = vrot.lane.b32.xlu0 %v6201_v10, %s5281_s29 }
0x2c64   :  { %3683 = vrot.lane.b32.xlu0 %v6215_v25, %s5280_s2 }
0x2c88   :  { %v3993_v42 = vpop.f32.mrf.mxu1  ;;  %v4078_v62 = vpop.f32.mrf.mxu0 }
0x2c89   :  { %v6291_v30 = vadd.f32 %v4217_v50, %v3993_v42  ;;  %v6293_v45 = vadd.f32 %v4219_v54, %v4078_v62 }
0x2c8a   :  { %v4769_v37 = vpop.f32.mrf.mxu1  ;;  %v4788_v56 = vpop.f32.mrf.mxu0 }
0x2c8b   :  { %v4094_v10 = vmul.f32 %v6293_v45, %v6293_v45  ;;  %4083 = vst.msk [vmem:[#allocation16] sm:$0x3] %vm4082_vm12, %v6291_v30  ;;  %v4086_v6 = vmul.f32 %v6291_v30, %v6291_v30 }
0x2c8c   :  { %4085 = vst.msk [vmem:[#allocation17] sm:$0x3] %vm4084_vm13, %v6293_v45 }
0x2c8d   :  { %4096 = vrot.lane.b32.xlu1 %v4094_v10, %s5282_s10  ;;  %v4087_v25 = vsel %vm4082_vm12, %v4086_v6, 0.0  ;;  %s4117_s10 = sshll.u32 %s5283_s7, 4  ;;  %s4118_s10 = int_to_ptr.vmem [resolvable:$true] %s4117_s10 }
0x2c8e   :  { %s5215_s29 = scalar_lea.vmem %s4118_s10, 32  ;;  %p5220_p8 = scmp.lt.s32.totalorder %s4118_s10, %s4118_s10 }
0x2c8f   :  { %p5216_p7 = scmp.ne.s32.totalorder %s4118_s10, %s5215_s29  ;;  %p5221_p9 = scmp.lt.s32.totalorder %s5215_s29, %s5215_s29 }
0x2c91   :  { %p5222_p10 = por %p5221_p9, %p5220_p8 }
0x2c93   :  { %p5223_p11 = pnand %p5222_p10, %p5216_p7 }
0x2cae   :  { %v3900_v61 = vpop.permute.xlu0 %3899 }
0x2cb1   :  { %4088 = vadd.xlane.f32.xlu1 %v4087_v25 }
0x2cb2   :  { %v2462_v26 = vpop.permute.xlu0 %2461 }
0x2cb3   :  { %2464 = vst.msk [vmem:[%s6393_s13] sm:$0xc] %vm575_vm4, %v2462_v26 }
0x2cb6   :  { %v2574_v27 = vpop.permute.xlu0 %2573 }
0x2cb7   :  { %2576 = vst.msk [vmem:[%s6393_s13 + $0x8] sm:$0x30] %vm688_vm7, %v2574_v27 }
0x2cba   :  { %v2686_v1 = vpop.permute.xlu0 %2685 }
0x2cbb   :  { %2688 = vst.msk [vmem:[%s6393_s13] sm:$0x30] %vm801_vm6, %v2686_v1 }
0x2cbe   :  { %v2798_v28 = vpop.permute.xlu0 %2797 }
0x2cbf   :  { %2800 = vst.msk [vmem:[%s6393_s13 + $0x8] sm:$0xc] %vm914_vm9, %v2798_v28 }
0x2cc2   :  { %3459 = vrot.lane.b32.xlu1 %v6179_v31, %s5280_s2  ;;  %v2910_v59 = vpop.permute.xlu0 %2909 }
0x2cc3   :  { %2912 = vst.msk [vmem:[%s6393_s13] sm:$0xc0] %vm1027_vm5, %v2910_v59 }
0x2cc6   :  { %v3019_v29 = vpop.permute.xlu0 %3018 }
0x2cc7   :  { %3021 = vst.msk [vmem:[%s6393_s13 + $0x8] sm:$0x3] %vm1137_vm10, %v3019_v29 }
0x2cc8   :  { %3130 = vst.msk [vmem:[%s6393_s13 + $0x8] sm:$0x3] %vm360_vm3, %v6119_v12 }
0x2cca   :  { %v3239_v33 = vpop.permute.xlu0 %3238 }
0x2ccb   :  { %3241 = vst.msk [vmem:[%s6393_s13] sm:$0xc0] %vm465_vm8, %v3239_v33 }
0x2cce   :  { %v3348_v31 = vpop.permute.xlu0 %3347 }
0x2ccf   :  { %3350 = vst.msk [vmem:[%s6393_s13 + $0x8] sm:$0xc] %vm575_vm4, %v3348_v31 }
0x2cd2   :  { %v3572_v60 = vpop.permute.xlu0 %3571 }
0x2cd3   :  { %3574 = vst.msk [vmem:[%s6393_s13 + $0x8] sm:$0x30] %vm801_vm6, %v3572_v60 }
0x2cd6   :  { %v3684_v32 = vpop.permute.xlu0 %3683 }
0x2cd7   :  { %3686 = vst.msk [vmem:[%s6393_s13] sm:$0xc] %vm914_vm9, %v3684_v32 }
0x2cff   :  { %v4097_v12 = vpop.permute.xlu1 %4096 }
0x2d00   :  { %v4099_v53 = vadd.f32 %v4097_v12, %v4094_v10 }
0x2d02   :  { %5063 = vrsqrt.f32 %v4099_v53 }
0x2d03   :  { %5226 = shalt.err (!%p5223_p11)
}
0x2d04   :  { %4120 = dma.vmem_to_hbm [thread:$0]  %s4118_s10, 32, %s6394_s14, [#allocation6]  }
0x2d05   :  { %s5235_s12 = scalar_lea.vmem %s4128_s28, 32  ;;  %p5240_p13 = scmp.lt.s32.totalorder %s4128_s28, %s4128_s28 }
0x2d06   :  { %p5236_p12 = scmp.ne.s32.totalorder %s4128_s28, %s5235_s12  ;;  %p5241_p0 = scmp.lt.s32.totalorder %s5235_s12, %s5235_s12 }
0x2d08   :  { %p5242_p1 = por %p5241_p0, %p5240_p13 }
0x2d0a   :  { %p5243_p2 = pnand %p5242_p1, %p5236_p12 }
0x2d0c   :  { %5246 = shalt.err (!%p5243_p2)
}
0x2d0d   :  { %4130 = dma.vmem_to_hbm [thread:$0]  %s4128_s28, 32, %s6395_s15, [#allocation18]   ;;  %v3902_v20 = vmul.f32 %v6252_v3, %v3900_v61 }
0x2d0f   :  { %v5064_v2 = vpop.eup %5063 }
0x2d10   :  { %4103 = vrot.lane.b32.xlu0 %v5064_v2, %s5273_s22  ;;  %v4101_v41 = vmul.f32 %v5064_v2, %v6293_v45 }
0x2d14   :  { %3904 = vrot.lane.b32.xlu0 %v3902_v20, %s5280_s2 }
0x2d3a   :  { %v4089_v34 = vpop.xlane.xlu1 %4088 }
0x2d3b   :  { %5065 = vrsqrt.f32 %v4089_v34 }
0x2d3e   :  { %v3460_v7 = vpop.permute.xlu1 %3459 }
0x2d3f   :  { %3462 = vst.msk [vmem:[%s6393_s13] sm:$0x30] %vm688_vm7, %v3460_v7 }
0x2d48   :  { %v5066_v35 = vpop.eup %5065 }
0x2d49   :  { %v4091_v38 = vmul.f32 3.1622777, %v5066_v35 }
0x2d4b   :  { %v4092_v40 = vmul.f32 %v4091_v38, %v6291_v30 }
0x2d4d   :  { %4093 = vst.msk [vmem:[%s6396_s16] sm:$0x3] %vm4082_vm12, %v4092_v40 }
0x2d82   :  { %v4104_v4 = vpop.permute.xlu0 %4103 }
0x2d83   :  { %v4106_v24 = vmul.f32 %v4104_v4, %v6293_v45 }
0x2d85   :  { %v4107_v14 = vsel %vm160_vm1, %v4101_v41, %v4106_v24 }
0x2d86   :  { %v3905_v18 = vpop.permute.xlu0 %3904  ;;  %4108 = vst.msk [vmem:[%s6397_s17] sm:$0x3] %vm4084_vm13, %v4107_v14 }
0x2d87   :  { %3907 = vst.msk [vmem:[%s6393_s13] sm:$0x3] %vm1137_vm10, %v3905_v18 }
0x2d88   :  { %5263 = dma.done.wait [#allocation6], 32  }
0x2d89   :  { %5264 = vsyncadd [#allocation6], 4294967264 }
0x2d8a   :  { %5265 = dma.done.wait [#allocation18], 32  }
0x2d8b   :  { %5266 = vsyncadd [#allocation18], 4294967264 }
0x2d8c   :  { %4147 = vsyncpa [#allocation5], 1 }
0x2d8d   :  { %4148 = vsyncpa [#allocation8], 1 }
0x2d8e   :  { %4149 = vsyncpa [#allocation11], 1 }
0x2d8f   :  { %4150 = vsyncpa [#allocation14], 1 }
0x2d90   :  { %4151 = vsyncpa [#allocation6], 1 }
0x2d91   :  { %4152 = vsyncpa [#allocation18], 1 }

</bundles_post_ra>
